<compile_context>
chip_gen: v5e
topology: v5e:2x2
jax: 0.10.0
libtpu: 0.0.40
codegen_flags: <defaults>
</compile_context>

<pallas_src>
import jax
import jax.numpy as jnp
from jax.experimental import pallas as pl
from jax.experimental.pallas import tpu as pltpu

# ------------------------- configuration (small shapes) -------------------------
CHANNEL = 3
IM_SIZE = (16, 16)
NUM_CLASSES = 2
HIDDEN = 32                    # width of the synthetic `get_arch` network
TOTAL_PATCH_NUM = 16           # 4x4 grid of overlapping patches on the poster
GRID_SIDE = 4
PATCH_STRIDE = 8               # stride < im_size => overlapping crops
DISTILL_BATCH_SIZE = 4
WINDOW = 3                     # inner-loop unroll length
LR = 0.01
MOMENTUM = 0.9
WEIGHT_DECAY = 5e-4

K_COLS = CHANNEL * 9           # im2col feature width (27)
K_PAD = 32                     # padded to 32 for bf16 sublane packing alignment
HW = IM_SIZE[0] * IM_SIZE[1]   # spatial positions per image (256)
TRAIN_ROWS = DISTILL_BATCH_SIZE * HW   # 1024
EVAL_BATCH = 2
EVAL_ROWS = EVAL_BATCH * HW            # 512


# --------------------- fused train(WINDOW steps)+eval kernel ---------------------
def _podd_kernel(cols_ref, onehot_ref, pool_tr_ref, xcols_ref, pool_ev_ref,
                 wc0_ref, bc0_ref, wf0_ref, bf0_ref,
                 out_ref, pres_ref,
                 wc_sc, bc_sc, wf_sc, bf_sc, mwc_sc, mbc_sc, mwf_sc, mbf_sc):
    step = pl.program_id(0)

    # ---- step 0: load fresh params into VMEM scratch, zero momentum ----
    @pl.when(step == 0)
    def _init():
        wc_sc[...] = wc0_ref[...]
        bc_sc[...] = bc0_ref[...]
        wf_sc[...] = wf0_ref[...]
        bf_sc[...] = bf0_ref[...]
        mwc_sc[...] = jnp.zeros_like(mwc_sc)
        mbc_sc[...] = jnp.zeros_like(mbc_sc)
        mwf_sc[...] = jnp.zeros_like(mwf_sc)
        mbf_sc[...] = jnp.zeros_like(mbf_sc)

    def _forward(cols_bf, pool):
        # conv3x3 (im2col matmul) -> bias -> ReLU -> mean-pool (matmul) -> FC head
        wc_bf = wc_sc[...].astype(jnp.bfloat16)        # tiny 32x32 cast, in VMEM
        z = jnp.dot(cols_bf, wc_bf, preferred_element_type=jnp.float32) + bc_sc[...]
        y = jnp.maximum(z, 0.0)
        feat = jnp.dot(pool, y, preferred_element_type=jnp.float32)       # [b, HIDDEN]
        logits = jnp.dot(feat, wf_sc[...], preferred_element_type=jnp.float32) + bf_sc[...]
        return z, feat, logits

    # ---- steps 0..WINDOW-1: one fused fwd + CE-grad + bwd + SGD update ----
    @pl.when(step < WINDOW)
    def _train_step():
        cols_bf = cols_ref[0]                          # [TRAIN_ROWS, K_PAD] bf16
        pool = pool_tr_ref[...]                        # [B, TRAIN_ROWS] f32 (1/HW entries)
        z, feat, logits = _forward(cols_bf, pool)

        # cross-entropy gradient (reduction='mean'): (softmax - onehot) / B
        m = jnp.max(logits, axis=-1, keepdims=True)
        e = jnp.exp(logits - m)
        p = e / jnp.sum(e, axis=-1, keepdims=True)
        dlog = (p - onehot_ref[0]) * (1.0 / DISTILL_BATCH_SIZE)           # [B, NC]

        # FC head grads (contract over the batch axis, no materialized transposes)
        dwf = jax.lax.dot_general(feat, dlog, (((0,), (0,)), ((), ())),
                                  preferred_element_type=jnp.float32)    # [HIDDEN, NC]
        dbf = jnp.sum(dlog, axis=0, keepdims=True)
        dfeat = jax.lax.dot_general(dlog, wf_sc[...], (((1,), (1,)), ((), ())),
                                    preferred_element_type=jnp.float32)  # [B, HIDDEN]

        # mean-pool backward: dy = pool^T @ dfeat  (1/HW already folded into pool)
        dy = jax.lax.dot_general(pool, dfeat, (((0,), (0,)), ((), ())),
                                 preferred_element_type=jnp.float32)     # [ROWS, HIDDEN]
        dz = jnp.where(z > 0.0, dy, 0.0)                                  # ReLU bwd
        dbc = jnp.sum(dz, axis=0, keepdims=True)
        # bf16 operands, f32 accumulation (no f32-emulated MXU matmul)
        dwc = jax.lax.dot_general(cols_bf, dz.astype(jnp.bfloat16),
                                  (((0,), (0,)), ((), ())),
                                  preferred_element_type=jnp.float32)    # [K_PAD, HIDDEN]
        # NOTE: d(cols) is dead in this call path (grad wrt params only) -> skipped.

        # differentiable SGD(momentum=0.9, weight_decay=5e-4), PyTorch semantics
        def _sgd(p_sc, m_sc, g):
            buf = MOMENTUM * m_sc[...] + g + WEIGHT_DECAY * p_sc[...]
            m_sc[...] = buf
            p_sc[...] = p_sc[...] - LR * buf

        _sgd(wc_sc, mwc_sc, dwc)
        _sgd(bc_sc, mbc_sc, dbc)
        _sgd(wf_sc, mwf_sc, dwf)
        _sgd(bf_sc, mbf_sc, dbf)

    # ---- final step: evaluate the trained net on x, emit (logits, features) ----
    @pl.when(step == WINDOW)
    def _final_eval():
        _, feat, logits = _forward(xcols_ref[...], pool_ev_ref[...])
        out_ref[...] = logits
        pres_ref[...] = feat


def _podd_fused_call(cols_steps, onehot_steps, pool_tr, x_cols, pool_ev, params):
    clamp3 = lambda s: (jnp.minimum(s, WINDOW - 1), 0, 0)   # eval step reuses last block
    fixed2 = lambda s: (0, 0)                                # resident across the grid
    return pl.pallas_call(
        _podd_kernel,
        out_shape=(jax.ShapeDtypeStruct((EVAL_BATCH, NUM_CLASSES), jnp.float32),
                   jax.ShapeDtypeStruct((EVAL_BATCH, HIDDEN), jnp.float32)),
        grid_spec=pltpu.PrefetchScalarGridSpec(
            num_scalar_prefetch=0,
            grid=(WINDOW + 1,),
            in_specs=[
                pl.BlockSpec((1, TRAIN_ROWS, K_PAD), clamp3),                 # cols/step
                pl.BlockSpec((1, DISTILL_BATCH_SIZE, NUM_CLASSES), clamp3),   # one-hot/step
                pl.BlockSpec((DISTILL_BATCH_SIZE, TRAIN_ROWS), fixed2),       # train pool
                pl.BlockSpec((EVAL_ROWS, K_PAD), fixed2),                     # x cols
                pl.BlockSpec((EVAL_BATCH, EVAL_ROWS), fixed2),                # eval pool
                pl.BlockSpec((K_PAD, HIDDEN), fixed2),                        # conv_w0
                pl.BlockSpec((1, HIDDEN), fixed2),                            # conv_b0
                pl.BlockSpec((HIDDEN, NUM_CLASSES), fixed2),                  # fc_w0
                pl.BlockSpec((1, NUM_CLASSES), fixed2),                       # fc_b0
            ],
            out_specs=(pl.BlockSpec((EVAL_BATCH, NUM_CLASSES), fixed2),
                       pl.BlockSpec((EVAL_BATCH, HIDDEN), fixed2)),
            scratch_shapes=[
                pltpu.VMEM((K_PAD, HIDDEN), jnp.float32),         # conv_w
                pltpu.VMEM((1, HIDDEN), jnp.float32),             # conv_b
                pltpu.VMEM((HIDDEN, NUM_CLASSES), jnp.float32),   # fc_w
                pltpu.VMEM((1, NUM_CLASSES), jnp.float32),        # fc_b
                pltpu.VMEM((K_PAD, HIDDEN), jnp.float32),         # momentum conv_w
                pltpu.VMEM((1, HIDDEN), jnp.float32),             # momentum conv_b
                pltpu.VMEM((HIDDEN, NUM_CLASSES), jnp.float32),   # momentum fc_w
                pltpu.VMEM((1, NUM_CLASSES), jnp.float32),        # momentum fc_b
            ]),
        compiler_params=pltpu.CompilerParams(
            dimension_semantics=("arbitrary",)),
    )(cols_steps, onehot_steps, pool_tr, x_cols, pool_ev,
      params["conv_w"], params["conv_b"], params["fc_w"], params["fc_b"])


# ----------------------- synthetic `get_arch` network ----------------------------
# net(x) -> (logits, pres): conv3x3(pad=1) -> ReLU -> global-avg-pool -> linear
def init_net_params(key):
    k1, k2 = jax.random.split(key)
    conv_w = jax.random.normal(k1, (K_COLS, HIDDEN), jnp.float32) * (2.0 / K_COLS) ** 0.5
    conv_w = jnp.pad(conv_w, ((0, K_PAD - K_COLS), (0, 0)))   # padded taps are exact zero
    conv_b = jnp.zeros((1, HIDDEN), jnp.float32)
    fc_w = jax.random.normal(k2, (HIDDEN, NUM_CLASSES), jnp.float32) * (1.0 / HIDDEN) ** 0.5
    fc_b = jnp.zeros((1, NUM_CLASSES), jnp.float32)
    return {"conv_w": conv_w, "conv_b": conv_b, "fc_w": fc_w, "fc_b": fc_b}


def _im2col3x3(x):
    # x: [B, C, H, W] -> [B*H*W, K_PAD], column order c*9 + (dh*3+dw), zero-padded to 32
    # TODO(synk): the 3x3 im2col gather stays in XLA (fused under jit); pulling it
    # into the kernel needs sublane<->lane merging reshapes that are risky in Mosaic.
    B, C, H, W = x.shape
    xp = jnp.pad(x, ((0, 0), (0, 0), (1, 1), (1, 1)))
    taps = []
    for dh in range(3):
        for dw in range(3):
            taps.append(xp[:, :, dh:dh + H, dw:dw + W])
    patches = jnp.stack(taps, axis=-1)            # [B, C, H, W, 9]
    patches = patches.transpose(0, 2, 3, 1, 4)    # [B, H, W, C, 9]
    cols = patches.reshape(B * H * W, C * 9)
    return jnp.pad(cols, ((0, 0), (0, K_PAD - K_COLS)))


def _pool_matrix(batch, hw):
    # block-diagonal mean-pool matrix, built ONCE in the wrapper (not per-step in-kernel)
    rows = batch * hw
    r = jax.lax.broadcasted_iota(jnp.int32, (batch, rows), 1)
    b = jax.lax.broadcasted_iota(jnp.int32, (batch, rows), 0)
    mask = (r >= b * hw) & (r < (b + 1) * hw)
    return jnp.where(mask, 1.0 / hw, 0.0).astype(jnp.float32)


# ------------------------- cropping / label functions ----------------------------
def get_crops(data, indices):
    # data: poster [C, PH, PW]; indices: [b] int -> [b, C, im_h, im_w]
    def one(idx):
        r = idx // GRID_SIDE
        c = idx % GRID_SIDE
        return jax.lax.dynamic_slice(
            data, (0, r * PATCH_STRIDE, c * PATCH_STRIDE),
            (CHANNEL, IM_SIZE[0], IM_SIZE[1]))
    return jax.vmap(one)(indices)


# ------------------------------ PoDD.forward -------------------------------------
@jax.jit
def podd_forward(distilled_data, y_init, x, sample_key):
    # fresh net each forward (mirrors `self.net = get_arch(...)`); fixed key, so the
    # "fresh" net is the same deterministic initialization every call.
    params = init_net_params(jax.random.PRNGKey(42))

    # dd_type == 'standard': curriculum pre-loop skipped; per-step patch sampling.
    # TODO(synk): syn_intervention / real_intervention are opaque callables -> identity.
    idx_steps = jnp.stack([
        jnp.sort(jax.random.permutation(jax.random.fold_in(sample_key, i),
                                        TOTAL_PATCH_NUM)[:DISTILL_BATCH_SIZE])
        for i in range(WINDOW)])                                   # [WINDOW, B]

    imgs_steps = jax.vmap(lambda idx: get_crops(distilled_data, idx))(idx_steps)
    cols_steps = jax.vmap(_im2col3x3)(imgs_steps.astype(jnp.bfloat16))  # [W, 1024, 32]
    onehot_steps = jax.nn.one_hot(y_init[idx_steps], NUM_CLASSES,
                                  dtype=jnp.float32)                    # [W, B, NC]
    x_cols = _im2col3x3(x.astype(jnp.bfloat16))                         # [512, 32]

    pool_tr = _pool_matrix(DISTILL_BATCH_SIZE, HW)                      # [4, 1024]
    pool_ev = _pool_matrix(EVAL_BATCH, HW)                              # [2, 512]

    # single Pallas launch: WINDOW inner-SGD steps + final eval, params stay in VMEM
    out, pres = _podd_fused_call(cols_steps, onehot_steps, pool_tr, x_cols, pool_ev, params)
    return out, pres


# ------------------------------------ main ----------------------------------------
if __name__ == "__main__":
    key = jax.random.PRNGKey(0)
    k1, k2, k3, k4 = jax.random.split(key, 4)

    poster_hw = (GRID_SIDE - 1) * PATCH_STRIDE + IM_SIZE[0]      # 40
    distilled_data = jax.random.normal(k1, (CHANNEL, poster_hw, poster_hw), jnp.float32)
    y_init = jax.random.randint(k2, (TOTAL_PATCH_NUM,), 0, NUM_CLASSES)
    x = jax.random.normal(k3, (EVAL_BATCH, CHANNEL, IM_SIZE[0], IM_SIZE[1]), jnp.float32)

    out, pres = podd_forward(distilled_data, y_init, x, k4)
    out, pres = jax.block_until_ready((out, pres))

    assert out.shape == (EVAL_BATCH, NUM_CLASSES), out.shape
    assert pres.shape == (EVAL_BATCH, HIDDEN), pres.shape
    assert jnp.all(jnp.isfinite(out)) and jnp.all(jnp.isfinite(pres))
    print("KERNEL_OK")
</pallas_src>

<mosaic_0001>
module attributes {stable_mosaic.version = 11 : i64} {
  func.func @_podd_kernel(%arg0: i32, %arg1: memref<1x1024x32xbf16, #tpu.memory_space<vmem>>, %arg2: memref<1x4x2xf32, #tpu.memory_space<vmem>>, %arg3: memref<4x1024xf32, #tpu.memory_space<vmem>>, %arg4: memref<512x32xbf16, #tpu.memory_space<vmem>>, %arg5: memref<2x512xf32, #tpu.memory_space<vmem>>, %arg6: memref<32x32xf32, #tpu.memory_space<vmem>>, %arg7: memref<1x32xf32, #tpu.memory_space<vmem>>, %arg8: memref<32x2xf32, #tpu.memory_space<vmem>>, %arg9: memref<1x2xf32, #tpu.memory_space<vmem>>, %arg10: memref<2x2xf32, #tpu.memory_space<vmem>>, %arg11: memref<2x32xf32, #tpu.memory_space<vmem>>, %arg12: memref<32x32xf32, #tpu.memory_space<vmem>>, %arg13: memref<1x32xf32, #tpu.memory_space<vmem>>, %arg14: memref<32x2xf32, #tpu.memory_space<vmem>>, %arg15: memref<1x2xf32, #tpu.memory_space<vmem>>, %arg16: memref<32x32xf32, #tpu.memory_space<vmem>>, %arg17: memref<1x32xf32, #tpu.memory_space<vmem>>, %arg18: memref<32x2xf32, #tpu.memory_space<vmem>>, %arg19: memref<1x2xf32, #tpu.memory_space<vmem>>) attributes {dimension_semantics = [#tpu.dimension_semantics<arbitrary>], iteration_bounds = array<i64: 4>, scalar_prefetch = 0 : i64, scratch_operands = 8 : i64, tpu.core_type = #tpu.core_type<tc>, window_params = [{transform_indices = @transform_0, window_bounds = array<i64: 1, 1024, 32>}, {transform_indices = @transform_1, window_bounds = array<i64: 1, 4, 2>}, {pipeline_mode = #tpu.pipeline_mode<synchronous>, transform_indices = @transform_2, window_bounds = array<i64: 4, 1024>}, {pipeline_mode = #tpu.pipeline_mode<synchronous>, transform_indices = @transform_3, window_bounds = array<i64: 512, 32>}, {pipeline_mode = #tpu.pipeline_mode<synchronous>, transform_indices = @transform_4, window_bounds = array<i64: 2, 512>}, {pipeline_mode = #tpu.pipeline_mode<synchronous>, transform_indices = @transform_5, window_bounds = array<i64: 32, 32>}, {pipeline_mode = #tpu.pipeline_mode<synchronous>, transform_indices = @transform_6, window_bounds = array<i64: 1, 32>}, {pipeline_mode = #tpu.pipeline_mode<synchronous>, transform_indices = @transform_7, window_bounds = array<i64: 32, 2>}, {pipeline_mode = #tpu.pipeline_mode<synchronous>, transform_indices = @transform_8, window_bounds = array<i64: 1, 2>}, {pipeline_mode = #tpu.pipeline_mode<synchronous>, transform_indices = @transform_9, window_bounds = array<i64: 2, 2>}, {pipeline_mode = #tpu.pipeline_mode<synchronous>, transform_indices = @transform_10, window_bounds = array<i64: 2, 32>}]} {
    %c0_i32 = arith.constant 0 : i32
    %0 = arith.cmpi eq, %arg0, %c0_i32 : i32
    %1 = arith.extui %0 : i1 to i32
    %c0_i32_0 = arith.constant 0 : i32
    %2 = arith.cmpi ne, %1, %c0_i32_0 : i32
    scf.if %2 {
      %c0 = arith.constant 0 : index
      %c0_4 = arith.constant 0 : index
      %9 = vector.load %arg6[%c0, %c0_4] : memref<32x32xf32, #tpu.memory_space<vmem>>, vector<32x32xf32>
      %c0_5 = arith.constant 0 : index
      %c0_6 = arith.constant 0 : index
      %10 = vector.load %arg12[%c0_5, %c0_6] : memref<32x32xf32, #tpu.memory_space<vmem>>, vector<32x32xf32>
      tpu.vector_store %arg12[%c0_5, %c0_6], %9 {strides = array<i32>} : memref<32x32xf32, #tpu.memory_space<vmem>>, vector<32x32xf32>,
      %c0_7 = arith.constant 0 : index
      %c0_8 = arith.constant 0 : index
      %11 = vector.load %arg7[%c0_7, %c0_8] : memref<1x32xf32, #tpu.memory_space<vmem>>, vector<1x32xf32>
      %c0_9 = arith.constant 0 : index
      %c0_10 = arith.constant 0 : index
      %12 = vector.load %arg13[%c0_9, %c0_10] : memref<1x32xf32, #tpu.memory_space<vmem>>, vector<1x32xf32>
      tpu.vector_store %arg13[%c0_9, %c0_10], %11 {strides = array<i32>} : memref<1x32xf32, #tpu.memory_space<vmem>>, vector<1x32xf32>,
      %c0_11 = arith.constant 0 : index
      %c0_12 = arith.constant 0 : index
      %13 = vector.load %arg8[%c0_11, %c0_12] : memref<32x2xf32, #tpu.memory_space<vmem>>, vector<32x2xf32>
      %c0_13 = arith.constant 0 : index
      %c0_14 = arith.constant 0 : index
      %14 = vector.load %arg14[%c0_13, %c0_14] : memref<32x2xf32, #tpu.memory_space<vmem>>, vector<32x2xf32>
      tpu.vector_store %arg14[%c0_13, %c0_14], %13 {strides = array<i32>} : memref<32x2xf32, #tpu.memory_space<vmem>>, vector<32x2xf32>,
      %c0_15 = arith.constant 0 : index
      %c0_16 = arith.constant 0 : index
      %15 = vector.load %arg9[%c0_15, %c0_16] : memref<1x2xf32, #tpu.memory_space<vmem>>, vector<1x2xf32>
      %c0_17 = arith.constant 0 : index
      %c0_18 = arith.constant 0 : index
      %16 = vector.load %arg15[%c0_17, %c0_18] : memref<1x2xf32, #tpu.memory_space<vmem>>, vector<1x2xf32>
      tpu.vector_store %arg15[%c0_17, %c0_18], %15 {strides = array<i32>} : memref<1x2xf32, #tpu.memory_space<vmem>>, vector<1x2xf32>,
      %cst = arith.constant 0.000000e+00 : f32
      %17 = vector.broadcast %cst : f32 to vector<32x32xf32>
      %c0_19 = arith.constant 0 : index
      %c0_20 = arith.constant 0 : index
      %18 = vector.load %arg16[%c0_19, %c0_20] : memref<32x32xf32, #tpu.memory_space<vmem>>, vector<32x32xf32>
      tpu.vector_store %arg16[%c0_19, %c0_20], %17 {strides = array<i32>} : memref<32x32xf32, #tpu.memory_space<vmem>>, vector<32x32xf32>,
      %cst_21 = arith.constant 0.000000e+00 : f32
      %19 = vector.broadcast %cst_21 : f32 to vector<1x32xf32>
      %c0_22 = arith.constant 0 : index
      %c0_23 = arith.constant 0 : index
      %20 = vector.load %arg17[%c0_22, %c0_23] : memref<1x32xf32, #tpu.memory_space<vmem>>, vector<1x32xf32>
      tpu.vector_store %arg17[%c0_22, %c0_23], %19 {strides = array<i32>} : memref<1x32xf32, #tpu.memory_space<vmem>>, vector<1x32xf32>,
      %cst_24 = arith.constant 0.000000e+00 : f32
      %21 = vector.broadcast %cst_24 : f32 to vector<32x2xf32>
      %c0_25 = arith.constant 0 : index
      %c0_26 = arith.constant 0 : index
      %22 = vector.load %arg18[%c0_25, %c0_26] : memref<32x2xf32, #tpu.memory_space<vmem>>, vector<32x2xf32>
      tpu.vector_store %arg18[%c0_25, %c0_26], %21 {strides = array<i32>} : memref<32x2xf32, #tpu.memory_space<vmem>>, vector<32x2xf32>,
      %cst_27 = arith.constant 0.000000e+00 : f32
      %23 = vector.broadcast %cst_27 : f32 to vector<1x2xf32>
      %c0_28 = arith.constant 0 : index
      %c0_29 = arith.constant 0 : index
      %24 = vector.load %arg19[%c0_28, %c0_29] : memref<1x2xf32, #tpu.memory_space<vmem>>, vector<1x2xf32>
      tpu.vector_store %arg19[%c0_28, %c0_29], %23 {strides = array<i32>} : memref<1x2xf32, #tpu.memory_space<vmem>>, vector<1x2xf32>,
    } else {
    }
    %c3_i32 = arith.constant 3 : i32
    %3 = arith.cmpi slt, %arg0, %c3_i32 : i32
    %4 = arith.extui %3 : i1 to i32
    %c0_i32_1 = arith.constant 0 : i32
    %5 = arith.cmpi ne, %4, %c0_i32_1 : i32
    scf.if %5 {
      %c0 = arith.constant 0 : index
      %c0_4 = arith.constant 0 : index
      %c0_5 = arith.constant 0 : index
      %9 = vector.load %arg1[%c0, %c0_4, %c0_5] : memref<1x1024x32xbf16, #tpu.memory_space<vmem>>, vector<1x1024x32xbf16>
      %10 = vector.shape_cast %9 : vector<1x1024x32xbf16> to vector<1024x32xbf16>
      %c0_6 = arith.constant 0 : index
      %c0_7 = arith.constant 0 : index
      %11 = vector.load %arg3[%c0_6, %c0_7] : memref<4x1024xf32, #tpu.memory_space<vmem>>, vector<4x1024xf32>
      %c0_8 = arith.constant 0 : index
      %c0_9 = arith.constant 0 : index
      %12 = vector.load %arg12[%c0_8, %c0_9] : memref<32x32xf32, #tpu.memory_space<vmem>>, vector<32x32xf32>
      %13 = arith.truncf %12 : vector<32x32xf32> to vector<32x32xbf16>
      %cst = arith.constant dense<0.000000e+00> : vector<1024x32xf32>
      %14 = tpu.matmul %10, %13, %cst {dimension_numbers = #tpu.dot_dimension_numbers<[1], [0], [0], [1], [0, 0, 1, 1], [], []>} : vector<1024x32xbf16>, vector<32x32xbf16>, vector<1024x32xf32> -> vector<1024x32xf32>
      %c0_10 = arith.constant 0 : index
      %c0_11 = arith.constant 0 : index
      %15 = vector.load %arg13[%c0_10, %c0_11] : memref<1x32xf32, #tpu.memory_space<vmem>>, vector<1x32xf32>
      %16 = vector.broadcast %15 : vector<1x32xf32> to vector<1024x32xf32>
      %17 = arith.addf %14, %16 : vector<1024x32xf32>
      %cst_12 = arith.constant 0.000000e+00 : f32
      %18 = vector.broadcast %cst_12 : f32 to vector<1024x32xf32>
      %19 = arith.maximumf %17, %18 : vector<1024x32xf32>
      %cst_13 = arith.constant dense<0.000000e+00> : vector<4x32xf32>
      %20 = tpu.matmul %11, %19, %cst_13 {dimension_numbers = #tpu.dot_dimension_numbers<[1], [0], [0], [1], [0, 0, 1, 1], [], []>} : vector<4x1024xf32>, vector<1024x32xf32>, vector<4x32xf32> -> vector<4x32xf32>
      %c0_14 = arith.constant 0 : index
      %c0_15 = arith.constant 0 : index
      %21 = vector.load %arg14[%c0_14, %c0_15] : memref<32x2xf32, #tpu.memory_space<vmem>>, vector<32x2xf32>
      %cst_16 = arith.constant dense<0.000000e+00> : vector<4x2xf32>
      %22 = tpu.matmul %20, %21, %cst_16 {dimension_numbers = #tpu.dot_dimension_numbers<[1], [0], [0], [1], [0, 0, 1, 1], [], []>} : vector<4x32xf32>, vector<32x2xf32>, vector<4x2xf32> -> vector<4x2xf32>
      %c0_17 = arith.constant 0 : index
      %c0_18 = arith.constant 0 : index
      %23 = vector.load %arg15[%c0_17, %c0_18] : memref<1x2xf32, #tpu.memory_space<vmem>>, vector<1x2xf32>
      %24 = vector.broadcast %23 : vector<1x2xf32> to vector<4x2xf32>
      %25 = arith.addf %22, %24 : vector<4x2xf32>
      %cst_19 = arith.constant dense<0xFF800000> : vector<4xf32>
      %26 = vector.multi_reduction <maximumf>, %25, %cst_19 [1] : vector<4x2xf32> to vector<4xf32>
      %27 = vector.shape_cast %26 : vector<4xf32> to vector<4x1xf32>
      %28 = vector.broadcast %27 : vector<4x1xf32> to vector<4x2xf32>
      %29 = arith.subf %25, %28 : vector<4x2xf32>
      %30 = math.exp %29 : vector<4x2xf32>
      %cst_20 = arith.constant dense<0.000000e+00> : vector<4xf32>
      %31 = vector.multi_reduction <add>, %30, %cst_20 [1] : vector<4x2xf32> to vector<4xf32>
      %32 = vector.shape_cast %31 : vector<4xf32> to vector<4x1xf32>
      %33 = vector.broadcast %32 : vector<4x1xf32> to vector<4x2xf32>
      %34 = arith.divf %30, %33 : vector<4x2xf32>
      %c0_21 = arith.constant 0 : index
      %c0_22 = arith.constant 0 : index
      %c0_23 = arith.constant 0 : index
      %35 = vector.load %arg2[%c0_21, %c0_22, %c0_23] : memref<1x4x2xf32, #tpu.memory_space<vmem>>, vector<1x4x2xf32>
      %36 = vector.shape_cast %35 : vector<1x4x2xf32> to vector<4x2xf32>
      %37 = arith.subf %34, %36 : vector<4x2xf32>
      %cst_24 = arith.constant 2.500000e-01 : f32
      %38 = vector.broadcast %cst_24 : f32 to vector<4x2xf32>
      %39 = arith.mulf %37, %38 : vector<4x2xf32>
      %cst_25 = arith.constant dense<0.000000e+00> : vector<32x2xf32>
      %40 = tpu.matmul %20, %39, %cst_25 {dimension_numbers = #tpu.dot_dimension_numbers<[0], [0], [1], [1], [0, 1, 1, 1], [], []>} : vector<4x32xf32>, vector<4x2xf32>, vector<32x2xf32> -> vector<32x2xf32>
      %cst_26 = arith.constant dense<0.000000e+00> : vector<2xf32>
      %41 = vector.multi_reduction <add>, %39, %cst_26 [0] : vector<4x2xf32> to vector<2xf32>
      %42 = vector.shape_cast %41 : vector<2xf32> to vector<1x2xf32>
      %c0_27 = arith.constant 0 : index
      %c0_28 = arith.constant 0 : index
      %43 = vector.load %arg14[%c0_27, %c0_28] : memref<32x2xf32, #tpu.memory_space<vmem>>, vector<32x2xf32>
      %cst_29 = arith.constant dense<0.000000e+00> : vector<4x32xf32>
      %44 = tpu.matmul %39, %43, %cst_29 {dimension_numbers = #tpu.dot_dimension_numbers<[1], [1], [0], [0], [0, 0, 1, 0], [], []>} : vector<4x2xf32>, vector<32x2xf32>, vector<4x32xf32> -> vector<4x32xf32>
      %cst_30 = arith.constant dense<0.000000e+00> : vector<1024x32xf32>
      %45 = tpu.matmul %11, %44, %cst_30 {dimension_numbers = #tpu.dot_dimension_numbers<[0], [0], [1], [1], [0, 1, 1, 1], [], []>} : vector<4x1024xf32>, vector<4x32xf32>, vector<1024x32xf32> -> vector<1024x32xf32>
      %cst_31 = arith.constant 0.000000e+00 : f32
      %46 = vector.broadcast %cst_31 : f32 to vector<1024x32xf32>
      %47 = arith.cmpf ogt, %17, %46 : vector<1024x32xf32>
      %cst_32 = arith.constant 0.000000e+00 : f32
      %48 = vector.broadcast %cst_32 : f32 to vector<1024x32xf32>
      %49 = arith.select %47, %45, %48 : vector<1024x32xi1>, vector<1024x32xf32>
      %cst_33 = arith.constant dense<0.000000e+00> : vector<32xf32>
      %50 = vector.multi_reduction <add>, %49, %cst_33 [0] : vector<1024x32xf32> to vector<32xf32>
      %51 = vector.shape_cast %50 : vector<32xf32> to vector<1x32xf32>
      %52 = arith.truncf %49 : vector<1024x32xf32> to vector<1024x32xbf16>
      %cst_34 = arith.constant dense<0.000000e+00> : vector<32x32xf32>
      %53 = tpu.matmul %10, %52, %cst_34 {dimension_numbers = #tpu.dot_dimension_numbers<[0], [0], [1], [1], [0, 1, 1, 1], [], []>} : vector<1024x32xbf16>, vector<1024x32xbf16>, vector<32x32xf32> -> vector<32x32xf32>
      %c0_35 = arith.constant 0 : index
      %c0_36 = arith.constant 0 : index
      %54 = vector.load %arg16[%c0_35, %c0_36] : memref<32x32xf32, #tpu.memory_space<vmem>>, vector<32x32xf32>
      %cst_37 = arith.constant 0.899999976 : f32
      %55 = vector.broadcast %cst_37 : f32 to vector<32x32xf32>
      %56 = arith.mulf %55, %54 : vector<32x32xf32>
      %57 = arith.addf %56, %53 : vector<32x32xf32>
      %c0_38 = arith.constant 0 : index
      %c0_39 = arith.constant 0 : index
      %58 = vector.load %arg12[%c0_38, %c0_39] : memref<32x32xf32, #tpu.memory_space<vmem>>, vector<32x32xf32>
      %cst_40 = arith.constant 5.000000e-04 : f32
      %59 = vector.broadcast %cst_40 : f32 to vector<32x32xf32>
      %60 = arith.mulf %59, %58 : vector<32x32xf32>
      %61 = arith.addf %57, %60 : vector<32x32xf32>
      %c0_41 = arith.constant 0 : index
      %c0_42 = arith.constant 0 : index
      %62 = vector.load %arg16[%c0_41, %c0_42] : memref<32x32xf32, #tpu.memory_space<vmem>>, vector<32x32xf32>
      tpu.vector_store %arg16[%c0_41, %c0_42], %61 {strides = array<i32>} : memref<32x32xf32, #tpu.memory_space<vmem>>, vector<32x32xf32>,
      %c0_43 = arith.constant 0 : index
      %c0_44 = arith.constant 0 : index
      %63 = vector.load %arg12[%c0_43, %c0_44] : memref<32x32xf32, #tpu.memory_space<vmem>>, vector<32x32xf32>
      %cst_45 = arith.constant 0.00999999977 : f32
      %64 = vector.broadcast %cst_45 : f32 to vector<32x32xf32>
      %65 = arith.mulf %64, %61 : vector<32x32xf32>
      %66 = arith.subf %63, %65 : vector<32x32xf32>
      %c0_46 = arith.constant 0 : index
      %c0_47 = arith.constant 0 : index
      %67 = vector.load %arg12[%c0_46, %c0_47] : memref<32x32xf32, #tpu.memory_space<vmem>>, vector<32x32xf32>
      tpu.vector_store %arg12[%c0_46, %c0_47], %66 {strides = array<i32>} : memref<32x32xf32, #tpu.memory_space<vmem>>, vector<32x32xf32>,
      %c0_48 = arith.constant 0 : index
      %c0_49 = arith.constant 0 : index
      %68 = vector.load %arg17[%c0_48, %c0_49] : memref<1x32xf32, #tpu.memory_space<vmem>>, vector<1x32xf32>
      %cst_50 = arith.constant 0.899999976 : f32
      %69 = vector.broadcast %cst_50 : f32 to vector<1x32xf32>
      %70 = arith.mulf %69, %68 : vector<1x32xf32>
      %71 = arith.addf %70, %51 : vector<1x32xf32>
      %c0_51 = arith.constant 0 : index
      %c0_52 = arith.constant 0 : index
      %72 = vector.load %arg13[%c0_51, %c0_52] : memref<1x32xf32, #tpu.memory_space<vmem>>, vector<1x32xf32>
      %cst_53 = arith.constant 5.000000e-04 : f32
      %73 = vector.broadcast %cst_53 : f32 to vector<1x32xf32>
      %74 = arith.mulf %73, %72 : vector<1x32xf32>
      %75 = arith.addf %71, %74 : vector<1x32xf32>
      %c0_54 = arith.constant 0 : index
      %c0_55 = arith.constant 0 : index
      %76 = vector.load %arg17[%c0_54, %c0_55] : memref<1x32xf32, #tpu.memory_space<vmem>>, vector<1x32xf32>
      tpu.vector_store %arg17[%c0_54, %c0_55], %75 {strides = array<i32>} : memref<1x32xf32, #tpu.memory_space<vmem>>, vector<1x32xf32>,
      %c0_56 = arith.constant 0 : index
      %c0_57 = arith.constant 0 : index
      %77 = vector.load %arg13[%c0_56, %c0_57] : memref<1x32xf32, #tpu.memory_space<vmem>>, vector<1x32xf32>
      %cst_58 = arith.constant 0.00999999977 : f32
      %78 = vector.broadcast %cst_58 : f32 to vector<1x32xf32>
      %79 = arith.mulf %78, %75 : vector<1x32xf32>
      %80 = arith.subf %77, %79 : vector<1x32xf32>
      %c0_59 = arith.constant 0 : index
      %c0_60 = arith.constant 0 : index
      %81 = vector.load %arg13[%c0_59, %c0_60] : memref<1x32xf32, #tpu.memory_space<vmem>>, vector<1x32xf32>
      tpu.vector_store %arg13[%c0_59, %c0_60], %80 {strides = array<i32>} : memref<1x32xf32, #tpu.memory_space<vmem>>, vector<1x32xf32>,
      %c0_61 = arith.constant 0 : index
      %c0_62 = arith.constant 0 : index
      %82 = vector.load %arg18[%c0_61, %c0_62] : memref<32x2xf32, #tpu.memory_space<vmem>>, vector<32x2xf32>
      %cst_63 = arith.constant 0.899999976 : f32
      %83 = vector.broadcast %cst_63 : f32 to vector<32x2xf32>
      %84 = arith.mulf %83, %82 : vector<32x2xf32>
      %85 = arith.addf %84, %40 : vector<32x2xf32>
      %c0_64 = arith.constant 0 : index
      %c0_65 = arith.constant 0 : index
      %86 = vector.load %arg14[%c0_64, %c0_65] : memref<32x2xf32, #tpu.memory_space<vmem>>, vector<32x2xf32>
      %cst_66 = arith.constant 5.000000e-04 : f32
      %87 = vector.broadcast %cst_66 : f32 to vector<32x2xf32>
      %88 = arith.mulf %87, %86 : vector<32x2xf32>
      %89 = arith.addf %85, %88 : vector<32x2xf32>
      %c0_67 = arith.constant 0 : index
      %c0_68 = arith.constant 0 : index
      %90 = vector.load %arg18[%c0_67, %c0_68] : memref<32x2xf32, #tpu.memory_space<vmem>>, vector<32x2xf32>
      tpu.vector_store %arg18[%c0_67, %c0_68], %89 {strides = array<i32>} : memref<32x2xf32, #tpu.memory_space<vmem>>, vector<32x2xf32>,
      %c0_69 = arith.constant 0 : index
      %c0_70 = arith.constant 0 : index
      %91 = vector.load %arg14[%c0_69, %c0_70] : memref<32x2xf32, #tpu.memory_space<vmem>>, vector<32x2xf32>
      %cst_71 = arith.constant 0.00999999977 : f32
      %92 = vector.broadcast %cst_71 : f32 to vector<32x2xf32>
      %93 = arith.mulf %92, %89 : vector<32x2xf32>
      %94 = arith.subf %91, %93 : vector<32x2xf32>
      %c0_72 = arith.constant 0 : index
      %c0_73 = arith.constant 0 : index
      %95 = vector.load %arg14[%c0_72, %c0_73] : memref<32x2xf32, #tpu.memory_space<vmem>>, vector<32x2xf32>
      tpu.vector_store %arg14[%c0_72, %c0_73], %94 {strides = array<i32>} : memref<32x2xf32, #tpu.memory_space<vmem>>, vector<32x2xf32>,
      %c0_74 = arith.constant 0 : index
      %c0_75 = arith.constant 0 : index
      %96 = vector.load %arg19[%c0_74, %c0_75] : memref<1x2xf32, #tpu.memory_space<vmem>>, vector<1x2xf32>
      %cst_76 = arith.constant 0.899999976 : f32
      %97 = vector.broadcast %cst_76 : f32 to vector<1x2xf32>
      %98 = arith.mulf %97, %96 : vector<1x2xf32>
      %99 = arith.addf %98, %42 : vector<1x2xf32>
      %c0_77 = arith.constant 0 : index
      %c0_78 = arith.constant 0 : index
      %100 = vector.load %arg15[%c0_77, %c0_78] : memref<1x2xf32, #tpu.memory_space<vmem>>, vector<1x2xf32>
      %cst_79 = arith.constant 5.000000e-04 : f32
      %101 = vector.broadcast %cst_79 : f32 to vector<1x2xf32>
      %102 = arith.mulf %101, %100 : vector<1x2xf32>
      %103 = arith.addf %99, %102 : vector<1x2xf32>
      %c0_80 = arith.constant 0 : index
      %c0_81 = arith.constant 0 : index
      %104 = vector.load %arg19[%c0_80, %c0_81] : memref<1x2xf32, #tpu.memory_space<vmem>>, vector<1x2xf32>
      tpu.vector_store %arg19[%c0_80, %c0_81], %103 {strides = array<i32>} : memref<1x2xf32, #tpu.memory_space<vmem>>, vector<1x2xf32>,
      %c0_82 = arith.constant 0 : index
      %c0_83 = arith.constant 0 : index
      %105 = vector.load %arg15[%c0_82, %c0_83] : memref<1x2xf32, #tpu.memory_space<vmem>>, vector<1x2xf32>
      %cst_84 = arith.constant 0.00999999977 : f32
      %106 = vector.broadcast %cst_84 : f32 to vector<1x2xf32>
      %107 = arith.mulf %106, %103 : vector<1x2xf32>
      %108 = arith.subf %105, %107 : vector<1x2xf32>
      %c0_85 = arith.constant 0 : index
      %c0_86 = arith.constant 0 : index
      %109 = vector.load %arg15[%c0_85, %c0_86] : memref<1x2xf32, #tpu.memory_space<vmem>>, vector<1x2xf32>
      tpu.vector_store %arg15[%c0_85, %c0_86], %108 {strides = array<i32>} : memref<1x2xf32, #tpu.memory_space<vmem>>, vector<1x2xf32>,
    } else {
    }
    %c3_i32_2 = arith.constant 3 : i32
    %6 = arith.cmpi eq, %arg0, %c3_i32_2 : i32
    %7 = arith.extui %6 : i1 to i32
    %c0_i32_3 = arith.constant 0 : i32
    %8 = arith.cmpi ne, %7, %c0_i32_3 : i32
    scf.if %8 {
      %c0 = arith.constant 0 : index
      %c0_4 = arith.constant 0 : index
      %9 = vector.load %arg4[%c0, %c0_4] : memref<512x32xbf16, #tpu.memory_space<vmem>>, vector<512x32xbf16>
      %c0_5 = arith.constant 0 : index
      %c0_6 = arith.constant 0 : index
      %10 = vector.load %arg5[%c0_5, %c0_6] : memref<2x512xf32, #tpu.memory_space<vmem>>, vector<2x512xf32>
      %c0_7 = arith.constant 0 : index
      %c0_8 = arith.constant 0 : index
      %11 = vector.load %arg12[%c0_7, %c0_8] : memref<32x32xf32, #tpu.memory_space<vmem>>, vector<32x32xf32>
      %12 = arith.truncf %11 : vector<32x32xf32> to vector<32x32xbf16>
      %cst = arith.constant dense<0.000000e+00> : vector<512x32xf32>
      %13 = tpu.matmul %9, %12, %cst {dimension_numbers = #tpu.dot_dimension_numbers<[1], [0], [0], [1], [0, 0, 1, 1], [], []>} : vector<512x32xbf16>, vector<32x32xbf16>, vector<512x32xf32> -> vector<512x32xf32>
      %c0_9 = arith.constant 0 : index
      %c0_10 = arith.constant 0 : index
      %14 = vector.load %arg13[%c0_9, %c0_10] : memref<1x32xf32, #tpu.memory_space<vmem>>, vector<1x32xf32>
      %15 = vector.broadcast %14 : vector<1x32xf32> to vector<512x32xf32>
      %16 = arith.addf %13, %15 : vector<512x32xf32>
      %cst_11 = arith.constant 0.000000e+00 : f32
      %17 = vector.broadcast %cst_11 : f32 to vector<512x32xf32>
      %18 = arith.maximumf %16, %17 : vector<512x32xf32>
      %cst_12 = arith.constant dense<0.000000e+00> : vector<2x32xf32>
      %19 = tpu.matmul %10, %18, %cst_12 {dimension_numbers = #tpu.dot_dimension_numbers<[1], [0], [0], [1], [0, 0, 1, 1], [], []>} : vector<2x512xf32>, vector<512x32xf32>, vector<2x32xf32> -> vector<2x32xf32>
      %c0_13 = arith.constant 0 : index
      %c0_14 = arith.constant 0 : index
      %20 = vector.load %arg14[%c0_13, %c0_14] : memref<32x2xf32, #tpu.memory_space<vmem>>, vector<32x2xf32>
      %cst_15 = arith.constant dense<0.000000e+00> : vector<2x2xf32>
      %21 = tpu.matmul %19, %20, %cst_15 {dimension_numbers = #tpu.dot_dimension_numbers<[1], [0], [0], [1], [0, 0, 1, 1], [], []>} : vector<2x32xf32>, vector<32x2xf32>, vector<2x2xf32> -> vector<2x2xf32>
      %c0_16 = arith.constant 0 : index
      %c0_17 = arith.constant 0 : index
      %22 = vector.load %arg15[%c0_16, %c0_17] : memref<1x2xf32, #tpu.memory_space<vmem>>, vector<1x2xf32>
      %23 = vector.broadcast %22 : vector<1x2xf32> to vector<2x2xf32>
      %24 = arith.addf %21, %23 : vector<2x2xf32>
      %c0_18 = arith.constant 0 : index
      %c0_19 = arith.constant 0 : index
      %25 = vector.load %arg10[%c0_18, %c0_19] : memref<2x2xf32, #tpu.memory_space<vmem>>, vector<2x2xf32>
      tpu.vector_store %arg10[%c0_18, %c0_19], %24 {strides = array<i32>} : memref<2x2xf32, #tpu.memory_space<vmem>>, vector<2x2xf32>,
      %c0_20 = arith.constant 0 : index
      %c0_21 = arith.constant 0 : index
      %26 = vector.load %arg11[%c0_20, %c0_21] : memref<2x32xf32, #tpu.memory_space<vmem>>, vector<2x32xf32>
      tpu.vector_store %arg11[%c0_20, %c0_21], %19 {strides = array<i32>} : memref<2x32xf32, #tpu.memory_space<vmem>>, vector<2x32xf32>,
    } else {
    }
    return
  }
  func.func @transform_0(%arg0: i32) -> (i32, i32, i32) {
    %c2_i32 = arith.constant 2 : i32
    %0 = arith.minsi %arg0, %c2_i32 : i32
    %c0_i32 = arith.constant 0 : i32
    %c0_i32_0 = arith.constant 0 : i32
    %c0_i32_1 = arith.constant 0 : i32
    return %0, %c0_i32, %c0_i32_0 : i32, i32, i32
  }
  func.func @transform_1(%arg0: i32) -> (i32, i32, i32) {
    %c2_i32 = arith.constant 2 : i32
    %0 = arith.minsi %arg0, %c2_i32 : i32
    %c0_i32 = arith.constant 0 : i32
    %c0_i32_0 = arith.constant 0 : i32
    %c0_i32_1 = arith.constant 0 : i32
    return %0, %c0_i32, %c0_i32_0 : i32, i32, i32
  }
  func.func @transform_2(%arg0: i32) -> (i32, i32) {
    %c0_i32 = arith.constant 0 : i32
    %c0_i32_0 = arith.constant 0 : i32
    %c0_i32_1 = arith.constant 0 : i32
    return %c0_i32, %c0_i32_0 : i32, i32
  }
  func.func @transform_3(%arg0: i32) -> (i32, i32) {
    %c0_i32 = arith.constant 0 : i32
    %c0_i32_0 = arith.constant 0 : i32
    %c0_i32_1 = arith.constant 0 : i32
    return %c0_i32, %c0_i32_0 : i32, i32
  }
  func.func @transform_4(%arg0: i32) -> (i32, i32) {
    %c0_i32 = arith.constant 0 : i32
    %c0_i32_0 = arith.constant 0 : i32
    %c0_i32_1 = arith.constant 0 : i32
    return %c0_i32, %c0_i32_0 : i32, i32
  }
  func.func @transform_5(%arg0: i32) -> (i32, i32) {
    %c0_i32 = arith.constant 0 : i32
    %c0_i32_0 = arith.constant 0 : i32
    %c0_i32_1 = arith.constant 0 : i32
    return %c0_i32, %c0_i32_0 : i32, i32
  }
  func.func @transform_6(%arg0: i32) -> (i32, i32) {
    %c0_i32 = arith.constant 0 : i32
    %c0_i32_0 = arith.constant 0 : i32
    %c0_i32_1 = arith.constant 0 : i32
    return %c0_i32, %c0_i32_0 : i32, i32
  }
  func.func @transform_7(%arg0: i32) -> (i32, i32) {
    %c0_i32 = arith.constant 0 : i32
    %c0_i32_0 = arith.constant 0 : i32
    %c0_i32_1 = arith.constant 0 : i32
    return %c0_i32, %c0_i32_0 : i32, i32
  }
  func.func @transform_8(%arg0: i32) -> (i32, i32) {
    %c0_i32 = arith.constant 0 : i32
    %c0_i32_0 = arith.constant 0 : i32
    %c0_i32_1 = arith.constant 0 : i32
    return %c0_i32, %c0_i32_0 : i32, i32
  }
  func.func @transform_9(%arg0: i32) -> (i32, i32) {
    %c0_i32 = arith.constant 0 : i32
    %c0_i32_0 = arith.constant 0 : i32
    %c0_i32_1 = arith.constant 0 : i32
    return %c0_i32, %c0_i32_0 : i32, i32
  }
  func.func @transform_10(%arg0: i32) -> (i32, i32) {
    %c0_i32 = arith.constant 0 : i32
    %c0_i32_0 = arith.constant 0 : i32
    %c0_i32_1 = arith.constant 0 : i32
    return %c0_i32, %c0_i32_0 : i32, i32
  }
}

</mosaic_0001>

<bundles_post_ra>
// kernel: custom-call.4
= control target key start
LH: loop header
LB: loop body
LE: loop exit
PB: predicated region body
PF: predicated region fallthrough
CT: control target
= control target key end

     0   :  { %s6_s0 = inlined_call_operand.vmem [shape: bf16[12,3,16,16], index: 0, kind: output, shape index: {}]  }

// kernel: podd_forward.1
= control target key start
LH: loop header
LB: loop body
LE: loop exit
PB: predicated region body
PF: predicated region fallthrough
CT: control target
= control target key end

     0   :  { %16 = vsyncpa [#allocation11], 0  ;;  %s9090_s0 = inlined_call_operand.vmem [shape: bf16[3,1024,32], index: 0, kind: input, shape index: {}]   ;;  %s9091_s1 = inlined_call_operand.vmem [shape: f32[3,4,2], index: 1, kind: input, shape index: {}]   ;;  %s9092_s2 = inlined_call_operand.vmem [shape: f32[4,1024], index: 2, kind: input, shape index: {}]   ;;  %s9093_s3 = inlined_call_operand.vmem [shape: bf16[512,32], index: 3, kind: input, shape index: {}]   ;;  %s9094_s4 = inlined_call_operand.vmem [shape: f32[2,512], index: 4, kind: input, shape index: {}]   ;;  %s9095_s5 = inlined_call_operand.vmem [shape: f32[32,32], index: 5, kind: input, shape index: {}]   ;;  %s9096_s6 = inlined_call_operand.vmem [shape: f32[1,32], index: 6, kind: input, shape index: {}]   ;;  %s9097_s7 = inlined_call_operand.vmem [shape: f32[32,2], index: 7, kind: input, shape index: {}]   ;;  %s9098_s8 = inlined_call_operand.vmem [shape: f32[1,2], index: 8, kind: input, shape index: {}]   ;;  %s9099_s9 = inlined_call_operand.hbm [shape: f32[2,2], index: 9, kind: output, shape index: {0}]   ;;  %s9100_s10 = inlined_call_operand.hbm [shape: f32[2,32], index: 10, kind: output, shape index: {1}]  }
   0x1   :  { %17 = vsyncpa [#allocation13], 0  ;;  %s6034_s13 = smov 0  }
   0x2 LB: > { %s6040_s14 = sadd.s32 4294967295, %s5970_s13   ;;  %p4792_p0 = scmp.ge.s32.totalorder %s5970_s13, 1  ;;  %s5970_s13 = sphi %s6034_s13, %s23_s13  }
   0x3   : > { %p332_p1 = scmp.lt.s32.totalorder %s5970_s13, 5 }
   0x5   : > { %p333_p2 = pnand %p4792_p0, %p332_p1 }
   0x6   : > { %p373_p3 = scmp.lt.s32.totalorder (!%p333_p2), %s6040_s14, 2  ;;  %p4802_p4 = scmp.ne.s32.totalorder (!%p333_p2), %s6040_s14, 0 }
   0x7   : > { %336 = sbr.rel (%p333_p2) target bundleno = 3072 (0xc00), region = 56 }
   0xc   : > { %s374_s15 = scalar_select %p373_p3, %s6040_s14, 2 }
   0xd   : > { %394 = sbr.rel (%p4802_p4) target bundleno = 39 (0x27), region = 60 }
   0xe   : > { %s10171_s15 = smov (!%p373_p3, %s374_s15), 2 }
   0xf   : > { %s5624_s16 = sshll.u32 %s10171_s15, 9  ;;  %s4801_s17 = sshll.u32 %s10171_s15, 2 }
  0x10   : > { %s6049_s20 = scalar_lea.vmem %s9090_s0, %s5624_s16  ;;  %s6054_s23 = scalar_lea.vmem %s9091_s1, %s4801_s17 }
  0x12   : > { %v395_v0 = vld [vmem:[%s9095_s5] sm:$0xff]  ;;  %vm399_vm0 = vcmask 261120   ;;  %v396_v1 = vld [vmem:[%s9095_s5 + $0x8] sm:$0xff]  ;;  %v397_v2 = vld [vmem:[%s9095_s5 + $0x10] sm:$0xff]  ;;  %vm405_vm1 = vcmask 253952   ;;  %vm411_vm2 = vcmask 15360  }
  0x13   : > { %400 = vst.msk [vmem:[#allocation2] sm:$0xff] %vm399_vm0, %v395_v0  ;;  %v398_v3 = vld [vmem:[%s9095_s5 + $0x18] sm:$0xff]  ;;  %v404_v4 = vld [vmem:[%s9096_s6] sm:$0x1]  ;;  %v408_v6 = vld [vmem:[%s9097_s7 + $0x8] sm:$0xff]  ;;  %vm417_vm3 = vcmask 8192  }
  0x14   : > { %401 = vst.msk [vmem:[#allocation2 + $0x8] sm:$0xff] %vm399_vm0, %v396_v1  ;;  %v407_v5 = vld [vmem:[%s9097_s7] sm:$0xff]  ;;  %v409_v7 = vld [vmem:[%s9097_s7 + $0x10] sm:$0xff]  ;;  %v410_v8 = vld [vmem:[%s9097_s7 + $0x18] sm:$0xff]  ;;  %v5972_v10 = vmov 0.0  }
  0x15   : > { %402 = vst.msk [vmem:[#allocation2 + $0x10] sm:$0xff] %vm399_vm0, %v397_v2  ;;  %v416_v9 = vld [vmem:[%s9098_s8] sm:$0x1] }
  0x16   : > { %403 = vst.msk [vmem:[#allocation2 + $0x18] sm:$0xff] %vm399_vm0, %v398_v3 }
  0x17   : > { %406 = vst.msk [vmem:[#allocation3] sm:$0x1] %vm405_vm1, %v404_v4 }
  0x18   : > { %412 = vst.msk [vmem:[#allocation4] sm:$0xff] %vm411_vm2, %v407_v5 }
  0x19   : > { %413 = vst.msk [vmem:[#allocation4 + $0x8] sm:$0xff] %vm411_vm2, %v408_v6 }
  0x1a   : > { %414 = vst.msk [vmem:[#allocation4 + $0x10] sm:$0xff] %vm411_vm2, %v409_v7 }
  0x1b   : > { %415 = vst.msk [vmem:[#allocation4 + $0x18] sm:$0xff] %vm411_vm2, %v410_v8 }
  0x1c   : > { %418 = vst.msk [vmem:[#allocation5] sm:$0x1] %vm417_vm3, %v416_v9 }
  0x1d   : > { %419 = vst.msk [vmem:[#allocation6] sm:$0xff] %vm399_vm0, %v5972_v10 }
  0x1e   : > { %420 = vst.msk [vmem:[#allocation6 + $0x8] sm:$0xff] %vm399_vm0, %v5972_v10 }
  0x1f   : > { %421 = vst.msk [vmem:[#allocation6 + $0x10] sm:$0xff] %vm399_vm0, %v5972_v10 }
  0x20   : > { %422 = vst.msk [vmem:[#allocation6 + $0x18] sm:$0xff] %vm399_vm0, %v5972_v10 }
  0x21   : > { %423 = vst.msk [vmem:[#allocation7] sm:$0x1] %vm405_vm1, %v5972_v10 }
  0x22   : > { %424 = vst.msk [vmem:[#allocation8] sm:$0xff] %vm411_vm2, %v5972_v10 }
  0x23   : > { %425 = vst.msk [vmem:[#allocation8 + $0x8] sm:$0xff] %vm411_vm2, %v5972_v10 }
  0x24   : > { %426 = vst.msk [vmem:[#allocation8 + $0x10] sm:$0xff] %vm411_vm2, %v5972_v10 }
  0x25   : > { %427 = vst.msk [vmem:[#allocation8 + $0x18] sm:$0xff] %vm411_vm2, %v5972_v10 }
  0x26   : > { %428 = vst.msk [vmem:[#allocation9] sm:$0x1] %vm417_vm3, %v5972_v10 }
  0x27 PF: > { %p4803_p5 = scmp.ge.s32.totalorder %s6040_s14, 3 }
  0x29   : > { %432 = sbr.rel (%p4803_p5) target bundleno = 2469 (0x9a5), region = 64 }
  0x2e   : > { %v567_v11 = vld [vmem:[#allocation2 + $0x10] sm:$0xff]  ;;  %v568_v12 = vld [vmem:[#allocation2 + $0x18] sm:$0xff]  ;;  %v565_v13 = vld [vmem:[#allocation2] sm:$0xff]  ;;  %vm9198_vm4 = vcmask 261120  }
  0x2f   : > { %v570_v14 = vpack.c.bf16 %v568_v12, %v567_v11  ;;  %v566_v15 = vld [vmem:[#allocation2 + $0x8] sm:$0xff]  ;;  %v5625_v17 = vld [vmem:[%s6049_s20] sm:$0xff]  ;;  %v6108_v18 = vld [vmem:[%s6049_s20 + $0x148] sm:$0xff] }
  0x30   : > { %v569_v16 = vpack.c.bf16 %v566_v15, %v565_v13  ;;  %v5626_v19 = vld [vmem:[%s6049_s20 + $0x8] sm:$0xff]  ;;  %v6115_v20 = vld [vmem:[%s6049_s20 + $0x150] sm:$0xff]  ;;  %v6122_v22 = vld [vmem:[%s6049_s20 + $0x158] sm:$0xff] }
  0x31   : > { %1094 = vmatpush.bf16.msra.mxu0 %v570_v14  ;;  %5721 = vmatpush.bf16.msra.mxu1 %v570_v14  ;;  %v5627_v21 = vld [vmem:[%s6049_s20 + $0x10] sm:$0xff]  ;;  %v5628_v23 = vld [vmem:[%s6049_s20 + $0x18] sm:$0xff]  ;;  %v6129_v24 = vld [vmem:[%s6049_s20 + $0x160] sm:$0xff] }
  0x32   : > { %v5629_v25 = vld [vmem:[%s6049_s20 + $0x20] sm:$0xff]  ;;  %v6136_v26 = vld [vmem:[%s6049_s20 + $0x168] sm:$0xff]  ;;  %v5632_v27 = vld [vmem:[%s6049_s20 + $0x38] sm:$0xff] }
  0x33   : > { %5781 = vmatpush.lsf.bf16.msrb.mxu3 %v5632_v27  ;;  %v5631_v28 = vld [vmem:[%s6049_s20 + $0x30] sm:$0xff]  ;;  %v5630_v29 = vld [vmem:[%s6049_s20 + $0x28] sm:$0xff]  ;;  %v6151_v31 = vld [vmem:[%s6049_s20 + $0x178] sm:$0xff] }
  0x34   : > { %v6145_v30 = vld [vmem:[%s6049_s20 + $0x170] sm:$0xff]  ;;  %v5673_v32 = vld [vmem:[%s6049_s20 + $0x180] sm:$0xff]  ;;  %v5674_v34 = vld [vmem:[%s6049_s20 + $0x188] sm:$0xff] }
  0x35   : > { %1095 = vmatpush.bf16.msra.mxu0 %v569_v16  ;;  %5722 = vmatpush.bf16.msra.mxu1 %v569_v16  ;;  %v5633_v33 = vld [vmem:[%s6049_s20 + $0x40] sm:$0xff]  ;;  %v5634_v37 = vld [vmem:[%s6049_s20 + $0x48] sm:$0xff]  ;;  %v5675_v38 = vld [vmem:[%s6049_s20 + $0x190] sm:$0xff] }
  0x36   : > { %v5635_v41 = vld [vmem:[%s6049_s20 + $0x50] sm:$0xff]  ;;  %v5676_v42 = vld [vmem:[%s6049_s20 + $0x198] sm:$0xff]  ;;  %v5677_v48 = vld [vmem:[%s6049_s20 + $0x1a0] sm:$0xff] }
  0x37   : > { %5782 = vmatpush.lsf.bf16.msrb.mxu3 %v5631_v28  ;;  %v5636_v47 = vld [vmem:[%s6049_s20 + $0x58] sm:$0xff]  ;;  %v5637_v53 = vld [vmem:[%s6049_s20 + $0x60] sm:$0xff]  ;;  %v5678_v54 = vld [vmem:[%s6049_s20 + $0x1a8] sm:$0xff] }
  0x38   : > { %5060 = vmatmul.msk.bf16.vlgmr.msra.gmra.mxu0 %vm9198_vm4, %v5625_v17  ;;  %5101 = vmatmul.msk.bf16.vlgmr.msra.gmra.mxu1 %vm9198_vm4, %v6108_v18  ;;  %v5638_v59 = vld [vmem:[%s6049_s20 + $0x68] sm:$0xff]  ;;  %v5679_v60 = vld [vmem:[%s6049_s20 + $0x1b0] sm:$0xff]  ;;  %v5640_v62 = vld [vmem:[%s6049_s20 + $0x78] sm:$0xff] }
  0x39   : > { %5743 = vmatpush.lsf.bf16.msrb.mxu1 %v5640_v62  ;;  %v5639_v0 = vld [vmem:[%s6049_s20 + $0x70] sm:$0xff]  ;;  %v5680_v3 = vld [vmem:[%s6049_s20 + $0x1b8] sm:$0xff]  ;;  %v5681_v8 = vld [vmem:[%s6049_s20 + $0x1c0] sm:$0xff] }
  0x3a   : > { %v6232_v11 = vld [vmem:[#allocation3] ss:$0 sm:$0xff] }
  0x3b   : > { %5783 = vmatpush.lsf.bf16.msrb.mxu3 %v5630_v29 }
  0x3d   : > { %5744 = vmatpush.lsf.bf16.msrb.mxu1 %v5639_v0 }
  0x3f   : > { %5784 = vmatpush.lsf.bf16.msrb.mxu3 %v5629_v25 }
  0x41   : > { %5745 = vmatpush.lsf.bf16.msrb.mxu1 %v5638_v59 }
  0x43   : > { %5785 = vmatpush.lsf.bf16.msrb.mxu3 %v5628_v23 }
  0x45   : > { %5746 = vmatpush.lsf.bf16.msrb.mxu1 %v5637_v53 }
  0x47   : > { %5786 = vmatpush.lsf.bf16.msrb.mxu3 %v5627_v21 }
  0x48   : > { %5061 = vmatmul.msk.bf16.gmra.mxu0 %vm9198_vm4, %v5626_v19  ;;  %5102 = vmatmul.msk.bf16.gmra.mxu1 %vm9198_vm4, %v6115_v20 }
  0x49   : > { %5747 = vmatpush.lsf.bf16.msrb.mxu1 %v5636_v47 }
  0x4b   : > { %5787 = vmatpush.lsf.bf16.msrb.mxu3 %v5626_v19 }
  0x4d   : > { %5748 = vmatpush.lsf.bf16.msrb.mxu1 %v5635_v41 }
  0x4f   : > { %5788 = vmatpush.lsf.bf16.msrb.mxu3 %v5625_v17 }
  0x51   : > { %5789 = vllmr.4.mxu3  ;;  %5749 = vmatpush.lsf.bf16.msrb.mxu1 %v5634_v37 }
  0x55   : > { %5750 = vmatpush.lsf.bf16.msrb.mxu1 %v5633_v33 }
  0x58   : > { %5062 = vmatmul.msk.bf16.gmra.mxu0 %vm9198_vm4, %v5627_v21  ;;  %5103 = vmatmul.msk.bf16.gmra.mxu1 %vm9198_vm4, %v6122_v22 }
  0x68   : > { %5063 = vmatmul.msk.bf16.gmra.mxu0 %vm9198_vm4, %v5628_v23  ;;  %5104 = vmatmul.msk.bf16.gmra.mxu1 %vm9198_vm4, %v6129_v24 }
  0x78   : > { %5064 = vmatmul.msk.bf16.gmra.mxu0 %vm9198_vm4, %v5629_v25  ;;  %5105 = vmatmul.msk.bf16.gmra.mxu1 %vm9198_vm4, %v6136_v26 }
  0x88   : > { %5065 = vmatmul.msk.bf16.gmra.mxu0 %vm9198_vm4, %v5630_v29  ;;  %5106 = vmatmul.msk.bf16.gmra.mxu1 %vm9198_vm4, %v6145_v30  ;;  %v5682_v29 = vld [vmem:[%s6049_s20 + $0x1c8] sm:$0xff] }
  0x98   : > { %5066 = vmatmul.msk.bf16.gmra.mxu0 %vm9198_vm4, %v5631_v28  ;;  %5107 = vmatmul.msk.bf16.gmra.mxu1 %vm9198_vm4, %v6151_v31 }
  0xa8   : > { %5067 = vmatmul.msk.bf16.gmra.mxu0 %vm9198_vm4, %v5632_v27  ;;  %5108 = vmatmul.msk.bf16.gmra.mxu1 %vm9198_vm4, %v5673_v32  ;;  %v5641_v27 = vld [vmem:[%s6049_s20 + $0x80] sm:$0xff] }
  0xb5   : > { %v6161_v35 = vpop.f32.mrf.mxu0  ;;  %v6181_v44 = vpop.f32.mrf.mxu1 }
  0xb8   : > { %5068 = vmatmul.msk.bf16.gmra.mxu0 %vm9198_vm4, %v5633_v33  ;;  %5109 = vmatmul.msk.bf16.gmra.mxu1 %vm9198_vm4, %v5674_v34 }
  0xbd   : > { %v6165_v36 = vpop.f32.mrf.mxu0  ;;  %v6185_v46 = vpop.f32.mrf.mxu1 }
  0xc5   : > { %v6169_v39 = vpop.f32.mrf.mxu0  ;;  %v6193_v50 = vpop.f32.mrf.mxu1 }
  0xc8   : > { %5069 = vmatmul.msk.bf16.gmra.mxu0 %vm9198_vm4, %v5634_v37  ;;  %5110 = vmatmul.msk.bf16.gmra.mxu1 %vm9198_vm4, %v5675_v38 }
  0xcd   : > { %v6173_v40 = vpop.f32.mrf.mxu0  ;;  %v6197_v52 = vpop.f32.mrf.mxu1 }
  0xd5   : > { %v6177_v43 = vpop.f32.mrf.mxu0  ;;  %v6205_v56 = vpop.f32.mrf.mxu1 }
  0xd8   : > { %5070 = vmatmul.msk.bf16.gmra.mxu0 %vm9198_vm4, %v5635_v41  ;;  %5111 = vmatmul.msk.bf16.gmra.mxu1 %vm9198_vm4, %v5676_v42 }
  0xdd   : > { %v6183_v45 = vpop.f32.mrf.mxu0  ;;  %v6207_v58 = vpop.f32.mrf.mxu1 }
  0xe5   : > { %v6189_v49 = vpop.f32.mrf.mxu0  ;;  %v6214_v63 = vpop.f32.mrf.mxu1 }
  0xe6   : > { %v6288_v42 = vadd.f32 %v6232_v11, %v6189_v49 }
  0xe8   : > { %5071 = vmatmul.msk.bf16.gmra.mxu0 %vm9198_vm4, %v5636_v47  ;;  %5112 = vmatmul.msk.bf16.gmra.mxu1 %vm9198_vm4, %v5677_v48  ;;  %v1423_v49 = vmax.f32 %v6288_v42, 0.0 }
  0xed   : > { %v6195_v51 = vpop.f32.mrf.mxu0  ;;  %v6217_v2 = vpop.f32.mrf.mxu1 }
  0xee   : > { %v6279_v34 = vadd.f32 %v6232_v11, %v6195_v51  ;;  %v6299_v51 = vadd.f32 %v6232_v11, %v6177_v43  ;;  %v6314_v43 = vadd.f32 %v6232_v11, %v6169_v39  ;;  %v6328_v39 = vadd.f32 %v6232_v11, %v6161_v35 }
  0xf0   : > { %v1424_v48 = vmax.f32 %v6279_v34, 0.0 }
  0xf5   : > { %v6201_v55 = vpop.f32.mrf.mxu0  ;;  %v6222_v5 = vpop.f32.mrf.mxu1 }
  0xf6   : > { %v6273_v33 = vadd.f32 %v6232_v11, %v6201_v55  ;;  %v5683_v55 = vld [vmem:[%s6049_s20 + $0x1d0] sm:$0xff] }
  0xf8   : > { %5072 = vmatmul.msk.bf16.gmra.mxu0 %vm9198_vm4, %v5637_v53  ;;  %5113 = vmatmul.msk.bf16.gmra.mxu1 %vm9198_vm4, %v5678_v54  ;;  %v1425_v47 = vmax.f32 %v6273_v33, 0.0  ;;  %v6305_v53 = vadd.f32 %v6232_v11, %v6173_v40 }
  0xfa   : > { %v1420_v40 = vmax.f32 %v6305_v53, 0.0 }
  0xfd   : > { %v1119_v57 = vpop.f32.mrf.mxu0  ;;  %v6224_v7 = vpop.f32.mrf.mxu1 }
 0x105   : > { %v1122_v61 = vpop.f32.mrf.mxu0  ;;  %v6229_v10 = vpop.f32.mrf.mxu1 }
 0x108   : > { %5073 = vmatmul.msk.bf16.gmra.mxu0 %vm9198_vm4, %v5638_v59  ;;  %5114 = vmatmul.msk.bf16.gmra.mxu1 %vm9198_vm4, %v5679_v60  ;;  %v1419_v60 = vmax.f32 %v6314_v43, 0.0 }
 0x10d   : > { %v1124_v1 = vpop.f32.mrf.mxu0  ;;  %v6250_v21 = vpop.f32.mrf.mxu1 }
 0x10e   : > { %v6253_v23 = vadd.f32 %v6232_v11, %v1124_v1  ;;  %v5643_v1 = vld [vmem:[%s6049_s20 + $0x90] sm:$0xff] }
 0x110   : > { %v1428_v32 = vmax.f32 %v6253_v23, 0.0 }
 0x115   : > { %v1127_v4 = vpop.f32.mrf.mxu0  ;;  %v6284_v41 = vpop.f32.mrf.mxu1 }
 0x116   : > { %v6247_v17 = vadd.f32 %v6232_v11, %v1127_v4 }
 0x118   : > { %5074 = vmatmul.msk.bf16.gmra.mxu0 %vm9198_vm4, %v5639_v0  ;;  %5115 = vmatmul.msk.bf16.gmra.mxu1 %vm9198_vm4, %v5680_v3  ;;  %v5684_v3 = vld [vmem:[%s6049_s20 + $0x1d8] sm:$0xff] }
 0x11d   : > { %v1129_v6 = vpop.f32.mrf.mxu0  ;;  %v6317_v59 = vpop.f32.mrf.mxu1 }
 0x11e   : > { %v6242_v15 = vadd.f32 %v6232_v11, %v1129_v6 }
 0x120   : > { %v1430_v25 = vmax.f32 %v6242_v15, 0.0 }
 0x125   : > { %v1132_v9 = vpop.f32.mrf.mxu0  ;;  %v6335_v0 = vpop.f32.mrf.mxu1 }
 0x126   : > { %v6236_v13 = vadd.f32 %v6232_v11, %v1132_v9 }
 0x127   : > { %5751 = vllmr.4.mxu1 }
 0x128   : > { %5075 = vmatmul.msk.bf16.gmra.mxu0 %vm9198_vm4, %v5640_v62  ;;  %5116 = vmatmul.msk.bf16.gmra.mxu1 %vm9198_vm4, %v5681_v8  ;;  %v1431_v19 = vmax.f32 %v6236_v13, 0.0  ;;  %v1417_v62 = vmax.f32 %v6328_v39, 0.0  ;;  %v5644_v8 = vld [vmem:[%s6049_s20 + $0x98] sm:$0xff] }
 0x129   : > { %5756 = vmatpush.lsf.bf16.msrb.mxu1 %v6151_v31  ;;  %v6266_v31 = vadd.f32 %v6232_v11, %v1119_v57  ;;  %v1421_v57 = vmax.f32 %v6299_v51, 0.0 }
 0x12b   : > { %v1426_v37 = vmax.f32 %v6266_v31, 0.0 }
 0x12d   : > { %v1134_v12 = vpop.f32.mrf.mxu0  ;;  %5757 = vmatpush.lsf.bf16.msrb.mxu1 %v6145_v30  ;;  %v1429_v30 = vmax.f32 %v6247_v17, 0.0  ;;  %v6343_v4 = vpop.f32.mrf.mxu1 }
 0x12e   : > { %v6239_v14 = vadd.f32 %v6232_v11, %v1134_v12  ;;  %v5685_v12 = vld [vmem:[%s6049_s20 + $0x1e0] sm:$0xff] }
 0x130   : > { %9439 = vst [vmem:[#allocation16_spill] sm:$0xff] %v6239_v14  ;;  %v1432_v16 = vmax.f32 %v6239_v14, 0.0 }
 0x131   : > { %5758 = vmatpush.lsf.bf16.msrb.mxu1 %v6136_v26  ;;  %v6262_v26 = vadd.f32 %v6232_v11, %v1122_v61 }
 0x135   : > { %1572 = vmatpush.msra.mxu1 %v1432_v16  ;;  %v6257_v28 = vpop.f32.mrf.mxu0  ;;  %v6351_v16 = vpop.f32.mrf.mxu1 }
 0x137   : > { %1573 = vmatpush.msra.mxu1 %v1431_v19 }
 0x138   : > { %5076 = vmatmul.msk.bf16.gmra.mxu0 %vm9198_vm4, %v5641_v27  ;;  %5117 = vmatmul.msk.bf16.gmra.mxu1 %vm9198_vm4, %v5682_v29  ;;  %v5645_v27 = vld [vmem:[%s6049_s20 + $0xa0] sm:$0xff] }
 0x139   : > { %5759 = vmatpush.lsf.bf16.msrb.mxu1 %v6129_v24  ;;  %v1427_v24 = vmax.f32 %v6262_v26, 0.0 }
 0x13d   : > { %1574 = vmatpush.msra.mxu1 %v1430_v25  ;;  %v6282_v38 = vpop.f32.mrf.mxu0  ;;  %v6355_v25 = vpop.f32.mrf.mxu1 }
 0x13f   : > { %1575 = vmatpush.msra.mxu1 %v1429_v30  ;;  %v5686_v30 = vld [vmem:[%s6049_s20 + $0x1e8] sm:$0xff] }
 0x141   : > { %1576 = vmatpush.msra.mxu1 %v1428_v32 }
 0x143   : > { %5760 = vmatpush.lsf.bf16.msrb.mxu1 %v6122_v22  ;;  %v6294_v22 = vadd.f32 %v6232_v11, %v6183_v45  ;;  %v5642_v45 = vld [vmem:[%s6049_s20 + $0x88] sm:$0xff] }
 0x145   : > { %v6309_v54 = vpop.f32.mrf.mxu0  ;;  %v6361_v32 = vpop.f32.mrf.mxu1 }
 0x147   : > { %1577 = vmatpush.msra.mxu1 %v1427_v24 }
 0x148   : > { %5077 = vmatmul.msk.bf16.gmra.mxu0 %vm9198_vm4, %v5642_v45  ;;  %5118 = vmatmul.msk.bf16.gmra.mxu1 %vm9198_vm4, %v5683_v55 }
 0x149   : > { %1578 = vmatpush.msra.mxu1 %v1426_v37 }
 0x14b   : > { %5761 = vmatpush.lsf.bf16.msrb.mxu1 %v6115_v20  ;;  %v1422_v20 = vmax.f32 %v6294_v22, 0.0 }
 0x14d   : > { %v6363_v37 = vpop.f32.mrf.mxu1 }
 0x14f   : > { %1579 = vmatpush.msra.mxu1 %v1425_v47  ;;  %v5646_v47 = vld [vmem:[%s6049_s20 + $0xa8] sm:$0xff] }
 0x151   : > { %1580 = vmatpush.msra.mxu1 %v1424_v48 }
 0x153   : > { %5762 = vmatpush.lsf.bf16.msrb.mxu1 %v6108_v18  ;;  %v6321_v18 = vadd.f32 %v6232_v11, %v6165_v36  ;;  %v6332_v36 = vpop.f32.mrf.mxu0 }
 0x155   : > { %v1418_v61 = vmax.f32 %v6321_v18, 0.0  ;;  %v6375_v55 = vpop.f32.mrf.mxu1 }
 0x157   : > { %1581 = vmatpush.msra.mxu1 %v1423_v49  ;;  %v5687_v49 = vld [vmem:[%s6049_s20 + $0x1f0] sm:$0xff] }
 0x158   : > { %5078 = vmatmul.msk.bf16.gmra.mxu0 %vm9198_vm4, %v5643_v1  ;;  %5119 = vmatmul.msk.bf16.gmra.mxu1 %vm9198_vm4, %v5684_v3  ;;  %v5648_v1 = vld [vmem:[%s6049_s20 + $0xb8] sm:$0xff] }
 0x159   : > { %1582 = vmatpush.msra.mxu1 %v1422_v20  ;;  %v6372_v20 = vld [vmem:[%s9092_s2] sm:$0xff] }
 0x15a   : > { %1549 = vst [vmem:[#allocation1] ss:$2 sm:$0xff] %v6372_v20 }
 0x15b   : > { %1583 = vmatpush.msra.mxu1 %v1421_v57  ;;  %v6338_v35 = vpop.f32.mrf.mxu0  ;;  %v5647_v57 = vld [vmem:[%s6049_s20 + $0xb0] sm:$0xff] }
 0x15d   : > { %1584 = vmatpush.msra.mxu1 %v1420_v40 }
 0x15f   : > { %1585 = vmatpush.msra.mxu1 %v1419_v60  ;;  %v5688_v60 = vld [vmem:[%s6049_s20 + $0x1f8] sm:$0xff] }
 0x161   : > { %1586 = vmatpush.msra.mxu1 %v1418_v61  ;;  %v6379_v61 = vpop.f32.mrf.mxu1 }
 0x163   : > { %1587 = vmatpush.msra.mxu1 %v1417_v62  ;;  %v6345_v6 = vpop.f32.mrf.mxu0 }
 0x168   : > { %5079 = vmatmul.msk.bf16.gmra.mxu0 %vm9198_vm4, %v5644_v8  ;;  %5120 = vmatmul.msk.bf16.gmra.mxu1 %vm9198_vm4, %v5685_v12  ;;  %v1556_v8 = vld.sshfl [vmem:[#allocation1] sm:$0xff pattern:$0x75316420] }
 0x169   : > { %v6384_v12 = vpop.f32.mrf.mxu1 }
 0x16b   : > { %v6348_v9 = vpop.f32.mrf.mxu0 }
 0x173   : > { %v1154_v19 = vpop.f32.mrf.mxu0 }
 0x178   : > { %5080 = vmatmul.msk.bf16.gmra.mxu0 %vm9198_vm4, %v5645_v27  ;;  %5121 = vmatmul.msk.bf16.gmra.mxu1 %vm9198_vm4, %v5686_v30 }
 0x17b   : > { %v1157_v29 = vpop.f32.mrf.mxu0 }
 0x183   : > { %v1159_v24 = vpop.f32.mrf.mxu0 }
 0x188   : > { %5081 = vmatmul.msk.bf16.gmra.mxu0 %vm9198_vm4, %v5646_v47  ;;  %5122 = vmatmul.msk.bf16.gmra.mxu1 %vm9198_vm4, %v5687_v49 }
 0x18b   : > { %v1162_v48 = vpop.f32.mrf.mxu0 }
 0x193   : > { %v1164_v45 = vpop.f32.mrf.mxu0 }
 0x198   : > { %5082 = vmatmul.msk.bf16.gmra.mxu0 %vm9198_vm4, %v5647_v57  ;;  %5123 = vmatmul.msk.bf16.gmra.mxu1 %vm9198_vm4, %v5688_v60 }
 0x19b   : > { %v1167_v40 = vpop.f32.mrf.mxu0 }
 0x19c   : > { %v6398_v60 = vadd.f32 %v6232_v11, %v1167_v40  ;;  %v6413_v40 = vadd.f32 %v6232_v11, %v1159_v24 }
 0x19e   : > { %9443 = vst [vmem:[#allocation20_spill] sm:$0xff] %v6398_v60 }
 0x19f   : > { %9446 = vst [vmem:[#allocation23_spill] sm:$0xff] %v6413_v40 }
 0x1a3   : > { %v1169_v62 = vpop.f32.mrf.mxu0 }
 0x1a4   : > { %v6394_v49 = vadd.f32 %v6232_v11, %v1169_v62  ;;  %v6409_v62 = vadd.f32 %v6232_v11, %v1162_v48  ;;  %v6422_v48 = vadd.f32 %v6232_v11, %v1154_v19 }
 0x1a6   : > { %9442 = vst [vmem:[#allocation19_spill] sm:$0xff] %v6394_v49  ;;  %v1440_v19 = vmax.f32 %v6422_v48, 0.0 }
 0x1a7   : > { %9445 = vst [vmem:[#allocation22_spill] sm:$0xff] %v6409_v62 }
 0x1a8   : > { %5083 = vmatmul.msk.bf16.gmra.mxu0 %vm9198_vm4, %v5648_v1  ;;  %1588 = vmatmul.f32.vlgmr.msra.gmra.mxu1 %v1556_v8  ;;  %v6402_v1 = vadd.f32 %v6232_v11, %v1164_v45  ;;  %v5649_v8 = vld [vmem:[%s6049_s20 + $0xc0] sm:$0xff]  ;;  %v6418_v45 = vadd.f32 %v6232_v11, %v1157_v29  ;;  %9448 = vst [vmem:[#allocation25_spill] sm:$0xff] %v6422_v48  ;;  %v5655_v48 = vld [vmem:[%s6049_s20 + $0xf0] sm:$0xff] }
 0x1a9   : > { %v6434_v29 = vadd.f32 %v6232_v11, %v6345_v6  ;;  %v6452_v6 = vadd.f32 %v6232_v11, %v6332_v36 }
 0x1aa   : > { %9444 = vst [vmem:[#allocation21_spill] sm:$0xff] %v6402_v1 }
 0x1ab   : > { %v1172_v3 = vpop.f32.mrf.mxu0  ;;  %9447 = vst [vmem:[#allocation24_spill] sm:$0xff] %v6418_v45  ;;  %v1436_v36 = vmax.f32 %v6452_v6, 0.0 }
 0x1ac   : > { %v6388_v30 = vadd.f32 %v6232_v11, %v1172_v3  ;;  %v1446_v3 = vmax.f32 %v6394_v49, 0.0  ;;  %9450 = vst [vmem:[#allocation27_spill] sm:$0xff] %v6434_v29 }
 0x1ad   : > { %9452 = vst [vmem:[#allocation29_spill] sm:$0xff] %v6452_v6 }
 0x1ae   : > { %9440 = vst [vmem:[#allocation17_spill] sm:$0xff] %v6388_v30  ;;  %v1447_v14 = vmax.f32 %v6388_v30, 0.0  ;;  %v1442_v30 = vmax.f32 %v6413_v40, 0.0 }
 0x1b3   : > { %v1174_v27 = vpop.f32.mrf.mxu0 }
 0x1b4   : > { %v6391_v47 = vadd.f32 %v6232_v11, %v1174_v27 }
 0x1b6   : > { %9441 = vst [vmem:[#allocation18_spill] sm:$0xff] %v6391_v47  ;;  %v1448_v57 = vmax.f32 %v6391_v47, 0.0  ;;  %v1445_v47 = vmax.f32 %v6398_v60, 0.0  ;;  %v5653_v60 = vld [vmem:[%s6049_s20 + $0xe0] sm:$0xff] }
 0x1b8   : > { %1592 = vmatpush.msra.mxu1 %v1448_v57  ;;  %v1444_v57 = vmax.f32 %v6402_v1, 0.0  ;;  %5084 = vmatmul.msk.bf16.gmra.mxu0 %vm9198_vm4, %v5649_v8  ;;  %v6439_v8 = vadd.f32 %v6232_v11, %v6338_v35  ;;  %v5650_v35 = vld [vmem:[%s6049_s20 + $0xc8] sm:$0xff] }
 0x1ba   : > { %1593 = vmatpush.msra.mxu1 %v1447_v14  ;;  %v1443_v14 = vmax.f32 %v6409_v62, 0.0  ;;  %9451 = vst [vmem:[#allocation28_spill] sm:$0xff] %v6439_v8  ;;  %v5654_v62 = vld [vmem:[%s6049_s20 + $0xe8] sm:$0xff] }
 0x1bb   : > { %v6406_v27 = vpop.f32.mrf.mxu0 }
 0x1bc   : > { %1594 = vmatpush.msra.mxu1 %v1446_v3  ;;  %v6429_v3 = vadd.f32 %v6232_v11, %v6348_v9  ;;  %v6444_v9 = vadd.f32 %v6232_v11, %v6181_v44  ;;  %v1437_v44 = vmax.f32 %v6439_v8, 0.0 }
 0x1be   : > { %1595 = vmatpush.msra.mxu1 %v1445_v47  ;;  %9449 = vst [vmem:[#allocation26_spill] sm:$0xff] %v6429_v3  ;;  %v1441_v47 = vmax.f32 %v6418_v45, 0.0  ;;  %vm9191_vm5 = vcmp.gt.f32.partialorder %v6444_v9, 0.0 }
 0x1c0   : > { %1596 = vmatpush.msra.mxu1 %v1444_v57  ;;  %v1439_v57 = vmax.f32 %v6429_v3, 0.0 }
 0x1c2   : > { %1597 = vmatpush.msra.mxu1 %v1443_v14  ;;  %v1438_v14 = vmax.f32 %v6434_v29, 0.0  ;;  %v5656_v29 = vld [vmem:[%s6049_s20 + $0xf8] sm:$0xff] }
 0x1c3   : > { %v6425_v24 = vpop.f32.mrf.mxu0 }
 0x1c4   : > { %1598 = vmatpush.msra.mxu1 %v1442_v30  ;;  %v6448_v30 = vadd.f32 %v6232_v11, %v6185_v46  ;;  %v6467_v46 = vadd.f32 %v6232_v11, %v6282_v38  ;;  %v9456_v38 = vmov 0 }
 0x1c6   : > { %1599 = vmatpush.msra.mxu1 %v1441_v47  ;;  %vm9180_vm6 = vcmp.gt.f32.partialorder %v6448_v30, 0.0  ;;  %9454 = vst [vmem:[#allocation31_spill] sm:$0xff] %v6467_v46 }
 0x1c7   : > { %vm6480_vm7 = vmpackc.low %vm9180_vm6, %vm9191_vm5 }
 0x1c8   : > { %1600 = vmatpush.msra.mxu1 %v1440_v19  ;;  %v6460_v19 = vadd.f32 %v6232_v11, %v6309_v54  ;;  %5085 = vmatmul.msk.bf16.gmra.mxu0 %vm9198_vm4, %v5650_v35  ;;  %v6473_v54 = vadd.f32 %v6232_v11, %v6257_v28  ;;  %v9457_v38 = vsel %vm6480_vm7, 4294967295, %v9456_v38 }
 0x1c9   : > { %9458 = vst [vmem:[#allocation33_spill] sm:$0xff] %v9457_v38  ;;  %v5651_v38 = vld [vmem:[%s6049_s20 + $0xd0] sm:$0xff] }
 0x1ca   : > { %1601 = vmatpush.msra.mxu1 %v1439_v57  ;;  %9453 = vst [vmem:[#allocation30_spill] sm:$0xff] %v6460_v19  ;;  %v1435_v57 = vmax.f32 %v6460_v19, 0.0  ;;  %v1433_v28 = vmax.f32 %v6473_v54, 0.0 }
 0x1cb   : > { %v6456_v47 = vpop.f32.mrf.mxu0  ;;  %9455 = vst [vmem:[#allocation32_spill] sm:$0xff] %v6473_v54  ;;  %v6542_v54 = vadd.f32 %v6232_v11, %v6335_v0 }
 0x1cc   : > { %1602 = vmatpush.msra.mxu1 %v1438_v14  ;;  %v1434_v14 = vmax.f32 %v6467_v46, 0.0 }
 0x1cd   : > { %9466 = vst [vmem:[#allocation39_spill] sm:$0xff] %v6542_v54  ;;  %vm9172_vm11 = vcmp.gt.f32.partialorder %v6542_v54, 0.0 }
 0x1ce   : > { %1603 = vmatpush.msra.mxu1 %v1437_v44  ;;  %v6490_v44 = vadd.f32 %v6232_v11, %v6193_v50  ;;  %v9459_v50 = vmov 0 }
 0x1d0   : > { %1604 = vmatpush.msra.mxu1 %v1436_v36  ;;  %v6494_v36 = vadd.f32 %v6232_v11, %v6197_v52  ;;  %vm9176_vm8 = vcmp.gt.f32.partialorder %v6490_v44, 0.0 }
 0x1d2   : > { %1605 = vmatpush.msra.mxu1 %v1435_v57  ;;  %vm9175_vm9 = vcmp.gt.f32.partialorder %v6494_v36, 0.0  ;;  %v5652_v57 = vld [vmem:[%s6049_s20 + $0xd8] sm:$0xff] }
 0x1d3   : > { %v6485_v35 = vpop.f32.mrf.mxu0  ;;  %vm6506_vm10 = vmpackc.low %vm9175_vm9, %vm9176_vm8 }
 0x1d4   : > { %1606 = vmatpush.msra.mxu1 %v1434_v14  ;;  %v9460_v50 = vsel %vm6506_vm10, 4294967295, %v9459_v50 }
 0x1d5   : > { %9461 = vst [vmem:[#allocation34_spill] sm:$0xff] %v9460_v50 }
 0x1d6   : > { %1607 = vmatpush.msra.mxu1 %v1433_v28 }
 0x1d8   : > { %5086 = vmatmul.msk.bf16.gmra.mxu0 %vm9198_vm4, %v5651_v38 }
 0x1db   : > { %v6497_v49 = vpop.f32.mrf.mxu0 }
 0x1e3   : > { %v1189_v52 = vpop.f32.mrf.mxu0 }
 0x1e8   : > { %5087 = vmatmul.msk.bf16.gmra.mxu0 %vm9198_vm4, %v5652_v57 }
 0x1eb   : > { %v1192_v14 = vpop.f32.mrf.mxu0 }
 0x1f3   : > { %v1194_v28 = vpop.f32.mrf.mxu0 }
 0x1f8   : > { %5088 = vmatmul.msk.bf16.gmra.mxu0 %vm9198_vm4, %v5653_v60  ;;  %v6523_v60 = vld [vmem:[%s9092_s2 + $0x8] sm:$0xff] }
 0x1f9   : > { %1551 = vst [vmem:[#allocation1 + $0x10] ss:$2 sm:$0xff] %v6523_v60 }
 0x1fb   : > { %v1197_v1 = vpop.f32.mrf.mxu0 }
 0x203   : > { %v1199_v38 = vpop.f32.mrf.mxu0 }
 0x208   : > { %5089 = vmatmul.msk.bf16.gmra.mxu0 %vm9198_vm4, %v5654_v62 }
 0x20b   : > { %v1202_v40 = vpop.f32.mrf.mxu0 }
 0x213   : > { %v1204_v45 = vpop.f32.mrf.mxu0 }
 0x218   : > { %5090 = vmatmul.msk.bf16.gmra.mxu0 %vm9198_vm4, %v5655_v48 }
 0x21b   : > { %v1207_v3 = vpop.f32.mrf.mxu0 }
 0x21c   : > { %v6537_v19 = vadd.f32 %v6232_v11, %v1207_v3 }
 0x21e   : > { %9465 = vst [vmem:[#allocation38_spill] sm:$0xff] %v6537_v19  ;;  %v1461_v0 = vmax.f32 %v6537_v19, 0.0  ;;  %v6630_v19 = vadd.f32 %v6232_v11, %v6456_v47  ;;  %v6644_v47 = vadd.f32 %v6232_v11, %v6406_v27 }
 0x220   : > { %9487 = vst [vmem:[#allocation56_spill] sm:$0xff] %v6630_v19 }
 0x221   : > { %9489 = vst [vmem:[#allocation58_spill] sm:$0xff] %v6644_v47 }
 0x223   : > { %v1209_v50 = vpop.f32.mrf.mxu0 }
 0x224   : > { %v6533_v48 = vadd.f32 %v6232_v11, %v1209_v50 }
 0x226   : > { %9464 = vst [vmem:[#allocation37_spill] sm:$0xff] %v6533_v48  ;;  %v1462_v50 = vmax.f32 %v6533_v48, 0.0 }
 0x228   : > { %5091 = vmatmul.msk.bf16.gmra.mxu0 %vm9198_vm4, %v5656_v29 }
 0x22b   : > { %v1212_v8 = vpop.f32.mrf.mxu0 }
 0x22c   : > { %v6527_v62 = vadd.f32 %v6232_v11, %v1212_v8  ;;  %v6546_v8 = vadd.f32 %v6232_v11, %v6343_v4  ;;  %v6562_v4 = vadd.f32 %v6232_v11, %v1199_v38  ;;  %v6580_v38 = vadd.f32 %v6232_v11, %v1194_v28 }
 0x22d   : > { %v6594_v28 = vadd.f32 %v6232_v11, %v1189_v52 }
 0x22e   : > { %9462 = vst [vmem:[#allocation35_spill] sm:$0xff] %v6527_v62  ;;  %v1463_v46 = vmax.f32 %v6527_v62, 0.0  ;;  %vm9165_vm12 = vcmp.gt.f32.partialorder %v6546_v8, 0.0  ;;  %v6587_v62 = vadd.f32 %v6232_v11, %v1192_v14  ;;  %v9480_v14 = vmov 0 }
 0x22f   : > { %9467 = vst [vmem:[#allocation40_spill] sm:$0xff] %v6546_v8  ;;  %vm6575_vm13 = vmpackc.low %vm9165_vm12, %vm9172_vm11 }
 0x230   : > { %9470 = vst [vmem:[#allocation43_spill] sm:$0xff] %v6562_v4  ;;  %v1455_v52 = vmax.f32 %v6587_v62, 0.0 }
 0x231   : > { %9475 = vst [vmem:[#allocation46_spill] sm:$0xff] %v6580_v38 }
 0x232   : > { %9477 = vst [vmem:[#allocation48_spill] sm:$0xff] %v6587_v62 }
 0x233   : > { %v1214_v57 = vpop.f32.mrf.mxu0  ;;  %9479 = vst [vmem:[#allocation50_spill] sm:$0xff] %v6594_v28 }
 0x234   : > { %v6530_v6 = vadd.f32 %v6232_v11, %v1214_v57  ;;  %v6549_v57 = vadd.f32 %v6232_v11, %v1204_v45 }
 0x236   : > { %9463 = vst [vmem:[#allocation36_spill] sm:$0xff] %v6530_v6  ;;  %v1464_v29 = vmax.f32 %v6530_v6, 0.0  ;;  %v6553_v6 = vld [vmem:[%s6049_s20 + $0x100] sm:$0xff]  ;;  %v1460_v45 = vmax.f32 %v6549_v57, 0.0 }
 0x237   : > { %9468 = vst [vmem:[#allocation41_spill] sm:$0xff] %v6549_v57  ;;  %v6665_v57 = vadd.f32 %v6232_v11, %v6284_v41  ;;  %v9498_v41 = vmov 0 }
 0x238   : > { %1612 = vmatpush.msra.mxu3 %v1464_v29  ;;  %v6556_v29 = vadd.f32 %v6232_v11, %v1202_v40  ;;  %5092 = vmatmul.msk.bf16.gmra.mxu0 %vm9198_vm4, %v6553_v6 }
 0x239   : > { %9495 = vst [vmem:[#allocation62_spill] sm:$0xff] %v6665_v57 }
 0x23a   : > { %1613 = vmatpush.msra.mxu3 %v1463_v46  ;;  %9469 = vst [vmem:[#allocation42_spill] sm:$0xff] %v6556_v29  ;;  %v6568_v46 = vadd.f32 %v6232_v11, %v1197_v1  ;;  %v1459_v40 = vmax.f32 %v6556_v29, 0.0  ;;  %v1458_v1 = vmax.f32 %v6562_v4, 0.0  ;;  %v1558_v4 = vld.sshfl [vmem:[#allocation1 + $0x10] sm:$0xff pattern:$0x75316420] }
 0x23b   : > { %v1217_v3 = vpop.f32.mrf.mxu0 }
 0x23c   : > { %1614 = vmatpush.msra.mxu3 %v1462_v50  ;;  %9471 = vst [vmem:[#allocation44_spill] sm:$0xff] %v6568_v46  ;;  %v9472_v50 = vmov 0 }
 0x23d   : > { %v9473_v50 = vsel %vm6575_vm13, 4294967295, %v9472_v50  ;;  %vm9540_vm13 = vcmask 261120  }
 0x23e   : > { %1615 = vmatpush.msra.mxu3 %v1461_v0  ;;  %9474 = vst [vmem:[#allocation45_spill] sm:$0xff] %v9473_v50  ;;  %v6583_v0 = vadd.f32 %v6232_v11, %v1217_v3  ;;  %v1457_v50 = vmax.f32 %v6568_v46, 0.0  ;;  %v1456_v3 = vmax.f32 %v6580_v38, 0.0  ;;  %v5663_v38 = vld [vmem:[%s6049_s20 + $0x130] sm:$0xff] }
 0x240   : > { %1616 = vmatpush.msra.mxu3 %v1460_v45  ;;  %9476 = vst [vmem:[#allocation47_spill] sm:$0xff] %v6583_v0  ;;  %vm9151_vm14 = vcmp.gt.f32.partialorder %v6583_v0, 0.0 }
 0x242   : > { %1617 = vmatpush.msra.mxu3 %v1459_v40  ;;  %v6609_v40 = vadd.f32 %v6232_v11, %v6497_v49  ;;  %v6626_v49 = vld [vmem:[%s6049_s20 + $0x108] sm:$0xff] }
 0x243   : > { %v1219_v45 = vpop.f32.mrf.mxu0 }
 0x244   : > { %v6590_v48 = vadd.f32 %v6232_v11, %v1219_v45  ;;  %1618 = vmatpush.msra.mxu3 %v1458_v1  ;;  %9483 = vst [vmem:[#allocation52_spill] sm:$0xff] %v6609_v40  ;;  %v6618_v1 = vadd.f32 %v6232_v11, %v6355_v25  ;;  %v6622_v45 = vadd.f32 %v6232_v11, %v6485_v35 }
 0x245   : > { %v6637_v25 = vadd.f32 %v6232_v11, %v6425_v24  ;;  %v9490_v24 = vmov 0 }
 0x246   : > { %9478 = vst [vmem:[#allocation49_spill] sm:$0xff] %v6590_v48  ;;  %vm9150_vm15 = vcmp.gt.f32.partialorder %v6590_v48, 0.0  ;;  %1619 = vmatpush.msra.mxu3 %v1457_v50  ;;  %v6614_v50 = vadd.f32 %v6232_v11, %v6351_v16  ;;  %v1453_v16 = vmax.f32 %v6609_v40, 0.0  ;;  %vm9152_vm2 = vcmp.gt.f32.partialorder %v6618_v1, 0.0 }
 0x247   : > { %vm6603_vm0 = vmpackc.low %vm9150_vm15, %vm9151_vm14  ;;  %9485 = vst [vmem:[#allocation54_spill] sm:$0xff] %v6618_v1  ;;  %v1452_v35 = vmax.f32 %v6622_v45, 0.0  ;;  %v1450_v27 = vmax.f32 %v6637_v25, 0.0 }
 0x248   : > { %v9481_v14 = vsel %vm6603_vm0, 4294967295, %v9480_v14  ;;  %1620 = vmatpush.msra.mxu3 %v1456_v3  ;;  %9484 = vst [vmem:[#allocation53_spill] sm:$0xff] %v6614_v50  ;;  %vm9157_vm1 = vcmp.gt.f32.partialorder %v6614_v50, 0.0  ;;  %5093 = vmatmul.msk.bf16.gmra.mxu0 %vm9198_vm4, %v6626_v49 }
 0x249   : > { %9482 = vst [vmem:[#allocation51_spill] sm:$0xff] %v9481_v14  ;;  %v1454_v14 = vmax.f32 %v6594_v28, 0.0  ;;  %vm6651_vm3 = vmpackc.low %vm9152_vm2, %vm9157_vm1  ;;  %v1557_v28 = vld.sshfl [vmem:[#allocation1 + $0x8] sm:$0xff pattern:$0x75316420] }
 0x24a   : > { %9486 = vst [vmem:[#allocation55_spill] sm:$0xff] %v6622_v45  ;;  %1621 = vmatpush.msra.mxu3 %v1455_v52  ;;  %v9491_v24 = vsel %vm6651_vm3, 4294967295, %v9490_v24  ;;  %v6657_v52 = vadd.f32 %v6232_v11, %v6317_v59  ;;  %v6673_v59 = vadd.f32 %v6232_v11, %v6250_v21  ;;  %v6688_v21 = vadd.f32 %v6232_v11, %v6229_v10  ;;  %v6705_v10 = vld [vmem:[%s6049_s20 + $0x110] sm:$0xff] }
 0x24b   : > { %v1222_v3 = vpop.f32.mrf.mxu0  ;;  %9488 = vst [vmem:[#allocation57_spill] sm:$0xff] %v6637_v25  ;;  %vm9551_vm3 = vcmask 261120  }
 0x24c   : > { %1622 = vmatpush.msra.mxu3 %v1454_v14  ;;  %v1451_v14 = vmax.f32 %v6630_v19, 0.0  ;;  %9492 = vst [vmem:[#allocation59_spill] sm:$0xff] %v9491_v24  ;;  %v1449_v24 = vmax.f32 %v6644_v47, 0.0 }
 0x24d   : > { %9493 = vst [vmem:[#allocation60_spill] sm:$0xff] %v6657_v52 }
 0x24e   : > { %1623 = vmatpush.msra.mxu3 %v1453_v16  ;;  %v6660_v16 = vadd.f32 %v6232_v11, %v1222_v3  ;;  %9497 = vst [vmem:[#allocation64_spill] sm:$0xff] %v6673_v59  ;;  %v1512_v3 = vmax.f32 %v6657_v52, 0.0 }
 0x24f   : > { %9501 = vst [vmem:[#allocation66_spill] sm:$0xff] %v6688_v21 }
 0x250   : > { %1624 = vmatpush.msra.mxu3 %v1452_v35  ;;  %9494 = vst [vmem:[#allocation61_spill] sm:$0xff] %v6660_v16  ;;  %vm9156_vm15 = vcmp.gt.f32.partialorder %v6660_v16, 0.0 }
 0x251   : > { %1911 = vst [vmem:[#allocation1] ss:$2 sm:$0xff] %v6372_v20 }
 0x252   : > { %1625 = vmatpush.msra.mxu3 %v1451_v14  ;;  %v1511_v14 = vmax.f32 %v6665_v57, 0.0 }
 0x253   : > { %v1224_v35 = vpop.f32.mrf.mxu0 }
 0x254   : > { %v6668_v29 = vadd.f32 %v6232_v11, %v1224_v35  ;;  %1626 = vmatpush.msra.mxu3 %v1450_v27  ;;  %v6693_v27 = vadd.f32 %v6232_v11, %v6361_v32  ;;  %v1510_v35 = vmax.f32 %v6673_v59, 0.0  ;;  %v1509_v32 = vmax.f32 %v6688_v21, 0.0 }
 0x256   : > { %9496 = vst [vmem:[#allocation63_spill] sm:$0xff] %v6668_v29  ;;  %vm9155_vm14 = vcmp.gt.f32.partialorder %v6668_v29, 0.0  ;;  %1627 = vmatpush.msra.mxu3 %v1449_v24  ;;  %v6701_v24 = vadd.f32 %v6232_v11, %v6224_v7  ;;  %v6716_v7 = vadd.f32 %v6232_v11, %v6217_v2  ;;  %v9508_v2 = vmov 0 }
 0x257   : > { %1628 = vmatmul.f32.vlgmr.msra.gmra.mxu3 %v1558_v4  ;;  %vm6682_vm2 = vmpackc.low %vm9155_vm14, %vm9156_vm15  ;;  %9502 = vst [vmem:[#allocation67_spill] sm:$0xff] %v6693_v27  ;;  %v6697_v4 = vadd.f32 %v6232_v11, %v6363_v37  ;;  %vm9164_vm14 = vcmp.gt.f32.partialorder %v6693_v27, 0.0 }
 0x258   : > { %v9499_v41 = vsel %vm6682_vm2, 4294967295, %v9498_v41  ;;  %1672 = vmatpush.msra.mxu3 %v1512_v3  ;;  %9504 = vst [vmem:[#allocation69_spill] sm:$0xff] %v6701_v24  ;;  %v6709_v3 = vadd.f32 %v6232_v11, %v6222_v5  ;;  %v1508_v37 = vmax.f32 %v6701_v24, 0.0  ;;  %5094 = vmatmul.msk.bf16.gmra.mxu0 %vm9198_vm4, %v6705_v10  ;;  %v6723_v5 = vadd.f32 %v6232_v11, %v6214_v63 }
 0x259   : > { %9500 = vst [vmem:[#allocation65_spill] sm:$0xff] %v9499_v41  ;;  %vm9163_vm15 = vcmp.gt.f32.partialorder %v6697_v4, 0.0  ;;  %v9535_v41 = vmov 0 }
 0x25a   : > { %9503 = vst [vmem:[#allocation68_spill] sm:$0xff] %v6697_v4  ;;  %1673 = vmatpush.msra.mxu3 %v1511_v14  ;;  %v1507_v14 = vmax.f32 %v6709_v3, 0.0  ;;  %vm6730_vm1 = vmpackc.low %vm9163_vm15, %vm9164_vm14 }
 0x25b   : > { %v1227_v52 = vpop.f32.mrf.mxu0  ;;  %9505 = vst [vmem:[#allocation70_spill] sm:$0xff] %v6709_v3  ;;  %v9509_v2 = vsel %vm6730_vm1, 4294967295, %v9508_v2  ;;  %v1505_v3 = vmax.f32 %v6723_v5, 0.0 }
 0x25c   : > { %1674 = vmatpush.msra.mxu3 %v1510_v35  ;;  %9506 = vst [vmem:[#allocation71_spill] sm:$0xff] %v6716_v7  ;;  %v6736_v35 = vadd.f32 %v6232_v11, %v6207_v58  ;;  %v6740_v63 = vadd.f32 %v6232_v11, %v1227_v52 }
 0x25d   : > { %9507 = vst [vmem:[#allocation72_spill] sm:$0xff] %v6723_v5 }
 0x25e   : > { %1675 = vmatpush.msra.mxu3 %v1509_v32  ;;  %9510 = vst [vmem:[#allocation73_spill] sm:$0xff] %v9509_v2  ;;  %v1506_v32 = vmax.f32 %v6716_v7, 0.0  ;;  %v1504_v58 = vmax.f32 %v6736_v35, 0.0  ;;  %vm9171_vm15 = vcmp.gt.f32.partialorder %v6740_v63, 0.0  ;;  %v1501_v7 = vmax.f32 %v6490_v44, 0.0 }
 0x25f   : > { %9511 = vst [vmem:[#allocation74_spill] sm:$0xff] %v6736_v35 }
 0x260   : > { %1676 = vmatpush.msra.mxu3 %v1508_v37  ;;  %9512 = vst [vmem:[#allocation75_spill] sm:$0xff] %v6740_v63  ;;  %v6744_v37 = vadd.f32 %v6232_v11, %v6205_v56  ;;  %v9515_v56 = vmov 0 }
 0x262   : > { %1677 = vmatpush.msra.mxu3 %v1507_v14  ;;  %9513 = vst [vmem:[#allocation76_spill] sm:$0xff] %v6744_v37  ;;  %v1503_v52 = vmax.f32 %v6744_v37, 0.0  ;;  %v1502_v14 = vmax.f32 %v6494_v36, 0.0 }
 0x263   : > { %v1229_v24 = vpop.f32.mrf.mxu0 }
 0x264   : > { %v6748_v2 = vadd.f32 %v6232_v11, %v1229_v24  ;;  %1678 = vmatpush.msra.mxu3 %v1506_v32  ;;  %v6764_v24 = vadd.f32 %v6232_v11, %v6375_v55  ;;  %v6772_v32 = vld [vmem:[%s6049_s20 + $0x118] sm:$0xff]  ;;  %v1500_v55 = vmax.f32 %v6448_v30, 0.0 }
 0x266   : > { %9514 = vst [vmem:[#allocation77_spill] sm:$0xff] %v6748_v2  ;;  %1679 = vmatpush.msra.mxu3 %v1505_v3  ;;  %vm9170_vm14 = vcmp.gt.f32.partialorder %v6748_v2, 0.0  ;;  %v6768_v3 = vadd.f32 %v6232_v11, %v6379_v61  ;;  %v1499_v61 = vmax.f32 %v6444_v9, 0.0 }
 0x267   : > { %vm6757_vm12 = vmpackc.low %vm9170_vm14, %vm9171_vm15  ;;  %9518 = vst [vmem:[#allocation79_spill] sm:$0xff] %v6764_v24  ;;  %vm9179_vm14 = vcmp.gt.f32.partialorder %v6764_v24, 0.0 }
 0x268   : > { %v9516_v56 = vsel %vm6757_vm12, 4294967295, %v9515_v56  ;;  %1680 = vmatpush.msra.mxu3 %v1504_v58  ;;  %9519 = vst [vmem:[#allocation80_spill] sm:$0xff] %v6768_v3  ;;  %vm9177_vm15 = vcmp.gt.f32.partialorder %v6768_v3, 0.0  ;;  %5095 = vmatmul.msk.bf16.gmra.mxu0 %vm9198_vm4, %v6772_v32  ;;  %v9520_v58 = vmov 0 }
 0x269   : > { %9517 = vst [vmem:[#allocation78_spill] sm:$0xff] %v9516_v56  ;;  %vm6785_vm11 = vmpackc.low %vm9177_vm15, %vm9179_vm14 }
 0x26a   : > { %1681 = vmatpush.msra.mxu3 %v1503_v52  ;;  %v9521_v58 = vsel %vm6785_vm11, 4294967295, %v9520_v58  ;;  %vm9562_vm11 = vcmask 261120  }
 0x26b   : > { %v1232_v35 = vpop.f32.mrf.mxu0  ;;  %9522 = vst [vmem:[#allocation81_spill] sm:$0xff] %v9521_v58 }
 0x26c   : > { %1682 = vmatpush.msra.mxu3 %v1502_v14  ;;  %v6790_v52 = vadd.f32 %v6232_v11, %v1232_v35  ;;  %v6807_v35 = vadd.f32 %v6232_v11, %v6384_v12  ;;  %v9530_v12 = vmov 0 }
 0x26e   : > { %1683 = vmatpush.msra.mxu3 %v1501_v7  ;;  %9523 = vst [vmem:[#allocation82_spill] sm:$0xff] %v6790_v52  ;;  %vm9188_vm9 = vcmp.gt.f32.partialorder %v6790_v52, 0.0  ;;  %v1359_v7 = vpop.f32.mrf.mxu1  ;;  %vm9197_vm14 = vcmp.gt.f32.partialorder %v6807_v35, 0.0  ;;  %1608 = vmatmul.f32.vlgmr.msra.gmra.mxu1 %v1557_v28  ;;  %v9552_v28 = vmov 0 }
 0x26f   : > { %9528 = vst [vmem:[#allocation85_spill] sm:$0xff] %v6807_v35 }
 0x270   : > { %1684 = vmatpush.msra.mxu3 %v1500_v55  ;;  %v9525_v55 = vmov 0 }
 0x272   : > { %1685 = vmatpush.msra.mxu3 %v1499_v61  ;;  %v6810_v61 = vadd.f32 %v6232_v11, %v1359_v7 }
 0x273   : > { %v1234_v14 = vpop.f32.mrf.mxu0 }
 0x274   : > { %v6793_v37 = vadd.f32 %v6232_v11, %v1234_v14  ;;  %9529 = vst [vmem:[#allocation86_spill] sm:$0xff] %v6810_v61  ;;  %v5661_v14 = vld [vmem:[%s6049_s20 + $0x120] sm:$0xff]  ;;  %vm9192_vm6 = vcmp.gt.f32.partialorder %v6810_v61, 0.0 }
 0x276   : > { %9524 = vst [vmem:[#allocation83_spill] sm:$0xff] %v6793_v37  ;;  %vm9183_vm8 = vcmp.gt.f32.partialorder %v6793_v37, 0.0  ;;  %v1362_v5 = vpop.f32.mrf.mxu1 }
 0x277   : > { %vm6801_vm15 = vmpackc.low %vm9183_vm8, %vm9188_vm9 }
 0x278   : > { %v9526_v55 = vsel %vm6801_vm15, 4294967295, %v9525_v55  ;;  %5096 = vmatmul.msk.bf16.gmra.mxu0 %vm9198_vm4, %v5661_v14  ;;  %vm6820_vm8 = vmpackc.low %vm9192_vm6, %vm9197_vm14 }
 0x279   : > { %9527 = vst [vmem:[#allocation84_spill] sm:$0xff] %v9526_v55  ;;  %v9531_v12 = vsel %vm6820_vm8, 4294967295, %v9530_v12  ;;  %v5664_v55 = vld [vmem:[%s6049_s20 + $0x138] sm:$0xff] }
 0x27a   : > { %9532 = vst [vmem:[#allocation87_spill] sm:$0xff] %v9531_v12  ;;  %5794 = vmatpush.lsf.bf16.msrb.mxu3 %v5664_v55 }
 0x27b   : > { %v1237_v58 = vpop.f32.mrf.mxu0 }
 0x27c   : > { %v6825_v7 = vadd.f32 %v6232_v11, %v1237_v58  ;;  %v6841_v58 = vadd.f32 %v6232_v11, %v1362_v5  ;;  %v9541_v5 = vmov 0 }
 0x27e   : > { %9533 = vst [vmem:[#allocation88_spill] sm:$0xff] %v6825_v7  ;;  %vm9207_vm9 = vcmp.gt.f32.partialorder %v6825_v7, 0.0  ;;  %v1364_v57 = vpop.f32.mrf.mxu1  ;;  %vm9216_vm14 = vcmp.gt.f32.partialorder %v6841_v58, 0.0  ;;  %5795 = vmatpush.lsf.bf16.msrb.mxu3 %v5663_v38 }
 0x27f   : > { %9538 = vst [vmem:[#allocation91_spill] sm:$0xff] %v6841_v58  ;;  %v6844_v12 = vadd.f32 %v6232_v11, %v1364_v57 }
 0x281   : > { %9539 = vst [vmem:[#allocation92_spill] sm:$0xff] %v6844_v12  ;;  %vm9210_vm4 = vcmp.gt.f32.partialorder %v6844_v12, 0.0 }
 0x283   : > { %v1239_v59 = vpop.f32.mrf.mxu0 }
 0x284   : > { %v6828_v21 = vadd.f32 %v6232_v11, %v1239_v59  ;;  %v5662_v59 = vld [vmem:[%s6049_s20 + $0x128] sm:$0xff] }
 0x285   : > { %5796 = vmatpush.lsf.bf16.msrb.mxu3 %v5662_v59 }
 0x286   : > { %9534 = vst [vmem:[#allocation89_spill] sm:$0xff] %v6828_v21  ;;  %vm9203_vm5 = vcmp.gt.f32.partialorder %v6828_v21, 0.0  ;;  %v1367_v46 = vpop.f32.mrf.mxu1 }
 0x287   : > { %vm6836_vm6 = vmpackc.low %vm9203_vm5, %vm9207_vm9  ;;  %v6881_v45 = vadd.f32 %v6232_v11, %v1367_v46 }
 0x288   : > { %v9536_v41 = vsel %vm6836_vm6, 4294967295, %v9535_v41  ;;  %5097 = vmatmul.msk.bf16.gmra.mxu0 %vm9540_vm13, %v5662_v59  ;;  %vm6856_vm5 = vmpackc.low %vm9210_vm4, %vm9216_vm14  ;;  %v5665_v59 = vld [vmem:[%s6049_s20 + $0x140] sm:$0xff] }
 0x289   : > { %9537 = vst [vmem:[#allocation90_spill] sm:$0xff] %v9536_v41  ;;  %v9542_v5 = vsel %vm6856_vm5, 4294967295, %v9541_v5  ;;  %5797 = vmatpush.lsf.bf16.msrb.mxu3 %v5661_v14  ;;  %5763 = vmatpush.lsf.bf16.msrb.mxu1 %v5665_v59 }
 0x28a   : > { %9543 = vst [vmem:[#allocation93_spill] sm:$0xff] %v9542_v5 }
 0x28b   : > { %v1242_v56 = vpop.f32.mrf.mxu0  ;;  %9550 = vst [vmem:[#allocation98_spill] sm:$0xff] %v6881_v45 }
 0x28c   : > { %v6861_v57 = vadd.f32 %v6232_v11, %v1242_v56  ;;  %v9546_v56 = vmov 0 }
 0x28d   : > { %5798 = vmatpush.lsf.bf16.msrb.mxu3 %v6772_v32  ;;  %v9557_v32 = vmov 0 }
 0x28e   : > { %9544 = vst [vmem:[#allocation94_spill] sm:$0xff] %v6861_v57  ;;  %vm9218_vm13 = vcmp.gt.f32.partialorder %v6861_v57, 0.0  ;;  %v1369_v5 = vpop.f32.mrf.mxu1 }
 0x291   : > { %5799 = vmatpush.lsf.bf16.msrb.mxu3 %v6705_v10 }
 0x293   : > { %v1244_v41 = vpop.f32.mrf.mxu0 }
 0x294   : > { %v6864_v62 = vadd.f32 %v6232_v11, %v1244_v41  ;;  %v6878_v41 = vadd.f32 %v6232_v11, %v1369_v5 }
 0x295   : > { %5800 = vmatpush.lsf.bf16.msrb.mxu3 %v6626_v49  ;;  %v9563_v49 = vmov 0 }
 0x296   : > { %9545 = vst [vmem:[#allocation95_spill] sm:$0xff] %v6864_v62  ;;  %vm9217_vm9 = vcmp.gt.f32.partialorder %v6864_v62, 0.0  ;;  %vm9219_vm14 = vcmp.gt.f32.partialorder %v6878_v41, 0.0  ;;  %v1372_v20 = vpop.f32.mrf.mxu1 }
 0x297   : > { %vm6873_vm4 = vmpackc.low %vm9217_vm9, %vm9218_vm13  ;;  %9549 = vst [vmem:[#allocation97_spill] sm:$0xff] %v6878_v41  ;;  %vm9220_vm9 = vcmp.gt.f32.partialorder %v6881_v45, 0.0 }
 0x298   : > { %v9547_v56 = vsel %vm6873_vm4, 4294967295, %v9546_v56  ;;  %5098 = vmatmul.msk.bf16.gmra.mxu0 %vm9551_vm3, %v5663_v38  ;;  %vm6891_vm13 = vmpackc.low %vm9219_vm14, %vm9220_vm9 }
 0x299   : > { %9548 = vst [vmem:[#allocation96_spill] sm:$0xff] %v9547_v56  ;;  %v9553_v28 = vsel %vm6891_vm13, 4294967295, %v9552_v28  ;;  %5801 = vmatpush.lsf.bf16.msrb.mxu3 %v6553_v6 }
 0x29a   : > { %9554 = vst [vmem:[#allocation99_spill] sm:$0xff] %v9553_v28 }
 0x29b   : > { %v1247_v40 = vpop.f32.mrf.mxu0 }
 0x29c   : > { %v6896_v46 = vadd.f32 %v6232_v11, %v1247_v40 }
 0x29e   : > { %9555 = vst [vmem:[#allocation100_spill] sm:$0xff] %v6896_v46  ;;  %vm9222_vm3 = vcmp.gt.f32.partialorder %v6896_v46, 0.0  ;;  %v1374_v40 = vpop.f32.mrf.mxu1 }
 0x29f   : > { %v6914_v10 = vadd.f32 %v6232_v11, %v1374_v40 }
 0x2a1   : > { %9560 = vst [vmem:[#allocation103_spill] sm:$0xff] %v6914_v10  ;;  %vm9232_vm9 = vcmp.gt.f32.partialorder %v6914_v10, 0.0 }
 0x2a3   : > { %v1249_v14 = vpop.f32.mrf.mxu0 }
 0x2a4   : > { %v6900_v38 = vadd.f32 %v6232_v11, %v1249_v14  ;;  %v6919_v14 = vadd.f32 %v6232_v11, %v1372_v20 }
 0x2a6   : > { %9556 = vst [vmem:[#allocation101_spill] sm:$0xff] %v6900_v38  ;;  %vm9221_vm1 = vcmp.gt.f32.partialorder %v6900_v38, 0.0  ;;  %v1478_v19 = vmax.f32 %v6900_v38, 0.0  ;;  %v1473_v38 = vmax.f32 %v6825_v7, 0.0  ;;  %v7031_v7 = vld [vmem:[#allocation3] ss:$0 sm:$0xff] }
 0x2a7   : > { %vm6909_vm14 = vmpackc.low %vm9221_vm1, %vm9222_vm3  ;;  %9561 = vst [vmem:[#allocation104_spill] sm:$0xff] %v6919_v14  ;;  %vm9233_vm1 = vcmp.gt.f32.partialorder %v6919_v14, 0.0 }
 0x2a8   : > { %v9558_v32 = vsel %vm6909_vm14, 4294967295, %v9557_v32  ;;  %5099 = vmatmul.msk.bf16.gmra.mxu0 %vm9562_vm11, %v5664_v55  ;;  %vm6928_vm3 = vmpackc.low %vm9232_vm9, %vm9233_vm1  ;;  %v1559_v55 = vld.sshfl [vmem:[#allocation1 + $0x18] sm:$0xff pattern:$0x75316420] }
 0x2a9   : > { %9559 = vst [vmem:[#allocation102_spill] sm:$0xff] %v9558_v32  ;;  %v9564_v49 = vsel %vm6928_vm3, 4294967295, %v9563_v49  ;;  %v6941_v32 = vpop.f32.mrf.mxu1 }
 0x2aa   : > { %9565 = vst [vmem:[#allocation105_spill] sm:$0xff] %v9564_v49 }
 0x2ab   : > { %v1252_v5 = vpop.f32.mrf.mxu0  ;;  %1913 = vst [vmem:[#allocation1 + $0x10] ss:$2 sm:$0xff] %v6523_v60  ;;  %v1474_v60 = vmax.f32 %v6828_v21, 0.0 }
 0x2ac   : > { %v6933_v40 = vadd.f32 %v6232_v11, %v1252_v5  ;;  %v1477_v5 = vmax.f32 %v6896_v46, 0.0  ;;  %v1467_v46 = vmax.f32 %v6660_v16, 0.0 }
 0x2ae   : > { %9566 = vst [vmem:[#allocation106_spill] sm:$0xff] %v6933_v40  ;;  %v1479_v56 = vmax.f32 %v6933_v40, 0.0 }
 0x2b3   : > { %v1254_v6 = vpop.f32.mrf.mxu0 }
 0x2b4   : > { %v6936_v20 = vadd.f32 %v6232_v11, %v1254_v6  ;;  %v1476_v6 = vmax.f32 %v6864_v62, 0.0 }
 0x2b6   : > { %9567 = vst [vmem:[#allocation107_spill] sm:$0xff] %v6936_v20  ;;  %v1480_v28 = vmax.f32 %v6936_v20, 0.0  ;;  %v1475_v20 = vmax.f32 %v6861_v57, 0.0 }
 0x2b8   : > { %1632 = vmatpush.msra.mxu1 %v1480_v28  ;;  %5100 = vmatmul.msk.bf16.gmra.mxu0 %vm9562_vm11, %v5665_v59  ;;  %v1472_v59 = vmax.f32 %v6793_v37, 0.0  ;;  %v1513_v37 = vmax.f32 %v6542_v54, 0.0 }
 0x2ba   : > { %1633 = vmatpush.msra.mxu1 %v1479_v56  ;;  %v6952_v56 = vpop.f32.mrf.mxu1 }
 0x2bb   : > { %v1257_v49 = vpop.f32.mrf.mxu0 }
 0x2bc   : > { %1634 = vmatpush.msra.mxu1 %v1478_v19  ;;  %v6950_v28 = vadd.f32 %v6232_v11, %v1257_v49  ;;  %v9570_v49 = vmov 0 }
 0x2be   : > { %1635 = vmatpush.msra.mxu1 %v1477_v5  ;;  %9568 = vst [vmem:[#allocation108_spill] sm:$0xff] %v6950_v28  ;;  %vm9239_vm11 = vcmp.gt.f32.partialorder %v6950_v28, 0.0 }
 0x2c0   : > { %1636 = vmatpush.msra.mxu1 %v1476_v6  ;;  %v1469_v6 = vmax.f32 %v6740_v63, 0.0 }
 0x2c2   : > { %1637 = vmatpush.msra.mxu1 %v1475_v20  ;;  %v1471_v20 = vmax.f32 %v6790_v52, 0.0 }
 0x2c3   : > { %v1259_v40 = vpop.f32.mrf.mxu0 }
 0x2c4   : > { %v6956_v19 = vadd.f32 %v6232_v11, %v1259_v40  ;;  %1638 = vmatpush.msra.mxu1 %v1474_v60  ;;  %v1470_v40 = vmax.f32 %v6748_v2, 0.0  ;;  %v6972_v60 = vpop.f32.mrf.mxu1 }
 0x2c6   : > { %9569 = vst [vmem:[#allocation109_spill] sm:$0xff] %v6956_v19  ;;  %vm9238_vm9 = vcmp.gt.f32.partialorder %v6956_v19, 0.0  ;;  %1639 = vmatpush.msra.mxu1 %v1473_v38  ;;  %v1468_v38 = vmax.f32 %v6668_v29, 0.0 }
 0x2c7   : > { %vm6965_vm1 = vmpackc.low %vm9238_vm9, %vm9239_vm11 }
 0x2c8   : > { %v9571_v49 = vsel %vm6965_vm1, 4294967295, %v9570_v49  ;;  %1640 = vmatpush.msra.mxu1 %v1472_v59 }
 0x2c9   : > { %9572 = vst [vmem:[#allocation110_spill] sm:$0xff] %v9571_v49  ;;  %v1466_v49 = vmax.f32 %v6590_v48, 0.0 }
 0x2ca   : > { %1641 = vmatpush.msra.mxu1 %v1471_v20  ;;  %v1465_v20 = vmax.f32 %v6583_v0, 0.0 }
 0x2cb   : > { %v1262_v5 = vpop.f32.mrf.mxu0 }
 0x2cc   : > { %1642 = vmatpush.msra.mxu1 %v1470_v40  ;;  %v6978_v62 = vadd.f32 %v6232_v11, %v1262_v5  ;;  %v1528_v40 = vmax.f32 %v6914_v10, 0.0  ;;  %v1526_v5 = vmax.f32 %v6878_v41, 0.0 }
 0x2ce   : > { %1643 = vmatpush.msra.mxu1 %v1469_v6  ;;  %9573 = vst [vmem:[#allocation111_spill] sm:$0xff] %v6978_v62  ;;  %vm9245_vm9 = vcmp.gt.f32.partialorder %v6978_v62, 0.0  ;;  %v6987_v6 = vpop.f32.mrf.mxu1 }
 0x2d0   : > { %1644 = vmatpush.msra.mxu1 %v1468_v38 }
 0x2d2   : > { %1645 = vmatpush.msra.mxu1 %v1467_v46  ;;  %v9575_v46 = vmov 0 }
 0x2d3   : > { %v1264_v59 = vpop.f32.mrf.mxu0 }
 0x2d4   : > { %v6982_v57 = vadd.f32 %v6232_v11, %v1264_v59  ;;  %1646 = vmatpush.msra.mxu1 %v1466_v49  ;;  %v1527_v49 = vmax.f32 %v6919_v14, 0.0  ;;  %v1525_v59 = vmax.f32 %v6881_v45, 0.0  ;;  %v563_v14 = vld [vmem:[%s9092_s2 + $0x10] sm:$0xff] }
 0x2d5   : > { %1553 = vst [vmem:[#allocation1 + $0x20] ss:$2 sm:$0xff] %v563_v14 }
 0x2d6   : > { %9574 = vst [vmem:[#allocation112_spill] sm:$0xff] %v6982_v57  ;;  %vm9244_vm11 = vcmp.gt.f32.partialorder %v6982_v57, 0.0  ;;  %1647 = vmatpush.msra.mxu1 %v1465_v20  ;;  %v1523_v20 = vmax.f32 %v6841_v58, 0.0  ;;  %v7002_v10 = vpop.f32.mrf.mxu1 }
 0x2d7   : > { %1648 = vmatmul.f32.vlgmr.msra.gmra.mxu1 %v1559_v55  ;;  %vm6993_vm8 = vmpackc.low %vm9244_vm11, %vm9245_vm9  ;;  %v1524_v55 = vmax.f32 %v6844_v12, 0.0 }
 0x2d8   : > { %v9576_v46 = vsel %vm6993_vm8, 4294967295, %v9575_v46  ;;  %1692 = vmatpush.msra.mxu1 %v1528_v40 }
 0x2d9   : > { %9577 = vst [vmem:[#allocation113_spill] sm:$0xff] %v9576_v46  ;;  %v1522_v46 = vmax.f32 %v6810_v61, 0.0 }
 0x2da   : > { %1693 = vmatpush.msra.mxu1 %v1527_v49  ;;  %v1521_v49 = vmax.f32 %v6807_v35, 0.0 }
 0x2db   : > { %v1267_v38 = vpop.f32.mrf.mxu0 }
 0x2dc   : > { %1694 = vmatpush.msra.mxu1 %v1526_v5  ;;  %v7006_v21 = vadd.f32 %v6232_v11, %v1267_v38  ;;  %v1520_v5 = vmax.f32 %v6768_v3, 0.0  ;;  %v9580_v38 = vmov 0 }
 0x2de   : > { %1695 = vmatpush.msra.mxu1 %v1525_v59  ;;  %9578 = vst [vmem:[#allocation114_spill] sm:$0xff] %v7006_v21  ;;  %vm9251_vm11 = vcmp.gt.f32.partialorder %v7006_v21, 0.0  ;;  %v1519_v59 = vmax.f32 %v6764_v24, 0.0 }
 0x2e0   : > { %1696 = vmatpush.msra.mxu1 %v1524_v55  ;;  %v7025_v55 = vpop.f32.mrf.mxu1 }
 0x2e2   : > { %1697 = vmatpush.msra.mxu1 %v1523_v20  ;;  %v1517_v20 = vmax.f32 %v6693_v27, 0.0  ;;  %v1561_v27 = vld.sshfl [vmem:[#allocation1 + $0x28] sm:$0xff pattern:$0x75316420] }
 0x2e3   : > { %v1269_v40 = vpop.f32.mrf.mxu0 }
 0x2e4   : > { %v7010_v41 = vadd.f32 %v6232_v11, %v1269_v40  ;;  %1698 = vmatpush.msra.mxu1 %v1522_v46  ;;  %v1518_v11 = vmax.f32 %v6697_v4, 0.0  ;;  %v1516_v40 = vmax.f32 %v6618_v1, 0.0  ;;  %v1560_v4 = vld.sshfl [vmem:[#allocation1 + $0x20] sm:$0xff pattern:$0x75316420] }
 0x2e5   : > { %1915 = vst [vmem:[#allocation1 + $0x20] ss:$2 sm:$0xff] %v563_v14 }
 0x2e6   : > { %9579 = vst [vmem:[#allocation115_spill] sm:$0xff] %v7010_v41  ;;  %vm9250_vm9 = vcmp.gt.f32.partialorder %v7010_v41, 0.0  ;;  %1699 = vmatpush.msra.mxu1 %v1521_v49  ;;  %v1515_v49 = vmax.f32 %v6614_v50, 0.0 }
 0x2e7   : > { %vm7019_vm5 = vmpackc.low %vm9250_vm9, %vm9251_vm11 }
 0x2e8   : > { %v9581_v38 = vsel %vm7019_vm5, 4294967295, %v9580_v38  ;;  %1700 = vmatpush.msra.mxu1 %v1520_v5 }
 0x2e9   : > { %9582 = vst [vmem:[#allocation116_spill] sm:$0xff] %v9581_v38  ;;  %v1514_v38 = vmax.f32 %v6546_v8, 0.0 }
 0x2ea   : > { %1701 = vmatpush.msra.mxu1 %v1519_v59 }
 0x2eb   : > { %v1272_v46 = vpop.f32.mrf.mxu0 }
 0x2ec   : > { %1702 = vmatpush.msra.mxu1 %v1518_v11  ;;  %v7034_v5 = vadd.f32 %v7031_v7, %v1272_v46  ;;  %v7040_v11 = vpop.f32.mrf.mxu1  ;;  %v9585_v46 = vmov 0 }
 0x2ee   : > { %1703 = vmatpush.msra.mxu1 %v1517_v20  ;;  %9583 = vst [vmem:[#allocation117_spill] sm:$0xff] %v7034_v5  ;;  %vm9257_vm9 = vcmp.gt.f32.partialorder %v7034_v5, 0.0 }
 0x2f0   : > { %1704 = vmatpush.msra.mxu1 %v1516_v40 }
 0x2f2   : > { %1705 = vmatpush.msra.mxu1 %v1515_v49 }
 0x2f3   : > { %v1274_v59 = vpop.f32.mrf.mxu0 }
 0x2f4   : > { %v7038_v52 = vadd.f32 %v7031_v7, %v1274_v59  ;;  %1706 = vmatpush.msra.mxu1 %v1514_v38  ;;  %v7052_v40 = vpop.f32.mrf.mxu1 }
 0x2f6   : > { %9584 = vst [vmem:[#allocation118_spill] sm:$0xff] %v7038_v52  ;;  %vm9252_vm11 = vcmp.gt.f32.partialorder %v7038_v52, 0.0  ;;  %1707 = vmatpush.msra.mxu1 %v1513_v37  ;;  %v9590_v37 = vmov 0 }
 0x2f7   : > { %vm7048_vm13 = vmpackc.low %vm9252_vm11, %vm9257_vm9 }
 0x2f8   : > { %v9586_v46 = vsel %vm7048_vm13, 4294967295, %v9585_v46 }
 0x2f9   : > { %9587 = vst [vmem:[#allocation119_spill] sm:$0xff] %v9586_v46 }
 0x2fb   : > { %v1277_v20 = vpop.f32.mrf.mxu0 }
 0x2fc   : > { %v7055_v38 = vadd.f32 %v7031_v7, %v1277_v20  ;;  %v7070_v46 = vpop.f32.mrf.mxu1 }
 0x2fe   : > { %9588 = vst [vmem:[#allocation120_spill] sm:$0xff] %v7055_v38  ;;  %vm9287_vm3 = vcmp.gt.f32.partialorder %v7055_v38, 0.0 }
 0x303   : > { %v1279_v49 = vpop.f32.mrf.mxu0 }
 0x304   : > { %v7058_v59 = vadd.f32 %v7031_v7, %v1279_v49  ;;  %v7075_v63 = vpop.f32.mrf.mxu1 }
 0x306   : > { %9589 = vst [vmem:[#allocation121_spill] sm:$0xff] %v7058_v59  ;;  %vm9258_vm1 = vcmp.gt.f32.partialorder %v7058_v59, 0.0 }
 0x307   : > { %vm7066_vm11 = vmpackc.low %vm9258_vm1, %vm9287_vm3 }
 0x308   : > { %v9591_v37 = vsel %vm7066_vm11, 4294967295, %v9590_v37  ;;  %vm1836_vm11 = vcmask 1043456  }
 0x309   : > { %9592 = vst [vmem:[#allocation122_spill] sm:$0xff] %v9591_v37  ;;  %v9595_v37 = vmov 0 }
 0x30b   : > { %v1282_v20 = vpop.f32.mrf.mxu0 }
 0x30c   : > { %v7073_v2 = vadd.f32 %v7031_v7, %v1282_v20  ;;  %v7090_v16 = vpop.f32.mrf.mxu1 }
 0x30e   : > { %9593 = vst [vmem:[#allocation123_spill] sm:$0xff] %v7073_v2  ;;  %vm9286_vm9 = vcmp.gt.f32.partialorder %v7073_v2, 0.0 }
 0x313   : > { %v1284_v49 = vpop.f32.mrf.mxu0 }
 0x314   : > { %v7078_v29 = vadd.f32 %v7031_v7, %v1284_v49  ;;  %v7092_v0 = vpop.f32.mrf.mxu1 }
 0x316   : > { %9594 = vst [vmem:[#allocation124_spill] sm:$0xff] %v7078_v29  ;;  %vm9284_vm8 = vcmp.gt.f32.partialorder %v7078_v29, 0.0 }
 0x317   : > { %vm7086_vm1 = vmpackc.low %vm9284_vm8, %vm9286_vm9 }
 0x318   : > { %v9596_v37 = vsel %vm7086_vm1, 4294967295, %v9595_v37  ;;  %vm9631_vm1 = vcmask 11264  }
 0x319   : > { %9597 = vst [vmem:[#allocation125_spill] sm:$0xff] %v9596_v37 }
 0x31b   : > { %v1287_v20 = vpop.f32.mrf.mxu0 }
 0x31c   : > { %v7097_v45 = vpop.f32.mrf.mxu1  ;;  %v7111_v24 = vadd.f32 %v7031_v7, %v1287_v20  ;;  %v1492_v20 = vmax.f32 %v7078_v29, 0.0 }
 0x31e   : > { %9601 = vst [vmem:[#allocation129_spill] sm:$0xff] %v7111_v24 }
 0x323   : > { %v1289_v48 = vpop.f32.mrf.mxu0 }
 0x324   : > { %v7106_v61 = vadd.f32 %v7031_v7, %v1289_v48  ;;  %v1409_v48 = vpop.f32.mrf.mxu1 }
 0x326   : > { %9600 = vst [vmem:[#allocation128_spill] sm:$0xff] %v7106_v61 }
 0x32b   : > { %v1292_v49 = vpop.f32.mrf.mxu0 }
 0x32c   : > { %v7100_v12 = vadd.f32 %v7031_v7, %v1292_v49  ;;  %v564_v49 = vld [vmem:[%s9092_s2 + $0x18] sm:$0xff] }
 0x32d   : > { %1555 = vst [vmem:[#allocation1 + $0x30] ss:$2 sm:$0xff] %v564_v49 }
 0x32e   : > { %9598 = vst [vmem:[#allocation126_spill] sm:$0xff] %v7100_v12  ;;  %v1495_v3 = vmax.f32 %v7100_v12, 0.0  ;;  %v1493_v12 = vmax.f32 %v7111_v24, 0.0 }
 0x333   : > { %v1294_v58 = vpop.f32.mrf.mxu0 }
 0x334   : > { %v7103_v37 = vadd.f32 %v7031_v7, %v1294_v58  ;;  %v1494_v58 = vmax.f32 %v7106_v61, 0.0  ;;  %v1562_v14 = vld.sshfl [vmem:[#allocation1 + $0x30] sm:$0xff pattern:$0x75316420] }
 0x335   : > { %1708 = vmatmul.f32.vlgmr.msra.gmra.mxu1 %v1562_v14  ;;  %v1485_v14 = vmax.f32 %v7006_v21, 0.0 }
 0x336   : > { %9599 = vst [vmem:[#allocation127_spill] sm:$0xff] %v7103_v37  ;;  %v1496_v35 = vmax.f32 %v7103_v37, 0.0  ;;  %v1490_v37 = vmax.f32 %v7058_v59, 0.0 }
 0x338   : > { %1652 = vmatpush.msra.mxu2 %v1496_v35  ;;  %v1491_v35 = vmax.f32 %v7073_v2, 0.0 }
 0x33a   : > { %1653 = vmatpush.msra.mxu2 %v1495_v3 }
 0x33b   : > { %v1297_v25 = vpop.f32.mrf.mxu0 }
 0x33c   : > { %1654 = vmatpush.msra.mxu2 %v1494_v58  ;;  %v7122_v3 = vadd.f32 %v7031_v7, %v1297_v25  ;;  %v1489_v58 = vmax.f32 %v7055_v38, 0.0  ;;  %v1487_v25 = vmax.f32 %v7034_v5, 0.0 }
 0x33e   : > { %1655 = vmatpush.msra.mxu2 %v1493_v12  ;;  %v1412_v12 = vpop.f32.mrf.mxu1  ;;  %vm9309_vm8 = vcmp.gt.f32.partialorder %v7122_v3, 0.0 }
 0x33f   : > { %v7151_v59 = vadd.f32 %v7031_v7, %v1412_v12 }
 0x340   : > { %1656 = vmatpush.msra.mxu2 %v1492_v20  ;;  %v1488_v20 = vmax.f32 %v7038_v52, 0.0 }
 0x341   : > { %9606 = vst [vmem:[#allocation132_spill] sm:$0xff] %v7151_v59  ;;  %v1543_v12 = vmax.f32 %v7151_v59, 0.0 }
 0x342   : > { %1657 = vmatpush.msra.mxu2 %v1491_v35  ;;  %v1497_v35 = vmax.f32 %v7122_v3, 0.0 }
 0x343   : > { %v1299_v61 = vpop.f32.mrf.mxu0 }
 0x344   : > { %1658 = vmatpush.msra.mxu2 %v1490_v37  ;;  %v7126_v24 = vadd.f32 %v7031_v7, %v1299_v61  ;;  %v9602_v61 = vmov 0  ;;  %v1486_v37 = vmax.f32 %v7010_v41, 0.0 }
 0x346   : > { %1659 = vmatpush.msra.mxu2 %v1489_v58  ;;  %v1498_v29 = vmax.f32 %v7126_v24, 0.0  ;;  %vm9304_vm9 = vcmp.gt.f32.partialorder %v7126_v24, 0.0  ;;  %v1484_v58 = vmax.f32 %v6982_v57, 0.0 }
 0x347   : > { %vm7138_vm3 = vmpackc.low %vm9304_vm9, %vm9309_vm8  ;;  %vm9621_vm9 = vcmask 261120   ;;  %vm9312_vm8 = vcmask 11264  }
 0x348   : > { %1660 = vmatpush.msra.mxu2 %v1488_v20  ;;  %1686 = vmatpush.msra.mxu3 %v1498_v29  ;;  %v9603_v61 = vsel %vm7138_vm3, 4294967295, %v9602_v61  ;;  %v1414_v29 = vpop.f32.mrf.mxu1  ;;  %v1483_v20 = vmax.f32 %v6978_v62, 0.0  ;;  %vm9632_vm3 = vcmask 15360  }
 0x349   : > { %9604 = vst [vmem:[#allocation130_spill] sm:$0xff] %v9603_v61  ;;  %v7147_v2 = vadd.f32 %v7031_v7, %v1414_v29  ;;  %v7160_v29 = vadd.f32 %v7031_v7, %v7097_v45  ;;  %v7175_v45 = vadd.f32 %v7031_v7, %v7075_v63  ;;  %v7190_v63 = vadd.f32 %v7031_v7, %v7040_v11 }
 0x34a   : > { %1661 = vmatpush.msra.mxu2 %v1487_v25  ;;  %1687 = vmatpush.msra.mxu3 %v1497_v35  ;;  %v1482_v25 = vmax.f32 %v6956_v19, 0.0  ;;  %v7155_v35 = vadd.f32 %v7031_v7, %v1409_v48  ;;  %v7205_v11 = vadd.f32 %v7031_v7, %v6987_v6  ;;  %v7220_v6 = vadd.f32 %v7031_v7, %v6941_v32  ;;  %v7231_v32 = vld [vmem:[#allocation4 + $0x8] sm:$0xff] }
 0x34b   : > { %1688 = vmatmul.f32.vlgmr.msra.gmra.mxu3 %v1561_v27  ;;  %9605 = vst [vmem:[#allocation131_spill] sm:$0xff] %v7147_v2  ;;  %v1481_v27 = vmax.f32 %v6950_v28, 0.0 }
 0x34c   : > { %1662 = vmatpush.msra.mxu2 %v1486_v37  ;;  %9607 = vst [vmem:[#allocation133_spill] sm:$0xff] %v7155_v35  ;;  %v1544_v37 = vmax.f32 %v7147_v2, 0.0  ;;  %v1542_v48 = vmax.f32 %v7155_v35, 0.0  ;;  %v4007_v2 = vld [vmem:[#allocation5] sm:$0x1] }
 0x34d   : > { %9608 = vst [vmem:[#allocation134_spill] sm:$0xff] %v7160_v29 }
 0x34e   : > { %1663 = vmatpush.msra.mxu2 %v1485_v14  ;;  %v1563_v14 = vld.sshfl [vmem:[#allocation1 + $0x38] sm:$0xff pattern:$0x75316420]  ;;  %9611 = vst [vmem:[#allocation137_spill] sm:$0xff] %v7175_v45 }
 0x34f   : > { %1917 = vst [vmem:[#allocation1 + $0x30] ss:$2 sm:$0xff] %v564_v49  ;;  %v1541_v49 = vmax.f32 %v7160_v29, 0.0 }
 0x350   : > { %1664 = vmatpush.msra.mxu2 %v1484_v58  ;;  %v1922_v58 = vld.sshfl [vmem:[#allocation1 + $0x20] sm:$0xff pattern:$0x75316420]  ;;  %9614 = vst [vmem:[#allocation140_spill] sm:$0xff] %v7190_v63 }
 0x351   : > { %2062 = vxpose.xlu2.b32.start.end [1/1] (short) %v1922_v58, 128  ;;  %9617 = vst [vmem:[#allocation143_spill] sm:$0xff] %v7205_v11 }
 0x352   : > { %1665 = vmatpush.msra.mxu2 %v1483_v20  ;;  %v7165_v20 = vadd.f32 %v7031_v7, %v7092_v0  ;;  %v7180_v0 = vadd.f32 %v7031_v7, %v7070_v46  ;;  %v7195_v46 = vadd.f32 %v7031_v7, %v7025_v55  ;;  %v7210_v55 = vadd.f32 %v7031_v7, %v6972_v60 }
 0x353   : > { %9620 = vst [vmem:[#allocation146_spill] sm:$0xff] %v7220_v6 }
 0x354   : > { %1666 = vmatpush.msra.mxu2 %v1482_v25  ;;  %9609 = vst [vmem:[#allocation135_spill] sm:$0xff] %v7165_v20  ;;  %v1540_v25 = vmax.f32 %v7165_v20, 0.0  ;;  %v1537_v58 = vmax.f32 %v7180_v0, 0.0 }
 0x355   : > { %9612 = vst [vmem:[#allocation138_spill] sm:$0xff] %v7180_v0 }
 0x356   : > { %1667 = vmatpush.msra.mxu2 %v1481_v27  ;;  %9615 = vst [vmem:[#allocation141_spill] sm:$0xff] %v7195_v46 }
 0x357   : > { %1668 = vmatmul.f32.vlgmr.msra.gmra.mxu2 %v1560_v4  ;;  %v7170_v4 = vadd.f32 %v7031_v7, %v7090_v16  ;;  %v7185_v16 = vadd.f32 %v7031_v7, %v7052_v40  ;;  %v7200_v40 = vadd.f32 %v7031_v7, %v7002_v10  ;;  %9618 = vst [vmem:[#allocation144_spill] sm:$0xff] %v7210_v55 }
 0x358   : > { %1712 = vmatpush.msrb.mxu2 %v1544_v37  ;;  %v1538_v37 = vmax.f32 %v7175_v45, 0.0  ;;  %v7215_v10 = vadd.f32 %v7031_v7, %v6952_v56  ;;  %v7225_v56 = vld [vmem:[#allocation4 + $0x18] sm:$0xff]  ;;  %v1589_v7 = vpop.f32.mrf.mxu1 }
 0x359   : > { %9610 = vst [vmem:[#allocation136_spill] sm:$0xff] %v7170_v4  ;;  %v1539_v27 = vmax.f32 %v7170_v4, 0.0  ;;  %1755 = vmatpush.msra.mxu3 %v7225_v56  ;;  %v1788_v4 = vld [vmem:[%s6054_s23] sm:$0xf] }
 0x35a   : > { %1713 = vmatpush.msrb.mxu2 %v1543_v12  ;;  %9613 = vst [vmem:[#allocation139_spill] sm:$0xff] %v7185_v16  ;;  %v1536_v12 = vmax.f32 %v7185_v16, 0.0  ;;  %v1530_v60 = vmax.f32 %v7215_v10, 0.0 }
 0x35b   : > { %9616 = vst [vmem:[#allocation142_spill] sm:$0xff] %v7200_v40 }
 0x35c   : > { %1714 = vmatpush.msrb.mxu2 %v1542_v48  ;;  %v1535_v48 = vmax.f32 %v7190_v63, 0.0  ;;  %9619 = vst [vmem:[#allocation145_spill] sm:$0xff] %v7215_v10  ;;  %v5856_v63 = vld [vmem:[#allocation5] ss:$0 sm:$0xff] }
 0x35e   : > { %1715 = vmatpush.msrb.mxu2 %v1541_v49  ;;  %v1534_v49 = vmax.f32 %v7195_v46, 0.0 }
 0x360   : > { %1716 = vmatpush.msrb.mxu2 %v1540_v25  ;;  %v1533_v25 = vmax.f32 %v7200_v40, 0.0 }
 0x362   : > { %1717 = vmatpush.msrb.mxu2 %v1539_v27  ;;  %v1532_v27 = vmax.f32 %v7205_v11, 0.0 }
 0x364   : > { %1718 = vmatpush.msrb.mxu2 %v1538_v37  ;;  %v1531_v37 = vmax.f32 %v7210_v55, 0.0 }
 0x366   : > { %1719 = vmatpush.msrb.mxu2 %v1537_v58  ;;  %v1529_v58 = vmax.f32 %v7220_v6, 0.0 }
 0x368   : > { %1720 = vmatpush.msrb.mxu2 %v1536_v12  ;;  %v7227_v12 = vld [vmem:[#allocation4 + $0x10] sm:$0xff] }
 0x369   : > { %1756 = vmatpush.msra.mxu3 %v7227_v12 }
 0x36a   : > { %1721 = vmatpush.msrb.mxu2 %v1535_v48  ;;  %v7234_v48 = vld [vmem:[#allocation4] sm:$0xff] }
 0x36b   : > { %1757 = vmatpush.msra.mxu3 %v7231_v32 }
 0x36c   : > { %1722 = vmatpush.msrb.mxu2 %v1534_v49  ;;  %v1609_v49 = vpop.f32.mrf.mxu1 }
 0x36d   : > { %1758 = vmatpush.msra.mxu3 %v7234_v48 }
 0x36e   : > { %1723 = vmatpush.msrb.mxu2 %v1533_v25  ;;  %v1610_v25 = vadd.f32 %v1609_v49, %v1589_v7 }
 0x370   : > { %1724 = vmatpush.msrb.mxu2 %v1532_v27 }
 0x372   : > { %1725 = vmatpush.msrb.mxu2 %v1531_v37 }
 0x374   : > { %1726 = vmatpush.msrb.mxu2 %v1530_v60  ;;  %v1649_v37 = vpop.f32.mrf.mxu1 }
 0x376   : > { %1727 = vmatpush.msrb.mxu2 %v1529_v58 }
 0x377   : > { %1728 = vmatmul.f32.vlgmr.msrb.gmra.mxu2 %v1563_v14  ;;  %v1629_v14 = vpop.f32.mrf.mxu3 }
 0x378   : > { %v1630_v27 = vadd.f32 %v1629_v14, %v1610_v25 }
 0x37a   : > { %v1650_v58 = vadd.f32 %v1649_v37, %v1630_v27 }
 0x3b2   : > { %v1709_v55 = vpop.f32.mrf.mxu1 }
 0x3ce   : > { %v1689_v6 = vpop.f32.mrf.mxu3 }
 0x3da   : > { %v1669_v60 = vpop.f32.mrf.mxu2 }
 0x3db   : > { %v1670_v10 = vadd.f32 %v1669_v60, %v1650_v58 }
 0x3dd   : > { %v1690_v11 = vadd.f32 %v1689_v6, %v1670_v10 }
 0x3df   : > { %v1710_v40 = vadd.f32 %v1709_v55, %v1690_v11  ;;  %v1918_v11 = vld.sshfl [vmem:[#allocation1] sm:$0xff pattern:$0x75316420] }
 0x3e0   : > { %1934 = vxpose.xlu1.b32.start.end [1/1] (short) %v1918_v11, 128 }
 0x3fa   : > { %v1729_v46 = vpop.f32.mrf.mxu2 }
 0x3fb   : > { %v1730_v16 = vadd.f32 %v1729_v46, %v1710_v40  ;;  %v1920_v46 = vld.sshfl [vmem:[#allocation1 + $0x10] sm:$0xff pattern:$0x75316420] }
 0x3fd   : > { %1791 = vxpose.xlu2.b32.start.end [1/1] (short) (narrow) %v1730_v16, 32  ;;  %5124 = vmatmul.msk.f32.vlgmr.msra.gmra.mxu3 %vm9621_vm9, %v1730_v16  ;;  %v7240_v16 = vpop.trf.xlu2  ;;  %vm9313_vm9 = vcmask 15360  }
 0x3fe   : > { %9622 = vst [vmem:[#allocation147_spill] sm:$0xff] %v7240_v16  ;;  %5130 = vmatpush.xpose.msk.msra.mxu1 %vm9313_vm9, %v7225_v56 }
 0x402   : > { %5131 = vmatpush.xpose.msk.msra.mxu1 %vm9313_vm9, %v7227_v12 }
 0x405   : > { %v7242_v40 = vpop.trf.xlu2 }
 0x406   : > { %9623 = vst [vmem:[#allocation148_spill] sm:$0xff] %v7242_v40  ;;  %5132 = vmatpush.xpose.msk.msra.mxu1 %vm9313_vm9, %v7231_v32 }
 0x40a   : > { %5133 = vmatpush.xpose.msk.msra.mxu1 %vm9313_vm9, %v7234_v48 }
 0x480   : > { %v1760_v45 = vpop.f32.mrf.mxu3 }
 0x481   : > { %v1761_v0 = vadd.f32 %v5856_v63, %v1760_v45  ;;  %v7244_v45 = vpop.trf.xlu2 }
 0x482   : > { %9624 = vst [vmem:[#allocation149_spill] sm:$0xff] %v7244_v45 }
 0x483   : > { %v1764_v7 = vsel %vm9312_vm8, %v1761_v0, -inf }
 0x484   : > { %1765 = vmax.xlane.f32.xlu0 %v1764_v7 }
 0x4f7   : > { %v1766_v49 = vpop.xlane.xlu0 %1765 }
 0x4f8   : > { %v1767_v25 = vsub.f32 %v1761_v0, %v1766_v49  ;;  %v7250_v0 = vpop.trf.xlu2 }
 0x4f9   : > { %9625 = vst [vmem:[#allocation150_spill] sm:$0xff] %v7250_v0 }
 0x4fa   : > { %v1768_v14 = vmul.f32 1.442695, %v1767_v25 }
 0x4fc   : > { %5857 = vpow2.f32 %v1768_v14 }
 0x500   : > { %v7256_v63 = vpop.trf.xlu2 }
 0x501   : > { %9626 = vst [vmem:[#allocation151_spill] sm:$0xff] %v7256_v63  ;;  %v3971_v63 = vmul.f32 0.0005, %v7234_v48 }
 0x502   : > { %v5858_v27 = vpop.eup %5857 }
 0x503   : > { %v1770_v10 = vsel %vm9312_vm8, %v5858_v27, 0.0 }
 0x504   : > { %1771 = vadd.xlane.f32.xlu0 %v1770_v10 }
 0x508   : > { %v7258_v55 = vpop.trf.xlu2 }
 0x509   : > { %9627 = vst [vmem:[#allocation152_spill] sm:$0xff] %v7258_v55 }
 0x510   : > { %v7260_v37 = vpop.trf.xlu2 }
 0x511   : > { %9628 = vst [vmem:[#allocation153_spill] sm:$0xff] %v7260_v37 }
 0x518   : > { %v7262_v11 = vpop.trf.xlu2 }
 0x519   : > { %9629 = vst [vmem:[#allocation154_spill] sm:$0xff] %v7262_v11  ;;  %v5867_v11 = vld [vmem:[%s6049_s20 + $0xd0] sm:$0xff] }
 0x520   : > { %v7265_v61 = vpop.trf.xlu2 }
 0x521   : > { %9630 = vst [vmem:[#allocation155_spill] sm:$0xff] %v7265_v61  ;;  %v1924_v61 = vld.sshfl [vmem:[#allocation1 + $0x30] sm:$0xff pattern:$0x75316420] }
 0x522   : > { %2126 = vxpose.xlu2.b32.start.end [1/1] (short) %v1924_v61, 128 }
 0x52d   : > { %1998 = vxpose.xlu0.b32.start.end [1/1] (short) %v1920_v46, 128 }
 0x577   : > { %v1772_v6 = vpop.xlane.xlu0 %1771 }
 0x578   : > { %5859 = vrcp.f32 %v1772_v6  ;;  %v1784_v49 = vand.u32 2147483648, %v1772_v6  ;;  %v1782_v14 = vand.u32 2147483647, %v1772_v6  ;;  %vm1778_vm5 = vweird.f32 %v1772_v6 }
 0x57a   : > { %v1785_v46 = vor.u32 1.1754944e-38, %v1784_v49  ;;  %vm1783_vm13 = vcmp.eq.f32.partialorder %v1782_v14, 8.507059e+37 }
 0x57e   : > { %v5860_v60 = vpop.eup %5859 }
 0x57f   : > { %v1774_v58 = vmul.f32 %v5860_v60, %v1772_v6  ;;  %vm1779_vm8 = vweird.f32 %v5860_v60 }
 0x580   : > { %vm1780_vm9 = vmor %vm1778_vm5, %vm1779_vm8  ;;  %vm4005_vm5 = vcmask 8192   ;;  %vm9392_vm8 = vcmask 31744  }
 0x581   : > { %v1775_v7 = vsub.f32 1.0, %v1774_v58  ;;  %v1919_v58 = vld.sshfl [vmem:[#allocation1 + $0x8] sm:$0xff pattern:$0x75316420] }
 0x582   : > { %1966 = vxpose.xlu1.b32.start.end [1/1] (short) %v1919_v58, 128 }
 0x583   : > { %v1776_v25 = vmul.f32 %v5860_v60, %v1775_v7 }
 0x585   : > { %v1777_v10 = vadd.f32 %v5860_v60, %v1776_v25  ;;  %v3999_v25 = vld [vmem:[#allocation9] sm:$0x1] }
 0x587   : > { %v1781_v38 = vsel %vm1780_vm9, %v5860_v60, %v1777_v10 }
 0x588   : > { %v1786_v20 = vsel %vm1783_vm13, %v1785_v46, %v1781_v38  ;;  %v7270_v38 = vpop.trf.xlu2 }
 0x589   : > { %v1787_v35 = vmul.f32 %v5858_v27, %v1786_v20  ;;  %9633 = vst [vmem:[#allocation156_spill] sm:$0xff] %v7270_v38 }
 0x58b   : > { %v1789_v29 = vsub.f32 %v1787_v35, %v1788_v4  ;;  %v4002_v35 = vld [vmem:[#allocation5] sm:$0x1] }
 0x58c   : > { %v4003_v14 = vmul.f32 0.0005, %v4002_v35 }
 0x58d   : > { %v1790_v52 = vmul.f32 0.25, %v1789_v29  ;;  %v4000_v29 = vmul.f32 0.9, %v3999_v25  ;;  %v1950_v25 = vpop.trf.xlu1 }
 0x58f   : > { %5125 = vmatpush.msk.msra.mxu3 %vm1836_vm11, %v1790_v52  ;;  %v1869_v6 = vsel %vm9631_vm1, %v1790_v52, 0.0  ;;  %5134 = vmatmul.msk.f32.vlgmr.msra.gmra.mxu1 %vm9632_vm3, %v1790_v52  ;;  %vm9639_vm1 = vmmov %vm9632_vm3 }
 0x590   : > { %v1870_v7 = vrot.slane %v1869_v6, 4  ;;  %v7272_v46 = vpop.trf.xlu2  ;;  %vm9640_vm13 = vmmov %vm9639_vm1 }
 0x591   : > { %9634 = vst [vmem:[#allocation157_spill] sm:$0xff] %v7272_v46  ;;  %vm9641_vm3 = vmmov %vm9639_vm1 }
 0x592   : > { %v1871_v49 = vadd.f32 %v1870_v7, %v1869_v6  ;;  %v1923_v7 = vld.sshfl [vmem:[#allocation1 + $0x28] sm:$0xff pattern:$0x75316420]  ;;  %vm9643_vm9 = vmmov %vm9639_vm1 }
 0x594   : > { %v1872_v60 = vrot.slane %v1871_v49, 2 }
 0x595   : > { %v1951_v35 = vpop.trf.xlu1 }
 0x596   : > { %v1873_v20 = vadd.f32 %v1872_v60, %v1871_v49 }
 0x598   : > { %v1874_v4 = vrot.slane %v1873_v20, 1  ;;  %v7274_v6 = vpop.trf.xlu2 }
 0x599   : > { %9635 = vst [vmem:[#allocation158_spill] sm:$0xff] %v7274_v6 }
 0x59a   : > { %v1875_v27 = vadd.f32 %v1874_v4, %v1873_v20 }
 0x59c   : > { %v4001_v10 = vadd.f32 %v4000_v29, %v1875_v27 }
 0x59d   : > { %v1952_v27 = vpop.trf.xlu1 }
 0x59e   : > { %v4004_v58 = vadd.f32 %v4003_v14, %v4001_v10 }
 0x5a0   : > { %4006 = vst.msk [vmem:[#allocation9] sm:$0x1] %vm4005_vm5, %v4004_v58  ;;  %v4008_v52 = vmul.f32 0.01, %v4004_v58  ;;  %v2090_v49 = vpop.trf.xlu2 }
 0x5a2   : > { %v4009_v59 = vsub.f32 %v4007_v2, %v4008_v52 }
 0x5a4   : > { %4010 = vst.msk [vmem:[#allocation5] sm:$0x1] %vm4005_vm5, %v4009_v59  ;;  %vm9644_vm5 = vmmov %vm9639_vm1 }
 0x5a5   : > { %v1953_v59 = vpop.trf.xlu1 }
 0x5a8   : > { %v2091_v60 = vpop.trf.xlu2 }
 0x5ad   : > { %2094 = vxpose.xlu0.b32.start.end [1/1] (short) %v1923_v7, 128  ;;  %v1954_v52 = vpop.trf.xlu1 }
 0x5b0   : > { %v2092_v5 = vpop.trf.xlu2 }
 0x5b8   : > { %v2093_v20 = vpop.trf.xlu2 }
 0x5c0   : > { %v1807_v4 = vpop.trf.xlu2 }
 0x5c1   : > { %5126 = vmatmul.msk.f32.vlgmr.msra.gmra.mxu3 %vm9392_vm8, %v1807_v4  ;;  %v1955_v4 = vpop.trf.xlu1 }
 0x5c8   : > { %v1808_v14 = vpop.trf.xlu2 }
 0x5c9   : > { %5127 = vmatmul.msk.f32.gmra.mxu3 %vm9392_vm8, %v1808_v14  ;;  %v1956_v57 = vpop.trf.xlu1 }
 0x5d0   : > { %v1809_v10 = vpop.trf.xlu2 }
 0x5d1   : > { %v7277_v29 = vpop.trf.xlu0  ;;  %5128 = vmatmul.msk.f32.gmra.mxu3 %vm9392_vm8, %v1809_v10  ;;  %v1957_v14 = vpop.trf.xlu1 }
 0x5d8   : > { %v1810_v7 = vpop.trf.xlu2 }
 0x5d9   : > { %v7280_v2 = vpop.trf.xlu0  ;;  %5129 = vmatmul.msk.f32.gmra.mxu3 %vm9392_vm8, %v1810_v7  ;;  %v1958_v28 = vpop.trf.xlu1 }
 0x5e1   : > { %v7283_v58 = vpop.trf.xlu0  ;;  %v1959_v46 = vpop.trf.xlu1 }
 0x5e9   : > { %v7286_v41 = vpop.trf.xlu0  ;;  %v1960_v38 = vpop.trf.xlu1 }
 0x5f1   : > { %v7288_v21 = vpop.trf.xlu0 }
 0x5f9   : > { %v7290_v62 = vpop.trf.xlu0 }
 0x601   : > { %v7292_v19 = vpop.trf.xlu0 }
 0x609   : > { %v7294_v6 = vpop.trf.xlu0 }
 0x60c   : > { %v1908_v10 = vpop.f32.mrf.mxu1 }
 0x60d   : > { %5135 = vmatpush.msk.msra.mxu1 %vm1836_vm11, %v1908_v10  ;;  %5723 = vmatpush.msk.msra.mxu2 %vm1836_vm11, %v1908_v10 }
 0x60e   : > { %5724 = vmatpush.msk.msra.mxu3 %vm1836_vm11, %v1908_v10  ;;  %5136 = vmatmul.msk.f32.vlgmr.msra.gmra.mxu1 %vm9392_vm8, %v1950_v25  ;;  %v1961_v25 = vpop.trf.xlu1  ;;  %vm9642_vm11 = vmmov %vm9639_vm1 }
 0x60f   : > { %5141 = vmatmul.msk.f32.vlgmr.msra.gmra.mxu2 %vm9392_vm8, %v1955_v4  ;;  %5212 = vmatmul.msk.f32.vlgmr.msra.gmra.mxu3 %vm9392_vm8, %v2090_v49  ;;  %v5864_v4 = vld [vmem:[%s6049_s20 + $0x88] sm:$0xff] }
 0x611   : > { %v7302_v7 = vpop.trf.xlu0 }
 0x616   : > { %5137 = vmatmul.msk.f32.gmra.mxu1 %vm9392_vm8, %v1951_v35  ;;  %v1962_v35 = vpop.trf.xlu1 }
 0x617   : > { %5142 = vmatmul.msk.f32.gmra.mxu2 %vm9392_vm8, %v1956_v57  ;;  %5213 = vmatmul.msk.f32.gmra.mxu3 %vm9392_vm8, %v2091_v60  ;;  %v5862_v60 = vld [vmem:[%s6049_s20 + $0x80] sm:$0xff] }
 0x619   : > { %v7307_v10 = vpop.trf.xlu0 }
 0x61e   : > { %5138 = vmatmul.msk.f32.gmra.mxu1 %vm9392_vm8, %v1952_v27  ;;  %v1963_v61 = vpop.trf.xlu1  ;;  %v5863_v27 = vld [vmem:[%s6049_s20 + $0xc0] sm:$0xff] }
 0x61f   : > { %5143 = vmatmul.msk.f32.gmra.mxu2 %vm9392_vm8, %v1957_v14  ;;  %5214 = vmatmul.msk.f32.gmra.mxu3 %vm9392_vm8, %v2092_v5  ;;  %v5865_v14 = vld [vmem:[%s6049_s20 + $0xc8] sm:$0xff] }
 0x621   : > { %v7312_v49 = vpop.trf.xlu0 }
 0x626   : > { %5139 = vmatmul.msk.f32.gmra.mxu1 %vm9392_vm8, %v1953_v59  ;;  %v1964_v59 = vpop.trf.xlu1 }
 0x627   : > { %5144 = vmatmul.msk.f32.gmra.mxu2 %vm9392_vm8, %v1958_v28  ;;  %5215 = vmatmul.msk.f32.gmra.mxu3 %vm9392_vm8, %v2093_v20 }
 0x629   : > { %v7317_v57 = vpop.trf.xlu0 }
 0x62c   : > { %5831 = vxpose.binary.xlu0.c.b16.start [1/16] (narrow) %v5863_v27, %v5862_v60, 32 }
 0x62e   : > { %5140 = vmatmul.msk.f32.gmra.mxu1 %vm9392_vm8, %v1954_v52  ;;  %v1965_v20 = vpop.trf.xlu1 }
 0x62f   : > { %5145 = vmatmul.msk.f32.gmra.mxu2 %vm9392_vm8, %v1959_v46  ;;  %v5866_v46 = vld [vmem:[%s6049_s20 + $0x90] sm:$0xff] }
 0x631   : > { %v7323_v5 = vpop.trf.xlu0 }
 0x636   : > { %v1982_v27 = vpop.trf.xlu1 }
 0x637   : > { %5146 = vmatmul.msk.f32.gmra.mxu2 %vm9392_vm8, %v1960_v38  ;;  %v3955_v38 = vld [vmem:[#allocation8] sm:$0xff] }
 0x638   : > { %v3959_v55 = vmul.f32 0.9, %v3955_v38  ;;  %v3972_v38 = vmul.f32 0.0005, %v7231_v32 }
 0x639   : > { %v7326_v28 = vpop.trf.xlu0 }
 0x63a   : > { %9636 = vst [vmem:[#allocation159_spill] sm:$0xff] %v7326_v28 }
 0x63c   : > { %5832 = vxpose.binary.xlu0.c.b16.cont [2/16] (narrow) %v5865_v14, %v5864_v4, 32 }
 0x63e   : > { %v1983_v37 = vpop.trf.xlu1 }
 0x63f   : > { %5147 = vmatmul.msk.f32.gmra.mxu2 %vm9392_vm8, %v1961_v25 }
 0x641   : > { %v7331_v60 = vpop.trf.xlu0 }
 0x642   : > { %9637 = vst [vmem:[#allocation160_spill] sm:$0xff] %v7331_v60 }
 0x644   : > { %v1857_v14 = vpop.f32.mrf.mxu3 }
 0x645   : > { %v3963_v25 = vadd.f32 %v3959_v55, %v1857_v14  ;;  %v5868_v14 = vld [vmem:[%s6049_s20 + $0x98] sm:$0xff] }
 0x646   : > { %v1984_v55 = vpop.trf.xlu1 }
 0x647   : > { %5148 = vmatmul.msk.f32.gmra.mxu2 %vm9392_vm8, %v1962_v35  ;;  %v3975_v0 = vadd.f32 %v3971_v63, %v3963_v25  ;;  %v5869_v25 = vld [vmem:[%s6049_s20 + $0xd8] sm:$0xff] }
 0x649   : > { %v7334_v52 = vpop.trf.xlu0  ;;  %3979 = vst.msk [vmem:[#allocation8] sm:$0xff] %vm9639_vm1, %v3975_v0  ;;  %v3987_v35 = vmul.f32 0.01, %v3975_v0 }
 0x64a   : > { %9638 = vst [vmem:[#allocation161_spill] sm:$0xff] %v7334_v52 }
 0x64c   : > { %5833 = vxpose.binary.xlu0.c.b16.cont [3/16] (narrow) %v5867_v11, %v5866_v46, 32  ;;  %v3956_v11 = vld [vmem:[#allocation8 + $0x8] sm:$0xff]  ;;  %v1860_v40 = vpop.f32.mrf.mxu3 }
 0x64d   : > { %v3960_v46 = vmul.f32 0.9, %v3956_v11  ;;  %v3973_v11 = vmul.f32 0.0005, %v7227_v12 }
 0x64f   : > { %5149 = vmatmul.msk.f32.gmra.mxu2 %vm9392_vm8, %v1963_v61  ;;  %v3991_v61 = vsub.f32 %v7234_v48, %v3987_v35  ;;  %v3964_v63 = vadd.f32 %v3960_v46, %v1860_v40  ;;  %v3957_v48 = vld [vmem:[#allocation8 + $0x10] sm:$0xff] }
 0x650   : > { %v3961_v35 = vmul.f32 0.9, %v3957_v48  ;;  %v5870_v48 = vld [vmem:[%s6049_s20 + $0xa0] sm:$0xff] }
 0x651   : > { %v2110_v4 = vpop.trf.xlu0  ;;  %3995 = vst.msk [vmem:[#allocation4] sm:$0xff] %vm9640_vm13, %v3991_v61  ;;  %v1985_v61 = vpop.trf.xlu1  ;;  %vm9645_vm13 = vmmov %vm9639_vm1 }
 0x652   : > { %5216 = vmatmul.msk.f32.gmra.mxu3 %vm9392_vm8, %v2110_v4  ;;  %v3976_v4 = vadd.f32 %v3972_v38, %v3964_v63 }
 0x654   : > { %3980 = vst.msk [vmem:[#allocation8 + $0x8] sm:$0xff] %vm9641_vm3, %v3976_v4  ;;  %v3988_v0 = vmul.f32 0.01, %v3976_v4  ;;  %v1863_v16 = vpop.f32.mrf.mxu3  ;;  %v3974_v4 = vmul.f32 0.0005, %v7225_v56  ;;  %vm9337_vm3 = vcmp.gt.f32.partialorder %v6328_v39, 0.0 }
 0x655   : > { %v3965_v40 = vadd.f32 %v3961_v35, %v1863_v16 }
 0x657   : > { %5150 = vmatmul.msk.f32.gmra.mxu2 %vm9392_vm8, %v1964_v59  ;;  %v3992_v59 = vsub.f32 %v7231_v32, %v3988_v0  ;;  %v3977_v46 = vadd.f32 %v3973_v11, %v3965_v40  ;;  %v3958_v32 = vld [vmem:[#allocation8 + $0x18] sm:$0xff] }
 0x658   : > { %v3962_v63 = vmul.f32 0.9, %v3958_v32 }
 0x659   : > { %v2111_v45 = vpop.trf.xlu0  ;;  %3996 = vst.msk [vmem:[#allocation4 + $0x8] sm:$0xff] %vm9642_vm11, %v3992_v59  ;;  %v5871_v59 = vld [vmem:[%s6049_s20 + $0xe0] sm:$0xff]  ;;  %vm9336_vm11 = vcmp.gt.f32.partialorder %v6321_v18, 0.0 }
 0x65a   : > { %5217 = vmatmul.msk.f32.gmra.mxu3 %vm9392_vm8, %v2111_v45  ;;  %3981 = vst.msk [vmem:[#allocation8 + $0x10] sm:$0xff] %vm9643_vm9, %v3977_v46  ;;  %vm9646_vm9 = vcmask 261120  }
 0x65c   : > { %5834 = vxpose.binary.xlu0.c.b16.cont [4/16] (narrow) %v5869_v25, %v5868_v14, 32  ;;  %v1866_v25 = vpop.f32.mrf.mxu3 }
 0x65d   : > { %v3966_v16 = vadd.f32 %v3962_v63, %v1866_v25  ;;  %v5874_v63 = vld [vmem:[%s6049_s20 + $0xb0] sm:$0xff] }
 0x65f   : > { %5151 = vmatmul.msk.f32.gmra.mxu2 %vm9392_vm8, %v1965_v20  ;;  %v3989_v20 = vmul.f32 0.01, %v3977_v46  ;;  %v3978_v0 = vadd.f32 %v3974_v4, %v3966_v16  ;;  %v5872_v46 = vld [vmem:[%s6049_s20 + $0xa8] sm:$0xff]  ;;  %v5875_v4 = vld [vmem:[%s6049_s20 + $0xf0] sm:$0xff] }
 0x661   : > { %v2112_v45 = vpop.trf.xlu0  ;;  %v3993_v38 = vsub.f32 %v7227_v12, %v3989_v20  ;;  %3982 = vst.msk [vmem:[#allocation8 + $0x18] sm:$0xff] %vm9639_vm1, %v3978_v0  ;;  %v3990_v12 = vmul.f32 0.01, %v3978_v0  ;;  %v5873_v20 = vld [vmem:[%s6049_s20 + $0xe8] sm:$0xff]  ;;  %vm9339_vm1 = vcmp.gt.f32.partialorder %v6314_v43, 0.0 }
 0x662   : > { %5218 = vmatmul.msk.f32.gmra.mxu3 %vm9392_vm8, %v2112_v45 }
 0x663   : > { %3997 = vst.msk [vmem:[#allocation4 + $0x10] sm:$0xff] %vm9644_vm5, %v3993_v38  ;;  %v3994_v35 = vsub.f32 %v7225_v56, %v3990_v12  ;;  %vm9647_vm5 = vmmov %vm9646_vm9 }
 0x665   : > { %3998 = vst.msk [vmem:[#allocation4 + $0x18] sm:$0xff] %vm9645_vm13, %v3994_v35  ;;  %v1925_v35 = vld.sshfl [vmem:[#allocation1 + $0x38] sm:$0xff pattern:$0x75316420]  ;;  %vm9648_vm13 = vmmov %vm9647_vm5 }
 0x666   : > { %2158 = vxpose.xlu2.b32.start.end [1/1] (short) %v1925_v35, 128 }
 0x667   : > { %5152 = vmatmul.msk.f32.gmra.mxu2 %vm9392_vm8, %v1982_v27  ;;  %v1986_v27 = vpop.trf.xlu1 }
 0x669   : > { %v2113_v14 = vpop.trf.xlu0 }
 0x66a   : > { %5219 = vmatmul.msk.f32.gmra.mxu3 %vm9392_vm8, %v2113_v14 }
 0x66c   : > { %5835 = vxpose.binary.xlu0.c.b16.cont [5/16] (narrow) %v5871_v59, %v5870_v48, 32 }
 0x66f   : > { %5153 = vmatmul.msk.f32.gmra.mxu2 %vm9392_vm8, %v1983_v37  ;;  %v1987_v45 = vpop.trf.xlu1 }
 0x671   : > { %v2114_v11 = vpop.trf.xlu0 }
 0x672   : > { %5220 = vmatmul.msk.f32.gmra.mxu3 %vm9392_vm8, %v2114_v11 }
 0x677   : > { %5154 = vmatmul.msk.f32.gmra.mxu2 %vm9392_vm8, %v1984_v55  ;;  %v1988_v56 = vpop.trf.xlu1 }
 0x679   : > { %v2115_v40 = vpop.trf.xlu0 }
 0x67a   : > { %5221 = vmatmul.msk.f32.gmra.mxu3 %vm9392_vm8, %v2115_v40 }
 0x67c   : > { %5836 = vxpose.binary.xlu0.c.b16.cont [6/16] (narrow) %v5873_v20, %v5872_v46, 32  ;;  %v5876_v20 = vld [vmem:[%s6049_s20 + $0xb8] sm:$0xff] }
 0x67f   : > { %5155 = vmatmul.msk.f32.gmra.mxu2 %vm9392_vm8, %v1985_v61  ;;  %v1989_v38 = vpop.trf.xlu1 }
 0x681   : > { %v2116_v37 = vpop.trf.xlu0 }
 0x682   : > { %5222 = vmatmul.msk.f32.gmra.mxu3 %vm9392_vm8, %v2116_v37  ;;  %v5877_v37 = vld [vmem:[%s6049_s20 + $0xf8] sm:$0xff] }
 0x687   : > { %5156 = vmatmul.msk.f32.gmra.mxu2 %vm9392_vm8, %v1986_v27  ;;  %v1990_v12 = vpop.trf.xlu1 }
 0x689   : > { %v2117_v32 = vpop.trf.xlu0 }
 0x68a   : > { %5223 = vmatmul.msk.f32.gmra.mxu3 %vm9392_vm8, %v2117_v32 }
 0x68b   : > { %v7376_v55 = vpop.f32.mrf.mxu1 }
 0x68c   : > { %5837 = vxpose.binary.xlu0.c.b16.cont [7/16] (narrow) %v5875_v4, %v5874_v63, 32  ;;  %v3106_v14 = vsel %vm9337_vm3, %v7376_v55, 0.0  ;;  %v1921_v63 = vld.sshfl [vmem:[#allocation1 + $0x18] sm:$0xff pattern:$0x75316420]  ;;  %vm9649_vm3 = vcmask 261120  }
 0x68d   : > { %v3234_v48 = vsel %vm9646_vm9, %v3106_v14, 0.0  ;;  %2030 = vxpose.xlu1.b32.start.end [1/1] (short) %v1921_v63, 128  ;;  %vm9338_vm9 = vcmp.gt.f32.partialorder %v6305_v53, 0.0 }
 0x68f   : > { %5157 = vmatmul.msk.f32.gmra.mxu2 %vm9392_vm8, %v1987_v45  ;;  %v1991_v4 = vpop.trf.xlu1 }
 0x691   : > { %v2118_v61 = vpop.trf.xlu0 }
 0x692   : > { %v7385_v25 = vpop.f32.mrf.mxu2  ;;  %5224 = vmatmul.msk.f32.gmra.mxu3 %vm9392_vm8, %v2118_v61 }
 0x693   : > { %v7388_v16 = vpop.f32.mrf.mxu1 }
 0x694   : > { %v3107_v0 = vsel %vm9336_vm11, %v7388_v16, 0.0  ;;  %vm9340_vm11 = vcmp.gt.f32.partialorder %v6294_v22, 0.0 }
 0x695   : > { %v3235_v59 = vsel %vm9647_vm5, %v3107_v0, 0.0 }
 0x696   : > { %v3236_v27 = vadd.f32 %v3235_v59, %v3234_v48 }
 0x697   : > { %5158 = vmatmul.msk.f32.gmra.mxu2 %vm9392_vm8, %v1988_v56 }
 0x699   : > { %v2119_v11 = vpop.trf.xlu0 }
 0x69a   : > { %v7397_v45 = vpop.f32.mrf.mxu2  ;;  %5225 = vmatmul.msk.f32.gmra.mxu3 %vm9392_vm8, %v2119_v11 }
 0x69b   : > { %v7401_v40 = vpop.f32.mrf.mxu1 }
 0x69c   : > { %v3108_v46 = vsel %vm9339_vm1, %v7401_v40, 0.0  ;;  %5838 = vxpose.binary.xlu0.c.b16.end [8/16] (narrow) %v5877_v37, %v5876_v20, 32  ;;  %v3111_v37 = vsel %vm9340_vm11, %v7385_v25, 0.0  ;;  %vm9651_vm1 = vmmov %vm9649_vm3 }
 0x69d   : > { %v3237_v56 = vsel %vm9648_vm13, %v3108_v46, 0.0  ;;  %v1992_v46 = vpop.trf.xlu1  ;;  %vm9343_vm13 = vcmp.gt.f32.partialorder %v6299_v51, 0.0  ;;  %vm9652_vm11 = vmmov %vm9651_vm1 }
 0x69e   : > { %v3238_v32 = vadd.f32 %v3237_v56, %v3236_v27 }
 0x69f   : > { %5159 = vmatmul.msk.f32.gmra.mxu2 %vm9392_vm8, %v1989_v38 }
 0x6a1   : > { %v2120_v61 = vpop.trf.xlu0 }
 0x6a2   : > { %v7410_v14 = vpop.f32.mrf.mxu2  ;;  %5226 = vmatmul.msk.f32.gmra.mxu3 %vm9392_vm8, %v2120_v61 }
 0x6a3   : > { %v7415_v48 = vpop.f32.mrf.mxu1 }
 0x6a4   : > { %v3109_v59 = vsel %vm9338_vm9, %v7415_v48, 0.0  ;;  %vm9346_vm9 = vcmp.gt.f32.partialorder %v6279_v34, 0.0 }
 0x6a5   : > { %v3239_v38 = vsel %vm9647_vm5, %v3109_v59, 0.0  ;;  %vm9348_vm5 = vcmp.gt.f32.partialorder %v6288_v42, 0.0  ;;  %v3243_v59 = vsel %vm9651_vm1, %v3111_v37, 0.0  ;;  %vm9350_vm1 = vcmp.gt.f32.partialorder %v6266_v31, 0.0 }
 0x6a6   : > { %v3240_v27 = vadd.f32 %v3239_v38, %v3238_v32  ;;  %v7438_v32 = vpop.f32.mrf.mxu3  ;;  %v3112_v63 = vsel %vm9348_vm5, %v7397_v45, 0.0  ;;  %v3113_v38 = vsel %vm9346_vm9, %v7410_v14, 0.0  ;;  %vm9654_vm9 = vmmov %vm9652_vm11 }
 0x6a7   : > { %5160 = vmatmul.msk.f32.gmra.mxu2 %vm9392_vm8, %v1990_v12  ;;  %9650 = vst [vmem:[#allocation162_spill] sm:$0xff] %v7438_v32  ;;  %v2142_v32 = vpop.trf.xlu2 }
 0x6a9   : > { %v2121_v35 = vpop.trf.xlu0 }
 0x6aa   : > { %v7423_v11 = vpop.f32.mrf.mxu2  ;;  %5227 = vmatmul.msk.f32.gmra.mxu3 %vm9392_vm8, %v2121_v35 }
 0x6ab   : > { %v7428_v20 = vpop.f32.mrf.mxu1 }
 0x6ac   : > { %v3110_v12 = vsel %vm9343_vm13, %v7428_v20, 0.0  ;;  %vm9653_vm13 = vmmov %vm9652_vm11 }
 0x6ad   : > { %v3241_v56 = vsel %vm9649_vm3, %v3110_v12, 0.0  ;;  %vm9353_vm3 = vcmp.gt.f32.partialorder %v6273_v33, 0.0  ;;  %v3245_v12 = vsel %vm9652_vm11, %v3112_v63, 0.0 }
 0x6ae   : > { %v3242_v61 = vadd.f32 %v3241_v56, %v3240_v27  ;;  %v3114_v27 = vsel %vm9353_vm3, %v7423_v11, 0.0 }
 0x6af   : > { %5161 = vmatmul.msk.f32.gmra.mxu2 %vm9392_vm8, %v1991_v4  ;;  %v3247_v4 = vsel %vm9653_vm13, %v3113_v38, 0.0  ;;  %v2143_v52 = vpop.trf.xlu2  ;;  %vm9356_vm13 = vcmp.gt.f32.partialorder %v6262_v26, 0.0 }
 0x6b0   : > { %v3244_v35 = vadd.f32 %v3243_v59, %v3242_v61  ;;  %v1993_v61 = vpop.trf.xlu1  ;;  %v3249_v59 = vsel %vm9652_vm11, %v3114_v27, 0.0  ;;  %vm9656_vm11 = vmmov %vm9654_vm9 }
 0x6b1   : > { %v2122_v0 = vpop.trf.xlu0  ;;  %vm9658_vm5 = vmmov %vm9656_vm11 }
 0x6b2   : > { %v3246_v56 = vadd.f32 %v3245_v12, %v3244_v35  ;;  %v7454_v1 = vpop.f32.mrf.mxu2  ;;  %5228 = vmatmul.msk.f32.gmra.mxu3 %vm9392_vm8, %v2122_v0  ;;  %v7465_v35 = vpop.f32.mrf.mxu3 }
 0x6b3   : > { %v3115_v63 = vsel %vm9350_vm1, %v7454_v1, 0.0  ;;  %9655 = vst [vmem:[#allocation163_spill] sm:$0xff] %v7465_v35  ;;  %vm9659_vm1 = vmmov %vm9658_vm5 }
 0x6b4   : > { %v3248_v37 = vadd.f32 %v3247_v4, %v3246_v56  ;;  %v3251_v50 = vsel %vm9654_vm9, %v3115_v63, 0.0  ;;  %vm9355_vm9 = vcmp.gt.f32.partialorder %v6253_v23, 0.0  ;;  %vm9661_vm3 = vmmov %vm9659_vm1 }
 0x6b6   : > { %v3250_v47 = vadd.f32 %v3249_v59, %v3248_v37 }
 0x6b7   : > { %5162 = vmatmul.msk.f32.gmra.mxu2 %vm9392_vm8, %v1992_v46 }
 0x6b8   : > { %v3252_v0 = vadd.f32 %v3251_v50, %v3250_v47  ;;  %v1994_v37 = vpop.trf.xlu1  ;;  %v2144_v50 = vpop.trf.xlu2 }
 0x6b9   : > { %v2123_v12 = vpop.trf.xlu0 }
 0x6ba   : > { %v7468_v38 = vpop.f32.mrf.mxu2  ;;  %5229 = vmatmul.msk.f32.gmra.mxu3 %vm9392_vm8, %v2123_v12  ;;  %v7480_v63 = vpop.f32.mrf.mxu3 }
 0x6bb   : > { %v3116_v27 = vsel %vm9356_vm13, %v7468_v38, 0.0  ;;  %9657 = vst [vmem:[#allocation164_spill] sm:$0xff] %v7480_v63 }
 0x6bc   : > { %v3253_v56 = vsel %vm9656_vm11, %v3116_v27, 0.0  ;;  %vm2990_vm11 = vcmp.gt.f32.partialorder %v6247_v17, 0.0 }
 0x6bd   : > { %v3254_v4 = vadd.f32 %v3253_v56, %v3252_v0 }
 0x6bf   : > { %5163 = vmatmul.msk.f32.gmra.mxu2 %vm9392_vm8, %v1993_v61 }
 0x6c0   : > { %v1995_v61 = vpop.trf.xlu1  ;;  %v2145_v56 = vpop.trf.xlu2 }
 0x6c1   : > { %v2124_v46 = vpop.trf.xlu0 }
 0x6c2   : > { %v7477_v47 = vpop.f32.mrf.mxu2  ;;  %5230 = vmatmul.msk.f32.gmra.mxu3 %vm9392_vm8, %v2124_v46  ;;  %v7492_v8 = vpop.f32.mrf.mxu3 }
 0x6c3   : > { %v3117_v59 = vsel %vm9355_vm9, %v7477_v47, 0.0  ;;  %9660 = vst [vmem:[#allocation165_spill] sm:$0xff] %v7492_v8  ;;  %vm2992_vm9 = vcmp.gt.f32.partialorder %v6236_v13, 0.0 }
 0x6c4   : > { %v3255_v12 = vsel %vm9658_vm5, %v3117_v59, 0.0  ;;  %vm9358_vm5 = vcmp.gt.f32.partialorder %v6242_v15, 0.0 }
 0x6c5   : > { %v3256_v0 = vadd.f32 %v3255_v12, %v3254_v4 }
 0x6c7   : > { %5164 = vmatmul.msk.f32.gmra.mxu2 %vm9392_vm8, %v1994_v37 }
 0x6c8   : > { %v2146_v4 = vpop.trf.xlu2  ;;  %v1996_v59 = vpop.trf.xlu1 }
 0x6c9   : > { %v2125_v27 = vpop.trf.xlu0 }
 0x6ca   : > { %v2630_v35 = vpop.f32.mrf.mxu2  ;;  %5231 = vmatmul.msk.f32.gmra.mxu3 %vm9392_vm8, %v2125_v27 }
 0x6cb   : > { %v3118_v46 = vsel %vm2990_vm11, %v2630_v35, 0.0 }
 0x6cc   : > { %v3257_v63 = vsel %vm9659_vm1, %v3118_v46, 0.0  ;;  %vm9663_vm1 = vcmp.gt.f32.partialorder %v7122_v3, 0.0 }
 0x6cd   : > { %v3258_v60 = vadd.f32 %v3257_v63, %v3256_v0 }
 0x6cf   : > { %5165 = vmatmul.msk.f32.gmra.mxu2 %vm9392_vm8, %v1995_v61 }
 0x6d0   : > { %v7508_v0 = vpop.trf.xlu2  ;;  %v1997_v46 = vpop.trf.xlu1 }
 0x6d2   : > { %v2633_v37 = vpop.f32.mrf.mxu2  ;;  %5232 = vmatmul.msk.f32.gmra.mxu3 %vm9392_vm8, %v2142_v32 }
 0x6d3   : > { %v3119_v12 = vsel %vm9358_vm5, %v2633_v37, 0.0  ;;  %vm9669_vm5 = vcmp.gt.f32.partialorder %v6444_v9, 0.0  ;;  %v5271_v9 = vpack.c.bf16 %v7477_v47, %v7468_v38  ;;  %v5274_v47 = vpack.c.bf16 %v7454_v1, %v7423_v11 }
 0x6d4   : > { %v3259_v27 = vsel %vm9661_vm3, %v3119_v12, 0.0  ;;  %v9684_v11 = vpack.c.bf16 %v7410_v14, %v7397_v45 }
 0x6d5   : > { %v3260_v54 = vadd.f32 %v3259_v27, %v3258_v60  ;;  %v7500_v28 = vpop.f32.mrf.mxu3 }
 0x6d6   : > { %9662 = vst [vmem:[#allocation166_spill] sm:$0xff] %v7500_v28  ;;  %v7505_v63 = vsel %vm9663_vm1, %v7500_v28, 0.0  ;;  %vm9666_vm1 = vcmp.gt.f32.partialorder %v7126_v24, 0.0  ;;  %v9729_v28 = vld [vmem:[#allocation18_spill] sm:$0xff] }
 0x6d7   : > { %9664 = vst [vmem:[#allocation167_spill] sm:$0xff] %v7505_v63  ;;  %5166 = vmatmul.msk.f32.gmra.mxu2 %vm9392_vm8, %v1996_v59 }
 0x6d8   : > { %v7526_v63 = vpop.trf.xlu2 }
 0x6da   : > { %v2636_v32 = vpop.f32.mrf.mxu2  ;;  %5233 = vmatmul.msk.f32.gmra.mxu3 %vm9392_vm8, %v2143_v52  ;;  %v9668_v52 = vld [vmem:[#allocation16_spill] sm:$0xff] }
 0x6db   : > { %v3120_v61 = vsel %vm2992_vm9, %v2636_v32, 0.0  ;;  %vm2993_vm13 = vcmp.gt.f32.partialorder %v9668_v52, 0.0  ;;  %v5268_v52 = vpack.c.bf16 %v2633_v37, %v2630_v35 }
 0x6dc   : > { %v3261_v60 = vsel %vm9661_vm3, %v3120_v61, 0.0 }
 0x6dd   : > { %v3262_v12 = vadd.f32 %v3261_v60, %v3260_v54  ;;  %v7515_v27 = vpop.f32.mrf.mxu3 }
 0x6de   : > { %9665 = vst [vmem:[#allocation168_spill] sm:$0xff] %v7515_v27  ;;  %v7520_v3 = vsel %vm9666_vm1, %v7515_v27, 0.0  ;;  %vm5264_vm1 = vmpackc.low %vm2993_vm13, %vm2992_vm9  ;;  %vm9673_vm9 = vcmask 261120  }
 0x6df   : > { %9667 = vst [vmem:[#allocation169_spill] sm:$0xff] %v7520_v3  ;;  %5167 = vmatmul.msk.f32.gmra.mxu2 %vm9392_vm8, %v1997_v46 }
 0x6e0   : > { %v7545_v13 = vpop.trf.xlu2 }
 0x6e2   : > { %v2639_v8 = vpop.f32.mrf.mxu2  ;;  %5234 = vmatmul.msk.f32.gmra.mxu3 %vm9392_vm8, %v2144_v50 }
 0x6e3   : > { %v3121_v54 = vsel %vm2993_vm13, %v2639_v8, 0.0  ;;  %v5265_v61 = vpack.c.bf16 %v2639_v8, %v2636_v32  ;;  %v9672_v8 = vld [vmem:[#allocation32_spill] sm:$0xff]  ;;  %v5280_v32 = vpack.c.bf16 %v7385_v25, %v7428_v20 }
 0x6e4   : > { %v3263_v60 = vsel %vm9661_vm3, %v3121_v54, 0.0  ;;  %vm9671_vm3 = vcmp.gt.f32.partialorder %v6242_v15, 0.0  ;;  %vm9360_vm13 = vcmp.gt.f32.partialorder %v9672_v8, 0.0 }
 0x6e5   : > { %v3264_v24 = vadd.f32 %v3263_v60, %v3262_v12  ;;  %5266 = vmatpush.bf16.msk.msra.mxu3 %vm5264_vm1, %v5265_v61  ;;  %v7532_v3 = vpop.f32.mrf.mxu3  ;;  %vm5267_vm7 = vmpackc.low %vm9671_vm3, %vm2990_vm11  ;;  %vm9674_vm11 = vcmp.gt.f32.partialorder %v6262_v26, 0.0  ;;  %vm9676_vm1 = vcmp.gt.f32.partialorder %v6448_v30, 0.0  ;;  %vm9678_vm3 = vcmp.gt.f32.partialorder %v6273_v33, 0.0  ;;  %v9680_v26 = vld [vmem:[#allocation31_spill] sm:$0xff] }
 0x6e6   : > { %v7537_v46 = vsel %vm9669_vm5, %v7532_v3, 0.0 }
 0x6e7   : > { %9670 = vst [vmem:[#allocation16_spill] sm:$0xff] %v7537_v46  ;;  %5168 = vmatmul.msk.f32.gmra.mxu2 %vm9392_vm8, %v7277_v29  ;;  %v5887_v46 = vld [vmem:[%s6049_s20 + $0x1e0] sm:$0xff] }
 0x6e9   : > { %5269 = vmatpush.bf16.msk.msra.mxu3 %vm5267_vm7, %v5268_v52  ;;  %vm9675_vm7 = vcmp.gt.f32.partialorder %v6253_v23, 0.0  ;;  %v2150_v23 = vpop.trf.xlu2  ;;  %v9701_v52 = vld [vmem:[#allocation27_spill] sm:$0xff] }
 0x6ea   : > { %v7548_v50 = vpop.f32.mrf.mxu2  ;;  %5235 = vmatmul.msk.f32.gmra.mxu3 %vm9392_vm8, %v2145_v56  ;;  %vm5270_vm5 = vmpackc.low %vm9675_vm7, %vm9674_vm11  ;;  %vm9359_vm7 = vcmp.gt.f32.partialorder %v9680_v26, 0.0 }
 0x6eb   : > { %v3122_v29 = vsel %vm9360_vm13, %v7548_v50, 0.0 }
 0x6ec   : > { %v3265_v17 = vsel %vm9673_vm9, %v3122_v29, 0.0  ;;  %vm9679_vm9 = vcmp.gt.f32.partialorder %v6266_v31, 0.0 }
 0x6ed   : > { %v3266_v15 = vadd.f32 %v3265_v17, %v3264_v24  ;;  %5272 = vmatpush.bf16.msk.msra.mxu3 %vm5270_vm5, %v5271_v9  ;;  %v7561_v35 = vpop.f32.mrf.mxu3  ;;  %vm5273_vm11 = vmpackc.low %vm9679_vm9, %vm9678_vm3  ;;  %vm9681_vm5 = vcmask 261120   ;;  %vm9683_vm3 = vcmp.gt.f32.partialorder %v6279_v34, 0.0 }
 0x6ee   : > { %v7566_v56 = vsel %vm9676_vm1, %v7561_v35, 0.0  ;;  %vm9682_vm1 = vcmp.gt.f32.partialorder %v6288_v42, 0.0  ;;  %v9689_v42 = vld [vmem:[#allocation30_spill] sm:$0xff] }
 0x6ef   : > { %9677 = vst [vmem:[#allocation32_spill] sm:$0xff] %v7566_v56  ;;  %5169 = vmatmul.msk.f32.gmra.mxu2 %vm9392_vm8, %v7280_v2  ;;  %vm5276_vm9 = vmpackc.low %vm9683_vm3, %vm9682_vm1  ;;  %vm9688_vm1 = vcmp.gt.f32.partialorder %v6294_v22, 0.0  ;;  %v5885_v2 = vld [vmem:[%s6049_s20 + $0x1d8] sm:$0xff] }
 0x6f0   : > { %v9728_v56 = vld [vmem:[#allocation161_spill] sm:$0xff] }
 0x6f1   : > { %5275 = vmatpush.bf16.msk.msra.mxu3 %vm5273_vm11, %v5274_v47  ;;  %vm9685_vm11 = vcmp.gt.f32.partialorder %v6490_v44, 0.0  ;;  %v2151_v34 = vpop.trf.xlu2  ;;  %v5283_v44 = vpack.c.bf16 %v7415_v48, %v7401_v40  ;;  %v5286_v48 = vpack.c.bf16 %v7388_v16, %v7376_v55 }
 0x6f2   : > { %v7579_v30 = vpop.f32.mrf.mxu2  ;;  %5236 = vmatmul.msk.f32.gmra.mxu3 %vm9392_vm8, %v2146_v4 }
 0x6f3   : > { %v3123_v1 = vsel %vm9359_vm7, %v7579_v30, 0.0  ;;  %vm9693_vm7 = vcmp.gt.f32.partialorder %v6494_v36, 0.0 }
 0x6f4   : > { %v3267_v33 = vsel %vm9681_vm5, %v3123_v1, 0.0  ;;  %vm9687_vm5 = vcmp.gt.f32.partialorder %v6299_v51, 0.0  ;;  %v9703_v1 = vld [vmem:[#allocation26_spill] sm:$0xff] }
 0x6f5   : > { %v3268_v31 = vadd.f32 %v3267_v33, %v3266_v15  ;;  %5278 = vmatpush.bf16.msk.msra.mxu3 %vm5276_vm9, %v9684_v11  ;;  %v7595_v4 = vpop.f32.mrf.mxu3  ;;  %vm5279_vm3 = vmpackc.low %vm9688_vm1, %vm9687_vm5  ;;  %vm9362_vm9 = vcmp.gt.f32.partialorder %v9689_v42, 0.0  ;;  %vm9691_vm5 = vcmp.gt.f32.partialorder %v6314_v43, 0.0  ;;  %vm9692_vm1 = vcmp.gt.f32.partialorder %v6305_v53, 0.0  ;;  %v9697_v43 = vld [vmem:[#allocation29_spill] sm:$0xff] }
 0x6f6   : > { %v7600_v37 = vsel %vm9685_vm11, %v7595_v4, 0.0  ;;  %vm9690_vm11 = vcmask 261120  }
 0x6f7   : > { %9686 = vst [vmem:[#allocation31_spill] sm:$0xff] %v7600_v37  ;;  %5170 = vmatmul.msk.f32.gmra.mxu2 %vm9392_vm8, %v7283_v58 }
 0x6f9   : > { %5281 = vmatpush.bf16.msk.msra.mxu3 %vm5279_vm3, %v5280_v32  ;;  %vm5282_vm3 = vmpackc.low %vm9692_vm1, %vm9691_vm5  ;;  %vm9696_vm5 = vcmp.gt.f32.partialorder %v6321_v18, 0.0  ;;  %v2152_v53 = vpop.trf.xlu2 }
 0x6fa   : > { %v7611_v45 = vpop.f32.mrf.mxu2  ;;  %5237 = vmatmul.msk.f32.gmra.mxu3 %vm9392_vm8, %v7508_v0  ;;  %v9699_v0 = vld [vmem:[#allocation28_spill] sm:$0xff] }
 0x6fb   : > { %v3124_v58 = vsel %vm9362_vm9, %v7611_v45, 0.0 }
 0x6fc   : > { %v3269_v51 = vsel %vm9690_vm11, %v3124_v58, 0.0  ;;  %vm9695_vm11 = vcmp.gt.f32.partialorder %v6328_v39, 0.0  ;;  %v5879_v58 = vld [vmem:[%s6049_s20 + $0x1c0] sm:$0xff] }
 0x6fd   : > { %v3270_v22 = vadd.f32 %v3269_v51, %v3268_v31  ;;  %5284 = vmatpush.bf16.msk.msra.mxu3 %vm5282_vm3, %v5283_v44  ;;  %v7625_v25 = vpop.f32.mrf.mxu3  ;;  %vm5285_vm1 = vmpackc.low %vm9696_vm5, %vm9695_vm11  ;;  %vm9361_vm3 = vcmp.gt.f32.partialorder %v9697_v43, 0.0  ;;  %vm9364_vm11 = vcmp.gt.f32.partialorder %v9699_v0, 0.0  ;;  %v9716_v44 = vld [vmem:[#allocation159_spill] sm:$0xff] }
 0x6fe   : > { %v7630_v14 = vsel %vm9693_vm7, %v7625_v25, 0.0  ;;  %vm9698_vm7 = vcmask 261120  }
 0x6ff   : > { %9694 = vst [vmem:[#allocation30_spill] sm:$0xff] %v7630_v14  ;;  %5171 = vmatmul.msk.f32.gmra.mxu2 %vm9392_vm8, %v7286_v41  ;;  %vm9700_vm5 = vmmov %vm9698_vm7 }
 0x701   : > { %5287 = vmatpush.bf16.msk.msra.mxu3 %vm5285_vm1, %v5286_v48  ;;  %v2153_v20 = vpop.trf.xlu2  ;;  %vm9363_vm1 = vcmp.gt.f32.partialorder %v9701_v52, 0.0 }
 0x702   : > { %v7643_v36 = vpop.f32.mrf.mxu2  ;;  %5238 = vmatmul.msk.f32.gmra.mxu3 %vm9392_vm8, %v7526_v63 }
 0x703   : > { %v3125_v55 = vsel %vm9361_vm3, %v7643_v36, 0.0 }
 0x704   : > { %v3271_v39 = vsel %vm9698_vm7, %v3125_v55, 0.0  ;;  %vm9702_vm7 = vmmov %vm9700_vm5 }
 0x705   : > { %v3272_v18 = vadd.f32 %v3271_v39, %v3270_v22  ;;  %v7653_v16 = vpop.f32.mrf.mxu3  ;;  %vm9704_vm13 = vmmov %vm9702_vm7 }
 0x706   : > { %vm9707_vm9 = vmmov %vm9704_vm13 }
 0x707   : > { %5172 = vmatmul.msk.f32.gmra.mxu2 %vm9392_vm8, %v7288_v21 }
 0x709   : > { %v2154_v24 = vpop.trf.xlu2 }
 0x70a   : > { %v7658_v12 = vpop.f32.mrf.mxu2  ;;  %5239 = vmatmul.msk.f32.gmra.mxu3 %vm9392_vm8, %v7545_v13 }
 0x70b   : > { %v3126_v63 = vsel %vm9364_vm11, %v7658_v12, 0.0  ;;  %vm9710_vm11 = vmmov %vm9707_vm9 }
 0x70c   : > { %v3273_v54 = vsel %vm9700_vm5, %v3126_v63, 0.0  ;;  %vm9366_vm5 = vcmp.gt.f32.partialorder %v9703_v1, 0.0 }
 0x70d   : > { %v3274_v61 = vadd.f32 %v3273_v54, %v3272_v18  ;;  %v7666_v60 = vpop.f32.mrf.mxu3  ;;  %v9706_v54 = vld [vmem:[#allocation24_spill] sm:$0xff] }
 0x70e   : > { %vm9368_vm3 = vcmp.gt.f32.partialorder %v9706_v54, 0.0 }
 0x70f   : > { %5173 = vmatmul.msk.f32.gmra.mxu2 %vm9392_vm8, %v7290_v62 }
 0x711   : > { %v2155_v47 = vpop.trf.xlu2 }
 0x712   : > { %v7673_v9 = vpop.f32.mrf.mxu2  ;;  %5240 = vmatmul.msk.f32.gmra.mxu3 %vm9392_vm8, %v2150_v23 }
 0x713   : > { %v3127_v13 = vsel %vm9363_vm1, %v7673_v9, 0.0 }
 0x714   : > { %v3275_v17 = vsel %vm9702_vm7, %v3127_v13, 0.0 }
 0x715   : > { %v3276_v15 = vadd.f32 %v3275_v17, %v3274_v61  ;;  %v7682_v62 = vpop.f32.mrf.mxu3 }
 0x717   : > { %5174 = vmatmul.msk.f32.gmra.mxu2 %vm9392_vm8, %v7292_v19  ;;  %v5878_v19 = vld [vmem:[%s6049_s20 + $0x180] sm:$0xff] }
 0x718   : > { %5843 = vxpose.binary.xlu1.c.b16.start [1/16] (narrow) %v5879_v58, %v5878_v19, 32 }
 0x719   : > { %v2156_v51 = vpop.trf.xlu2 }
 0x71a   : > { %v7687_v23 = vpop.f32.mrf.mxu2  ;;  %5241 = vmatmul.msk.f32.gmra.mxu3 %vm9392_vm8, %v2151_v34  ;;  %v9705_v34 = vld [vmem:[#allocation25_spill] sm:$0xff] }
 0x71b   : > { %v3128_v33 = vsel %vm9366_vm5, %v7687_v23, 0.0  ;;  %vm9365_vm7 = vcmp.gt.f32.partialorder %v9705_v34, 0.0  ;;  %vm9714_vm5 = vmmov %vm9710_vm11 }
 0x71c   : > { %v3277_v31 = vsel %vm9704_vm13, %v3128_v33, 0.0 }
 0x71d   : > { %v3278_v11 = vadd.f32 %v3277_v31, %v3276_v15  ;;  %v7694_v32 = vpop.f32.mrf.mxu3  ;;  %v5881_v31 = vld [vmem:[%s6049_s20 + $0x1c8] sm:$0xff] }
 0x71f   : > { %5175 = vmatmul.msk.f32.gmra.mxu2 %vm9392_vm8, %v7294_v6 }
 0x721   : > { %v2157_v63 = vpop.trf.xlu2 }
 0x722   : > { %v7703_v22 = vpop.f32.mrf.mxu2  ;;  %5242 = vmatmul.msk.f32.gmra.mxu3 %vm9392_vm8, %v2152_v53 }
 0x723   : > { %v3129_v48 = vsel %vm9365_vm7, %v7703_v22, 0.0 }
 0x724   : > { %v3279_v6 = vsel %vm9704_vm13, %v3129_v48, 0.0 }
 0x725   : > { %v3280_v39 = vadd.f32 %v3279_v6, %v3278_v11  ;;  %v7712_v18 = vpop.f32.mrf.mxu3  ;;  %v9708_v11 = vld [vmem:[#allocation23_spill] sm:$0xff] }
 0x726   : > { %vm9367_vm13 = vcmp.gt.f32.partialorder %v9708_v11, 0.0 }
 0x727   : > { %5176 = vmatmul.msk.f32.gmra.mxu2 %vm9392_vm8, %v7302_v7  ;;  %v5880_v7 = vld [vmem:[%s6049_s20 + $0x188] sm:$0xff] }
 0x728   : > { %5844 = vxpose.binary.xlu1.c.b16.cont [2/16] (narrow) %v5881_v31, %v5880_v7, 32 }
 0x729   : > { %v2174_v19 = vpop.trf.xlu2 }
 0x72a   : > { %v7717_v53 = vpop.f32.mrf.mxu2  ;;  %5243 = vmatmul.msk.f32.gmra.mxu3 %vm9392_vm8, %v2153_v20 }
 0x72b   : > { %v3130_v61 = vsel %vm9368_vm3, %v7717_v53, 0.0 }
 0x72c   : > { %v3281_v13 = vsel %vm9707_vm9, %v3130_v61, 0.0 }
 0x72d   : > { %v3282_v17 = vadd.f32 %v3281_v13, %v3280_v39  ;;  %v7724_v15 = vpop.f32.mrf.mxu3  ;;  %v9709_v39 = vld [vmem:[#allocation22_spill] sm:$0xff] }
 0x72e   : > { %vm9373_vm1 = vcmp.gt.f32.partialorder %v9709_v39, 0.0 }
 0x72f   : > { %5177 = vmatmul.msk.f32.gmra.mxu2 %vm9392_vm8, %v7307_v10 }
 0x731   : > { %v2175_v13 = vpop.trf.xlu2  ;;  %v2046_v40 = vpop.trf.xlu1 }
 0x732   : > { %v7733_v20 = vpop.f32.mrf.mxu2  ;;  %5244 = vmatmul.msk.f32.gmra.mxu3 %vm9392_vm8, %v2154_v24 }
 0x733   : > { %v3131_v58 = vsel %vm9367_vm13, %v7733_v20, 0.0 }
 0x734   : > { %v3283_v48 = vsel %vm9707_vm9, %v3131_v58, 0.0  ;;  %v5884_v58 = vld [vmem:[%s6049_s20 + $0x198] sm:$0xff] }
 0x735   : > { %v3284_v6 = vadd.f32 %v3283_v48, %v3282_v17  ;;  %v7740_v10 = vpop.f32.mrf.mxu3  ;;  %v5883_v48 = vld [vmem:[%s6049_s20 + $0x1d0] sm:$0xff] }
 0x737   : > { %5178 = vmatmul.msk.f32.gmra.mxu2 %vm9392_vm8, %v7312_v49  ;;  %v5882_v49 = vld [vmem:[%s6049_s20 + $0x190] sm:$0xff] }
 0x738   : > { %5845 = vxpose.binary.xlu1.c.b16.cont [3/16] (narrow) %v5883_v48, %v5882_v49, 32  ;;  %v9713_v49 = vld [vmem:[#allocation20_spill] sm:$0xff] }
 0x739   : > { %vm3006_vm7 = vcmp.gt.f32.partialorder %v9713_v49, 0.0  ;;  %v2047_v33 = vpop.trf.xlu1 }
 0x73a   : > { %v7745_v61 = vpop.f32.mrf.mxu2  ;;  %5245 = vmatmul.msk.f32.gmra.mxu3 %vm9392_vm8, %v2155_v47  ;;  %v9711_v47 = vld [vmem:[#allocation21_spill] sm:$0xff] }
 0x73b   : > { %v3132_v24 = vsel %vm9373_vm1, %v7745_v61, 0.0  ;;  %vm9370_vm9 = vcmp.gt.f32.partialorder %v9711_v47, 0.0 }
 0x73c   : > { %v3285_v7 = vsel %vm9710_vm11, %v3132_v24, 0.0 }
 0x73d   : > { %v3286_v31 = vadd.f32 %v3285_v7, %v3284_v6  ;;  %v7752_v17 = vpop.f32.mrf.mxu3 }
 0x73f   : > { %5179 = vmatmul.msk.f32.gmra.mxu2 %vm9392_vm8, %v7317_v57  ;;  %v2176_v57 = vpop.trf.xlu2 }
 0x742   : > { %v7761_v59 = vpop.f32.mrf.mxu2  ;;  %5246 = vmatmul.msk.f32.gmra.mxu3 %vm9392_vm8, %v2156_v51 }
 0x743   : > { %v3133_v6 = vsel %vm9370_vm9, %v7761_v59, 0.0  ;;  %vm3009_vm9 = vcmp.gt.f32.partialorder %v9729_v28, 0.0 }
 0x744   : > { %v3287_v24 = vsel %vm9710_vm11, %v3133_v6, 0.0 }
 0x745   : > { %v3288_v7 = vadd.f32 %v3287_v24, %v3286_v31  ;;  %v7768_v38 = vpop.f32.mrf.mxu3 }
 0x746   : > { %9712 = vst [vmem:[#allocation29_spill] sm:$0xff] %v7768_v38 }
 0x747   : > { %5180 = vmatmul.msk.f32.gmra.mxu2 %vm9392_vm8, %v7323_v5  ;;  %v2177_v5 = vpop.trf.xlu2 }
 0x748   : > { %5846 = vxpose.binary.xlu1.c.b16.cont [4/16] (narrow) %v5885_v2, %v5884_v58, 32  ;;  %v9722_v2 = vld [vmem:[#allocation160_spill] sm:$0xff] }
 0x74a   : > { %v2678_v48 = vpop.f32.mrf.mxu2  ;;  %5247 = vmatmul.msk.f32.gmra.mxu3 %vm9392_vm8, %v2157_v63  ;;  %v9717_v63 = vld [vmem:[#allocation19_spill] sm:$0xff] }
 0x74b   : > { %v3134_v51 = vsel %vm3006_vm7, %v2678_v48, 0.0  ;;  %vm3007_vm11 = vcmp.gt.f32.partialorder %v9717_v63, 0.0  ;;  %v9739_v63 = vld [vmem:[#allocation54_spill] sm:$0xff] }
 0x74c   : > { %v3289_v6 = vsel %vm9714_vm5, %v3134_v51, 0.0 }
 0x74d   : > { %v3290_v31 = vadd.f32 %v3289_v6, %v3288_v7  ;;  %v7777_v24 = vpop.f32.mrf.mxu3 }
 0x74e   : > { %9715 = vst [vmem:[#allocation28_spill] sm:$0xff] %v7777_v24 }
 0x74f   : > { %5181 = vmatmul.msk.f32.gmra.mxu2 %vm9392_vm8, %v9716_v44  ;;  %v9719_v44 = vld [vmem:[#allocation39_spill] sm:$0xff]  ;;  %v2178_v58 = vpop.trf.xlu2 }
 0x750   : > { %vm9720_vm13 = vcmp.gt.f32.partialorder %v9719_v44, 0.0 }
 0x752   : > { %v2681_v41 = vpop.f32.mrf.mxu2  ;;  %5248 = vmatmul.msk.f32.gmra.mxu3 %vm9392_vm8, %v2174_v19  ;;  %v9723_v19 = vld [vmem:[#allocation17_spill] sm:$0xff] }
 0x753   : > { %v3135_v7 = vsel %vm3007_vm11, %v2681_v41, 0.0  ;;  %vm3008_vm3 = vcmp.gt.f32.partialorder %v9723_v19, 0.0 }
 0x754   : > { %v3291_v51 = vsel %vm9714_vm5, %v3135_v7, 0.0  ;;  %v2048_v7 = vpop.trf.xlu1 }
 0x755   : > { %v3292_v6 = vadd.f32 %v3291_v51, %v3290_v31  ;;  %v7790_v21 = vpop.f32.mrf.mxu3 }
 0x756   : > { %9718 = vst [vmem:[#allocation27_spill] sm:$0xff] %v7790_v21  ;;  %v7795_v29 = vsel %vm9720_vm13, %v7790_v21, 0.0 }
 0x757   : > { %9721 = vst [vmem:[#allocation26_spill] sm:$0xff] %v7795_v29  ;;  %5182 = vmatmul.msk.f32.gmra.mxu2 %vm9392_vm8, %v9722_v2  ;;  %v9725_v29 = vld [vmem:[#allocation40_spill] sm:$0xff]  ;;  %v2179_v27 = vpop.trf.xlu2 }
 0x758   : > { %vm9726_vm13 = vcmp.gt.f32.partialorder %v9725_v29, 0.0 }
 0x75a   : > { %v2684_v55 = vpop.f32.mrf.mxu2  ;;  %5249 = vmatmul.msk.f32.gmra.mxu3 %vm9392_vm8, %v2175_v13  ;;  %v5886_v13 = vld [vmem:[%s6049_s20 + $0x1a0] sm:$0xff] }
 0x75b   : > { %v3136_v31 = vsel %vm3008_vm3, %v2684_v55, 0.0  ;;  %5847 = vxpose.binary.xlu1.c.b16.cont [5/16] (narrow) %v5887_v46, %v5886_v13, 32  ;;  %v9731_v46 = vld [vmem:[#allocation53_spill] sm:$0xff]  ;;  %v5292_v13 = vpack.c.bf16 %v2681_v41, %v2678_v48 }
 0x75c   : > { %v3293_v51 = vsel %vm9714_vm5, %v3136_v31, 0.0  ;;  %v2049_v2 = vpop.trf.xlu1  ;;  %vm9732_vm1 = vcmp.gt.f32.partialorder %v9731_v46, 0.0 }
 0x75d   : > { %v3294_v14 = vadd.f32 %v3293_v51, %v3292_v6  ;;  %v7804_v44 = vpop.f32.mrf.mxu3 }
 0x75e   : > { %9724 = vst [vmem:[#allocation25_spill] sm:$0xff] %v7804_v44  ;;  %v7809_v37 = vsel %vm9726_vm13, %v7804_v44, 0.0  ;;  %vm5288_vm13 = vmpackc.low %vm3009_vm9, %vm3008_vm3 }
 0x75f   : > { %9727 = vst [vmem:[#allocation24_spill] sm:$0xff] %v7809_v37  ;;  %5183 = vmatmul.msk.f32.gmra.mxu2 %vm9392_vm8, %v9728_v56 }
 0x762   : > { %v2687_v31 = vpop.f32.mrf.mxu2  ;;  %5250 = vmatmul.msk.f32.gmra.mxu3 %vm9392_vm8, %v2176_v57  ;;  %v5295_v57 = vpack.c.bf16 %v7761_v59, %v7745_v61 }
 0x763   : > { %v3137_v6 = vsel %vm3009_vm9, %v2687_v31, 0.0  ;;  %v5289_v51 = vpack.c.bf16 %v2687_v31, %v2684_v55  ;;  %v9734_v55 = vld [vmem:[#allocation58_spill] sm:$0xff]  ;;  %vm9737_vm9 = vcmp.gt.f32.partialorder %v9711_v47, 0.0  ;;  %v5889_v47 = vld [vmem:[%s6049_s20 + $0x1e8] sm:$0xff]  ;;  %v9744_v31 = vld [vmem:[#allocation57_spill] sm:$0xff] }
 0x764   : > { %v3295_v29 = vsel %vm9714_vm5, %v3137_v6, 0.0  ;;  %vm5291_vm5 = vmpackc.low %vm3007_vm11, %vm3006_vm7  ;;  %vm9375_vm3 = vcmp.gt.f32.partialorder %v9734_v55, 0.0  ;;  %vm9736_vm7 = vcmp.gt.f32.partialorder %v9709_v39, 0.0  ;;  %v2050_v19 = vpop.trf.xlu1  ;;  %v5298_v39 = vpack.c.bf16 %v7733_v20, %v7717_v53 }
 0x765   : > { %v3296_v21 = vadd.f32 %v3295_v29, %v3294_v14  ;;  %5290 = vmatpush.bf16.msk.msra.mxu1 %vm5288_vm13, %v5289_v51  ;;  %v7822_v56 = vpop.f32.mrf.mxu3  ;;  %vm5294_vm11 = vmpackc.low %vm9737_vm9, %vm9736_vm7  ;;  %vm9740_vm13 = vcmp.gt.f32.partialorder %v9739_v63, 0.0  ;;  %vm9374_vm9 = vcmp.gt.f32.partialorder %v9744_v31, 0.0  ;;  %v9748_v20 = vpack.c.bf16 %v7703_v22, %v7687_v23  ;;  %v9750_v51 = vld [vmem:[#allocation67_spill] sm:$0xff] }
 0x766   : > { %9730 = vst [vmem:[#allocation23_spill] sm:$0xff] %v7822_v56  ;;  %v7827_v28 = vsel %vm9732_vm1, %v7822_v56, 0.0  ;;  %vm9735_vm1 = vcmask 261120   ;;  %v9755_v23 = vpack.c.bf16 %v7673_v9, %v7658_v12  ;;  %v9760_v9 = vpack.c.bf16 %v7643_v36, %v7611_v45  ;;  %v5891_v45 = vld [vmem:[%s6049_s20 + $0x1f0] sm:$0xff]  ;;  %v9771_v63 = vld [vmem:[#allocation79_spill] sm:$0xff]  ;;  %v9811_v56 = vld [vmem:[#allocation38_spill] sm:$0xff] }
 0x767   : > { %9733 = vst [vmem:[#allocation22_spill] sm:$0xff] %v7827_v28  ;;  %5184 = vmatmul.msk.f32.gmra.mxu2 %vm9392_vm8, %v2046_v40 }
 0x769   : > { %5293 = vmatpush.bf16.msk.msra.mxu1 %vm5291_vm5, %v5292_v13  ;;  %vm9742_vm5 = vcmp.gt.f32.partialorder %v9706_v54, 0.0 }
 0x76a   : > { %v7835_v14 = vpop.f32.mrf.mxu2  ;;  %5251 = vmatmul.msk.f32.gmra.mxu3 %vm9392_vm8, %v2177_v5  ;;  %v2180_v5 = vpop.trf.xlu2 }
 0x76b   : > { %v3138_v40 = vsel %vm9375_vm3, %v7835_v14, 0.0 }
 0x76c   : > { %v3297_v41 = vsel %vm9735_vm1, %v3138_v40, 0.0  ;;  %vm9743_vm1 = vcmp.gt.f32.partialorder %v9708_v11, 0.0  ;;  %v9768_v40 = vld [vmem:[#allocation55_spill] sm:$0xff] }
 0x76d   : > { %v3298_v49 = vadd.f32 %v3297_v41, %v3296_v21  ;;  %5296 = vmatpush.bf16.msk.msra.mxu1 %vm5294_vm11, %v5295_v57  ;;  %v7848_v48 = vpop.f32.mrf.mxu3  ;;  %vm5297_vm7 = vmpackc.low %vm9743_vm1, %vm9742_vm5  ;;  %v5888_v21 = vld [vmem:[%s6049_s20 + $0x1a8] sm:$0xff]  ;;  %vm9745_vm11 = vcmask 261120   ;;  %vm9747_vm5 = vcmp.gt.f32.partialorder %v9705_v34, 0.0  ;;  %v9756_v34 = vld [vmem:[#allocation56_spill] sm:$0xff] }
 0x76e   : > { %9738 = vst [vmem:[#allocation21_spill] sm:$0xff] %v7848_v48  ;;  %v7853_v59 = vsel %vm9740_vm13, %v7848_v48, 0.0  ;;  %5848 = vxpose.binary.xlu1.c.b16.cont [6/16] (narrow) %v5889_v47, %v5888_v21, 32  ;;  %vm9746_vm13 = vcmp.gt.f32.partialorder %v9703_v1, 0.0  ;;  %v2051_v1 = vpop.trf.xlu1  ;;  %v9792_v57 = vld [vmem:[#allocation91_spill] sm:$0xff] }
 0x76f   : > { %9741 = vst [vmem:[#allocation20_spill] sm:$0xff] %v7853_v59  ;;  %5185 = vmatmul.msk.f32.gmra.mxu2 %vm9392_vm8, %v2047_v33  ;;  %vm5300_vm1 = vmpackc.low %vm9747_vm5, %vm9746_vm13  ;;  %vm9377_vm5 = vcmp.gt.f32.partialorder %v9756_v34, 0.0 }
 0x771   : > { %5299 = vmatpush.bf16.msk.msra.mxu1 %vm5297_vm7, %v5298_v39  ;;  %vm9751_vm7 = vcmp.gt.f32.partialorder %v9750_v51, 0.0 }
 0x772   : > { %v7867_v6 = vpop.f32.mrf.mxu2  ;;  %5252 = vmatmul.msk.f32.gmra.mxu3 %vm9392_vm8, %v2178_v58  ;;  %v2181_v46 = vpop.trf.xlu2 }
 0x773   : > { %v3139_v53 = vsel %vm9374_vm9, %v7867_v6, 0.0  ;;  %vm9754_vm9 = vcmp.gt.f32.partialorder %v9701_v52, 0.0 }
 0x774   : > { %v3299_v33 = vsel %vm9745_vm11, %v3139_v53, 0.0  ;;  %vm9753_vm11 = vcmp.gt.f32.partialorder %v9699_v0, 0.0 }
 0x775   : > { %v3300_v11 = vadd.f32 %v3299_v33, %v3298_v49  ;;  %5302 = vmatpush.bf16.msk.msra.mxu1 %vm5300_vm1, %v9748_v20  ;;  %v7883_v58 = vpop.f32.mrf.mxu3  ;;  %vm5303_vm13 = vmpackc.low %vm9754_vm9, %vm9753_vm11  ;;  %vm9757_vm1 = vcmask 261120   ;;  %vm9758_vm9 = vcmp.gt.f32.partialorder %v9689_v42, 0.0  ;;  %v5890_v42 = vld [vmem:[%s6049_s20 + $0x1b0] sm:$0xff] }
 0x776   : > { %9749 = vst [vmem:[#allocation159_spill] sm:$0xff] %v7883_v58  ;;  %v7888_v29 = vsel %vm9751_vm7, %v7883_v58, 0.0  ;;  %vm9759_vm7 = vcmp.gt.f32.partialorder %v9697_v43, 0.0  ;;  %v9767_v43 = vpack.c.bf16 %v7579_v30, %v7548_v50 }
 0x777   : > { %9752 = vst [vmem:[#allocation19_spill] sm:$0xff] %v7888_v29  ;;  %5186 = vmatmul.msk.f32.gmra.mxu2 %vm9392_vm8, %v2048_v7  ;;  %vm5306_vm11 = vmpackc.low %vm9759_vm7, %vm9758_vm9  ;;  %vm9766_vm9 = vcmp.gt.f32.partialorder %v9680_v26, 0.0 }
 0x779   : > { %5305 = vmatpush.bf16.msk.msra.mxu1 %vm5303_vm13, %v9755_v23 }
 0x77a   : > { %v7899_v22 = vpop.f32.mrf.mxu2  ;;  %5253 = vmatmul.msk.f32.gmra.mxu3 %vm9392_vm8, %v2179_v27  ;;  %v9762_v27 = vld [vmem:[#allocation68_spill] sm:$0xff]  ;;  %v2182_v36 = vpop.trf.xlu2 }
 0x77b   : > { %v3140_v0 = vsel %vm9377_vm5, %v7899_v22, 0.0  ;;  %vm9763_vm13 = vcmp.gt.f32.partialorder %v9762_v27, 0.0 }
 0x77c   : > { %v3301_v52 = vsel %vm9757_vm1, %v3140_v0, 0.0  ;;  %vm9765_vm1 = vcmp.gt.f32.partialorder %v9672_v8, 0.0  ;;  %v5892_v0 = vld [vmem:[%s6049_s20 + $0x1b8] sm:$0xff] }
 0x77d   : > { %v3302_v12 = vadd.f32 %v3301_v52, %v3300_v11  ;;  %5308 = vmatpush.bf16.msk.msra.mxu1 %vm5306_vm11, %v9760_v9  ;;  %v7913_v7 = vpop.f32.mrf.mxu3  ;;  %vm5309_vm7 = vmpackc.low %vm9766_vm9, %vm9765_vm1  ;;  %vm9376_vm11 = vcmp.gt.f32.partialorder %v9768_v40, 0.0  ;;  %vm9772_vm1 = vcmp.gt.f32.partialorder %v9771_v63, 0.0  ;;  %v5893_v52 = vld [vmem:[%s6049_s20 + $0x1f8] sm:$0xff]  ;;  %v9785_v63 = vld [vmem:[#allocation48_spill] sm:$0xff] }
 0x77e   : > { %9761 = vst [vmem:[#allocation39_spill] sm:$0xff] %v7913_v7  ;;  %v7918_v13 = vsel %vm9763_vm13, %v7913_v7, 0.0  ;;  %5849 = vxpose.binary.xlu1.c.b16.cont [7/16] (narrow) %v5891_v45, %v5890_v42, 32  ;;  %vm9769_vm13 = vcmask 261120   ;;  %vm9383_vm3 = vcmp.gt.f32.partialorder %v9785_v63, 0.0  ;;  %v9797_v42 = vld [vmem:[#allocation92_spill] sm:$0xff] }
 0x77f   : > { %9764 = vst [vmem:[#allocation160_spill] sm:$0xff] %v7918_v13  ;;  %5187 = vmatmul.msk.f32.gmra.mxu2 %vm9392_vm8, %v2049_v2  ;;  %v2052_v2 = vpop.trf.xlu1  ;;  %v9816_v7 = vld [vmem:[#allocation36_spill] sm:$0xff] }
 0x781   : > { %5311 = vmatpush.bf16.msk.msra.mxu1 %vm5309_vm7, %v9767_v43  ;;  %vm9775_vm7 = vmmov %vm9769_vm13 }
 0x782   : > { %v7933_v41 = vpop.f32.mrf.mxu2  ;;  %5254 = vmatmul.msk.f32.gmra.mxu3 %vm9392_vm8, %v2180_v5  ;;  %v9774_v5 = vld [vmem:[#allocation52_spill] sm:$0xff]  ;;  %v2183_v53 = vpop.trf.xlu2 }
 0x783   : > { %v3141_v8 = vsel %vm9376_vm11, %v7933_v41, 0.0  ;;  %vm9379_vm9 = vcmp.gt.f32.partialorder %v9774_v5, 0.0 }
 0x784   : > { %v3303_v49 = vsel %vm9769_vm13, %v3141_v8, 0.0  ;;  %5752 = vmatmul.lmr.bf16.vlgmr.msra.gmra.4.mxu1 }
 0x785   : > { %v3304_v50 = vadd.f32 %v3303_v49, %v3302_v12  ;;  %v7942_v30 = vpop.f32.mrf.mxu3  ;;  %v9780_v12 = vld [vmem:[#allocation50_spill] sm:$0xff]  ;;  %v9782_v49 = vld [vmem:[#allocation85_spill] sm:$0xff] }
 0x786   : > { %9770 = vst [vmem:[#allocation17_spill] sm:$0xff] %v7942_v30  ;;  %v7947_v39 = vsel %vm9772_vm1, %v7942_v30, 0.0  ;;  %vm9378_vm1 = vcmp.gt.f32.partialorder %v9780_v12, 0.0 }
 0x787   : > { %9773 = vst [vmem:[#allocation40_spill] sm:$0xff] %v7947_v39  ;;  %5188 = vmatmul.msk.f32.gmra.mxu2 %vm9392_vm8, %v2050_v19  ;;  %v2053_v11 = vpop.trf.xlu1  ;;  %v9777_v19 = vld [vmem:[#allocation80_spill] sm:$0xff] }
 0x788   : > { %vm9778_vm13 = vcmp.gt.f32.partialorder %v9777_v19, 0.0 }
 0x78a   : > { %v7951_v21 = vpop.f32.mrf.mxu2  ;;  %5255 = vmatmul.msk.f32.gmra.mxu3 %vm9392_vm8, %v2181_v46  ;;  %v2184_v8 = vpop.trf.xlu2 }
 0x78b   : > { %v3142_v47 = vsel %vm9379_vm9, %v7951_v21, 0.0 }
 0x78c   : > { %v3305_v33 = vsel %vm9775_vm7, %v3142_v47, 0.0  ;;  %5753 = vmatmul.lmr.bf16.gmra.4.mxu1 }
 0x78d   : > { %v3306_v20 = vadd.f32 %v3305_v33, %v3304_v50  ;;  %v7958_v51 = vpop.f32.mrf.mxu3 }
 0x78e   : > { %9776 = vst [vmem:[#allocation161_spill] sm:$0xff] %v7958_v51  ;;  %v7963_v23 = vsel %vm9778_vm13, %v7958_v51, 0.0  ;;  %5850 = vxpose.binary.xlu1.c.b16.end [8/16] (narrow) %v5893_v52, %v5892_v0, 32  ;;  %vm9783_vm13 = vcmp.gt.f32.partialorder %v9782_v49, 0.0  ;;  %v9787_v52 = vld [vmem:[#allocation86_spill] sm:$0xff] }
 0x78f   : > { %9779 = vst [vmem:[#allocation18_spill] sm:$0xff] %v7963_v23  ;;  %5189 = vmatmul.msk.f32.gmra.mxu2 %vm9392_vm8, %v2051_v1  ;;  %v9790_v49 = vld [vmem:[#allocation46_spill] sm:$0xff] }
 0x790   : > { %vm9380_vm11 = vcmp.gt.f32.partialorder %v9790_v49, 0.0 }
 0x792   : > { %v7971_v9 = vpop.f32.mrf.mxu2  ;;  %5256 = vmatmul.msk.f32.gmra.mxu3 %vm9392_vm8, %v2182_v36  ;;  %v2054_v36 = vpop.trf.xlu1 }
 0x793   : > { %v3143_v27 = vsel %vm9378_vm1, %v7971_v9, 0.0 }
 0x794   : > { %v3307_v45 = vsel %vm9775_vm7, %v3143_v27, 0.0  ;;  %5754 = vmatmul.lmr.bf16.gmra.4.mxu1  ;;  %v9795_v27 = vld [vmem:[#allocation44_spill] sm:$0xff] }
 0x795   : > { %v3308_v1 = vadd.f32 %v3307_v45, %v3306_v20  ;;  %v7980_v43 = vpop.f32.mrf.mxu3  ;;  %vm9386_vm5 = vcmp.gt.f32.partialorder %v9795_v27, 0.0 }
 0x796   : > { %9781 = vst [vmem:[#allocation53_spill] sm:$0xff] %v7980_v43  ;;  %v7985_v50 = vsel %vm9783_vm13, %v7980_v43, 0.0  ;;  %vm9788_vm13 = vcmp.gt.f32.partialorder %v9787_v52, 0.0 }
 0x797   : > { %9784 = vst [vmem:[#allocation58_spill] sm:$0xff] %v7985_v50  ;;  %5190 = vmatmul.msk.f32.gmra.mxu2 %vm9392_vm8, %v2052_v2  ;;  %v9804_v50 = vld [vmem:[#allocation42_spill] sm:$0xff] }
 0x798   : > { %vm9391_vm9 = vcmp.gt.f32.partialorder %v9804_v50, 0.0 }
 0x79a   : > { %v7989_v47 = vpop.f32.mrf.mxu2  ;;  %5257 = vmatmul.msk.f32.gmra.mxu3 %vm9392_vm8, %v2183_v53  ;;  %v2185_v53 = vpop.trf.xlu2 }
 0x79b   : > { %v3144_v33 = vsel %vm9383_vm3, %v7989_v47, 0.0  ;;  %v2055_v45 = vpop.trf.xlu1  ;;  %vm3022_vm3 = vcmp.gt.f32.partialorder %v9811_v56, 0.0 }
 0x79c   : > { %v3309_v20 = vsel %vm9775_vm7, %v3144_v33, 0.0  ;;  %5755 = vmatmul.lmr.bf16.gmra.4.mxu1  ;;  %v9801_v33 = vld [vmem:[#allocation98_spill] sm:$0xff] }
 0x79d   : > { %v3310_v19 = vadd.f32 %v3309_v20, %v3308_v1  ;;  %v7996_v0 = vpop.f32.mrf.mxu3 }
 0x79e   : > { %9786 = vst [vmem:[#allocation54_spill] sm:$0xff] %v7996_v0  ;;  %v8001_v2 = vsel %vm9788_vm13, %v7996_v0, 0.0  ;;  %vm9793_vm13 = vcmp.gt.f32.partialorder %v9792_v57, 0.0 }
 0x79f   : > { %9789 = vst [vmem:[#allocation57_spill] sm:$0xff] %v8001_v2  ;;  %5191 = vmatmul.msk.f32.gmra.mxu2 %vm9392_vm8, %v2053_v11 }
 0x7a2   : > { %v8007_v61 = vpop.f32.mrf.mxu2  ;;  %5258 = vmatmul.msk.f32.gmra.mxu3 %vm9392_vm8, %v2184_v8  ;;  %v2186_v8 = vpop.trf.xlu2 }
 0x7a3   : > { %v3145_v1 = vsel %vm9380_vm11, %v8007_v61, 0.0  ;;  %5764 = vllmr.4.mxu1  ;;  %v2056_v26 = vpop.trf.xlu1  ;;  %vm9807_vm11 = vmmov %vm9775_vm7 }
 0x7a4   : > { %v3311_v20 = vsel %vm9775_vm7, %v3145_v1, 0.0 }
 0x7a5   : > { %v3312_v52 = vadd.f32 %v3311_v20, %v3310_v19  ;;  %v8016_v11 = vpop.f32.mrf.mxu3 }
 0x7a6   : > { %9791 = vst [vmem:[#allocation67_spill] sm:$0xff] %v8016_v11  ;;  %v8021_v46 = vsel %vm9793_vm13, %v8016_v11, 0.0  ;;  %vm9798_vm13 = vcmp.gt.f32.partialorder %v9797_v42, 0.0 }
 0x7a7   : > { %9794 = vst [vmem:[#allocation56_spill] sm:$0xff] %v8021_v46  ;;  %5192 = vmatmul.msk.f32.gmra.mxu2 %vm9392_vm8, %v2054_v36 }
 0x7aa   : > { %v8025_v54 = vpop.f32.mrf.mxu2  ;;  %5259 = vmatmul.msk.f32.gmra.mxu3 %vm9392_vm8, %v2185_v53  ;;  %v9800_v53 = vld [vmem:[#allocation43_spill] sm:$0xff] }
 0x7ab   : > { %v3146_v19 = vsel %vm9386_vm5, %v8025_v54, 0.0  ;;  %vm9385_vm1 = vcmp.gt.f32.partialorder %v9800_v53, 0.0 }
 0x7ac   : > { %v3313_v1 = vsel %vm9775_vm7, %v3146_v19, 0.0  ;;  %v2187_v19 = vpop.trf.xlu2 }
 0x7ad   : > { %v3314_v20 = vadd.f32 %v3313_v1, %v3312_v52  ;;  %v8032_v57 = vpop.f32.mrf.mxu3  ;;  %v2057_v1 = vpop.trf.xlu1 }
 0x7ae   : > { %9796 = vst [vmem:[#allocation68_spill] sm:$0xff] %v8032_v57  ;;  %v8037_v36 = vsel %vm9798_vm13, %v8032_v57, 0.0  ;;  %vm9802_vm13 = vcmp.gt.f32.partialorder %v9801_v33, 0.0 }
 0x7af   : > { %9799 = vst [vmem:[#allocation55_spill] sm:$0xff] %v8037_v36  ;;  %5193 = vmatmul.msk.f32.gmra.mxu2 %vm9392_vm8, %v2055_v45 }
 0x7b2   : > { %v8043_v46 = vpop.f32.mrf.mxu2  ;;  %5260 = vmatmul.msk.f32.gmra.mxu3 %vm9392_vm8, %v2186_v8 }
 0x7b3   : > { %v3147_v52 = vsel %vm9385_vm1, %v8043_v46, 0.0  ;;  %vm9813_vm1 = vmmov %vm9807_vm11 }
 0x7b4   : > { %v3315_v42 = vsel %vm9775_vm7, %v3147_v52, 0.0  ;;  %v2188_v33 = vpop.trf.xlu2 }
 0x7b5   : > { %v3316_v36 = vadd.f32 %v3315_v42, %v3314_v20  ;;  %v8050_v2 = vpop.f32.mrf.mxu3  ;;  %v2058_v39 = vpop.trf.xlu1 }
 0x7b6   : > { %v8055_v45 = vsel %vm9802_vm13, %v8050_v2, 0.0 }
 0x7b7   : > { %9803 = vst [vmem:[#allocation79_spill] sm:$0xff] %v8055_v45  ;;  %5194 = vmatmul.msk.f32.gmra.mxu2 %vm9392_vm8, %v2056_v26  ;;  %v9806_v26 = vld [vmem:[#allocation41_spill] sm:$0xff] }
 0x7b8   : > { %vm9389_vm13 = vcmp.gt.f32.partialorder %v9806_v26, 0.0 }
 0x7ba   : > { %v8059_v8 = vpop.f32.mrf.mxu2  ;;  %5261 = vmatmul.msk.f32.gmra.mxu3 %vm9392_vm8, %v2187_v19 }
 0x7bb   : > { %v3148_v52 = vsel %vm9391_vm9, %v8059_v8, 0.0 }
 0x7bc   : > { %v3317_v20 = vsel %vm9775_vm7, %v3148_v52, 0.0 }
 0x7bd   : > { %v3318_v42 = vadd.f32 %v3317_v20, %v3316_v36  ;;  %v8066_v23 = vpop.f32.mrf.mxu3  ;;  %v9808_v36 = vld [vmem:[#allocation104_spill] sm:$0xff]  ;;  %v2059_v20 = vpop.trf.xlu1 }
 0x7be   : > { %9805 = vst [vmem:[#allocation52_spill] sm:$0xff] %v8066_v23  ;;  %vm9809_vm7 = vcmp.gt.f32.partialorder %v9808_v36, 0.0  ;;  %v9812_v36 = vld [vmem:[#allocation37_spill] sm:$0xff] }
 0x7bf   : > { %5195 = vmatmul.msk.f32.gmra.mxu2 %vm9392_vm8, %v2057_v1  ;;  %v2189_v1 = vpop.trf.xlu2 }
 0x7c2   : > { %v2723_v45 = vpop.f32.mrf.mxu2  ;;  %5262 = vmatmul.msk.f32.gmra.mxu3 %vm9392_vm8, %v2188_v33 }
 0x7c3   : > { %v3149_v19 = vsel %vm9389_vm13, %v2723_v45, 0.0  ;;  %vm3025_vm13 = vcmp.gt.f32.partialorder %v9816_v7, 0.0 }
 0x7c4   : > { %v3319_v44 = vsel %vm9807_vm11, %v3149_v19, 0.0 }
 0x7c5   : > { %v3320_v13 = vadd.f32 %v3319_v44, %v3318_v42  ;;  %v8074_v29 = vpop.f32.mrf.mxu3  ;;  %v2060_v48 = vpop.trf.xlu1 }
 0x7c6   : > { %v8079_v52 = vsel %vm9809_vm7, %v8074_v29, 0.0  ;;  %vm3023_vm7 = vcmp.gt.f32.partialorder %v9812_v36, 0.0  ;;  %v9837_v36 = vpack.c.bf16 %v7971_v9, %v7951_v21  ;;  %v9844_v21 = vld [vmem:[#allocation150_spill] sm:$0xff] }
 0x7c7   : > { %9810 = vst [vmem:[#allocation80_spill] sm:$0xff] %v8079_v52  ;;  %5196 = vmatmul.msk.f32.gmra.mxu2 %vm9392_vm8, %v2058_v39 }
 0x7ca   : > { %v2726_v33 = vpop.f32.mrf.mxu2  ;;  %5263 = vmatmul.msk.f32.gmra.mxu3 %vm9392_vm8, %v2189_v1  ;;  %v9814_v1 = vld [vmem:[#allocation35_spill] sm:$0xff] }
 0x7cb   : > { %v3150_v19 = vsel %vm3022_vm3, %v2726_v33, 0.0  ;;  %vm3024_vm5 = vcmp.gt.f32.partialorder %v9814_v1, 0.0  ;;  %v9817_v1 = vld [vmem:[#allocation147_spill] sm:$0xff] }
 0x7cc   : > { %v3321_v44 = vsel %vm9807_vm11, %v3150_v19, 0.0  ;;  %vm9815_vm11 = vmmov %vm9813_vm1 }
 0x7cd   : > { %v3322_v42 = vadd.f32 %v3321_v44, %v3320_v13  ;;  %v2061_v19 = vpop.trf.xlu1  ;;  %vm5312_vm9 = vmpackc.low %vm3025_vm13, %vm3024_vm5  ;;  %v8162_v9 = vpop.f32.mrf.mxu3 }
 0x7cf   : > { %5197 = vmatmul.msk.f32.gmra.mxu2 %vm9392_vm8, %v2059_v20 }
 0x7d2   : > { %v2729_v52 = vpop.f32.mrf.mxu2  ;;  %5790 = vmatmul.lmr.bf16.vlgmr.msra.gmra.4.mxu3 }
 0x7d3   : > { %v3151_v39 = vsel %vm3023_vm7, %v2729_v52, 0.0 }
 0x7d4   : > { %v3323_v59 = vsel %vm9813_vm1, %v3151_v39, 0.0 }
 0x7d5   : > { %v3324_v28 = vadd.f32 %v3323_v59, %v3322_v42  ;;  %v5316_v42 = vpack.c.bf16 %v2729_v52, %v2726_v33  ;;  %v5322_v52 = vpack.c.bf16 %v8043_v46, %v8025_v54  ;;  %v9823_v33 = vld [vmem:[#allocation148_spill] sm:$0xff] }
 0x7d7   : > { %5198 = vmatmul.msk.f32.gmra.mxu2 %vm9392_vm8, %v2060_v48 }
 0x7da   : > { %v2732_v58 = vpop.f32.mrf.mxu2  ;;  %5791 = vmatmul.lmr.bf16.gmra.4.mxu3 }
 0x7db   : > { %v3152_v13 = vsel %vm3024_vm5, %v2732_v58, 0.0 }
 0x7dc   : > { %v3325_v20 = vsel %vm9815_vm11, %v3152_v13, 0.0  ;;  %vm5315_vm11 = vmpackc.low %vm3023_vm7, %vm3022_vm3  ;;  %vm9824_vm3 = vcmask 31744   ;;  %vm9825_vm7 = vcmp.gt.f32.partialorder %v9795_v27, 0.0  ;;  %v9832_v27 = vpack.c.bf16 %v8007_v61, %v7989_v47  ;;  %v9848_v47 = vld [vmem:[#allocation127_spill] sm:$0xff] }
 0x7dd   : > { %v3326_v44 = vadd.f32 %v3325_v20, %v3324_v28 }
 0x7df   : > { %5199 = vmatmul.msk.f32.gmra.mxu2 %vm9392_vm8, %v2061_v19  ;;  %v9852_v19 = vld [vmem:[#allocation165_spill] sm:$0xff] }
 0x7e2   : > { %v2735_v37 = vpop.f32.mrf.mxu2  ;;  %5792 = vmatmul.lmr.bf16.gmra.4.mxu3 }
 0x7e3   : > { %v3153_v30 = vsel %vm3025_vm13, %v2735_v37, 0.0  ;;  %v5313_v39 = vpack.c.bf16 %v2735_v37, %v2732_v58  ;;  %v5319_v37 = vpack.c.bf16 %v2723_v45, %v8059_v8  ;;  %v9818_v58 = vld [vmem:[#allocation47_spill] sm:$0xff]  ;;  %vm9821_vm13 = vcmp.gt.f32.partialorder %v9804_v50, 0.0  ;;  %v9827_v50 = vld [vmem:[#allocation49_spill] sm:$0xff] }
 0x7e4   : > { %v3327_v59 = vsel %vm9813_vm1, %v3153_v30, 0.0  ;;  %vm9819_vm5 = vcmp.gt.f32.partialorder %v9818_v58, 0.0  ;;  %v9860_v58 = vld [vmem:[#allocation151_spill] sm:$0xff] }
 0x7e5   : > { %v3328_v48 = vadd.f32 %v3327_v59, %v3326_v44  ;;  %5314 = vmatpush.bf16.msk.msra.mxu3 %vm5312_vm9, %v5313_v39  ;;  %vm9820_vm9 = vmmov %vm9813_vm1  ;;  %vm9822_vm1 = vcmp.gt.f32.partialorder %v9806_v26, 0.0  ;;  %v9853_v39 = vld [vmem:[#allocation63_spill] sm:$0xff] }
 0x7e7   : > { %5200 = vmatmul.msk.f32.gmra.mxu2 %vm9392_vm8, %v9817_v1  ;;  %vm5318_vm8 = vmpackc.low %vm9822_vm1, %vm9821_vm13  ;;  %vm9830_vm13 = vcmp.gt.f32.partialorder %v9785_v63, 0.0  ;;  %vm9831_vm1 = vcmp.gt.f32.partialorder %v9790_v49, 0.0  ;;  %v9838_v49 = vld [vmem:[#allocation61_spill] sm:$0xff]  ;;  %v9859_v1 = vld [vmem:[#allocation163_spill] sm:$0xff] }
 0x7e9   : > { %5317 = vmatpush.bf16.msk.msra.mxu3 %vm5315_vm11, %v5316_v42  ;;  %vm9826_vm11 = vcmp.gt.f32.partialorder %v9800_v53, 0.0  ;;  %v9833_v53 = vld [vmem:[#allocation149_spill] sm:$0xff]  ;;  %v9858_v42 = vld [vmem:[#allocation162_spill] sm:$0xff] }
 0x7ea   : > { %v8104_v28 = vpop.f32.mrf.mxu2  ;;  %5793 = vmatmul.lmr.bf16.gmra.4.mxu3 }
 0x7eb   : > { %v3154_v7 = vsel %vm9819_vm5, %v8104_v28, 0.0  ;;  %vm5321_vm5 = vmpackc.low %vm9826_vm11, %vm9825_vm7  ;;  %vm9834_vm7 = vcmask 31744   ;;  %vm9835_vm11 = vcmp.gt.f32.partialorder %v9774_v5, 0.0 }
 0x7ec   : > { %v3329_v30 = vsel %vm9820_vm9, %v3154_v7, 0.0  ;;  %vm9828_vm9 = vcmp.gt.f32.partialorder %v9827_v50, 0.0  ;;  %v8197_v7 = vpop.f32.mrf.mxu3 }
 0x7ed   : > { %v3330_v56 = vadd.f32 %v3329_v30, %v3328_v48  ;;  %5320 = vmatpush.bf16.msk.msra.mxu3 %vm5318_vm8, %v5319_v37  ;;  %vm9829_vm8 = vcmask 261120   ;;  %v9857_v48 = vld [vmem:[#allocation129_spill] sm:$0xff]  ;;  %v5364_v37 = vpack.c.bf16 %v9859_v1, %v9858_v42 }
 0x7ef   : > { %5201 = vmatmul.msk.f32.gmra.mxu2 %vm9824_vm3, %v9823_v33  ;;  %vm5324_vm3 = vmpackc.low %vm9831_vm1, %vm9830_vm13  ;;  %vm9840_vm13 = vcmask 261120   ;;  %vm9841_vm1 = vcmp.gt.f32.partialorder %v9756_v34, 0.0  ;;  %v9849_v34 = vpack.c.bf16 %v7867_v6, %v7835_v14  ;;  %v9856_v14 = vld [vmem:[#allocation128_spill] sm:$0xff] }
 0x7f1   : > { %5323 = vmatpush.bf16.msk.msra.mxu3 %vm5321_vm5, %v5322_v52  ;;  %vm9836_vm5 = vcmp.gt.f32.partialorder %v9780_v12, 0.0  ;;  %v9843_v12 = vpack.c.bf16 %v7933_v41, %v7899_v22  ;;  %v9850_v22 = vld [vmem:[#allocation126_spill] sm:$0xff]  ;;  %v9851_v41 = vld [vmem:[#allocation164_spill] sm:$0xff] }
 0x7f2   : > { %v8123_v45 = vpop.f32.mrf.mxu2  ;;  %5802 = vllmr.4.mxu3  ;;  %v5361_v44 = vpack.c.bf16 %v9852_v19, %v9851_v41 }
 0x7f3   : > { %v3155_v8 = vsel %vm9828_vm9, %v8123_v45, 0.0  ;;  %vm5327_vm9 = vmpackc.low %vm9836_vm5, %vm9835_vm11  ;;  %vm9845_vm11 = vcmask 31744   ;;  %vm9846_vm5 = vcmp.gt.f32.partialorder %v9734_v55, 0.0 }
 0x7f4   : > { %v3331_v54 = vsel %vm9829_vm8, %v3155_v8, 0.0  ;;  %vm9839_vm8 = vcmp.gt.f32.partialorder %v9838_v49, 0.0  ;;  %v9865_v8 = vld [vmem:[#allocation152_spill] sm:$0xff] }
 0x7f5   : > { %v3332_v46 = vadd.f32 %v3331_v54, %v3330_v56  ;;  %5326 = vmatpush.bf16.msk.msra.mxu3 %vm5324_vm3, %v9832_v27  ;;  %vm9842_vm3 = vcmp.gt.f32.partialorder %v9768_v40, 0.0  ;;  %v5839_v40 = vpop.trf.xlu0  ;;  %v9862_v56 = vld [vmem:[#allocation75_spill] sm:$0xff] }
 0x7f7   : > { %5202 = vmatmul.msk.f32.gmra.mxu2 %vm9834_vm7, %v9833_v53  ;;  %vm5330_vm7 = vmpackc.low %vm9842_vm3, %vm9841_vm1  ;;  %vm9394_vm1 = vcmp.gt.f32.partialorder %v9850_v22, 0.0  ;;  %vm9854_vm3 = vcmp.gt.f32.partialorder %v9853_v39, 0.0  ;;  %v9875_v39 = vld [vmem:[#allocation154_spill] sm:$0xff] }
 0x7f9   : > { %5329 = vmatpush.bf16.msk.msra.mxu3 %vm5327_vm9, %v9837_v36  ;;  %vm9847_vm9 = vcmp.gt.f32.partialorder %v9744_v31, 0.0  ;;  %v8214_v36 = vpop.f32.mrf.mxu3 }
 0x7fa   : > { %v8147_v63 = vpop.f32.mrf.mxu2 }
 0x7fb   : > { %v3156_v13 = vsel %vm9839_vm8, %v8147_v63, 0.0  ;;  %vm5333_vm8 = vmpackc.low %vm9847_vm9, %vm9846_vm5  ;;  %vm3055_vm5 = vcmp.gt.f32.partialorder %v9856_v14, 0.0  ;;  %vm3054_vm9 = vcmp.gt.f32.partialorder %v9857_v48, 0.0 }
 0x7fc   : > { %v3333_v61 = vsel %vm9840_vm13, %v3156_v13, 0.0  ;;  %vm9393_vm13 = vcmp.gt.f32.partialorder %v9848_v47, 0.0 }
 0x7fd   : > { %v3334_v5 = vadd.f32 %v3333_v61, %v3332_v46  ;;  %5332 = vmatpush.bf16.msk.msra.mxu3 %vm5330_vm7, %v9843_v12  ;;  %vm9855_vm7 = vcmask 261120   ;;  %v9867_v46 = vld [vmem:[#allocation77_spill] sm:$0xff]  ;;  %v9872_v12 = vld [vmem:[#allocation82_spill] sm:$0xff] }
 0x7fe   : > { %v9870_v61 = vld [vmem:[#allocation153_spill] sm:$0xff] }
 0x7ff   : > { %5203 = vmatmul.msk.f32.gmra.mxu2 %vm9845_vm11, %v9844_v21  ;;  %vm5360_vm11 = vmpackc.low %vm9393_vm13, %vm9394_vm1 }
 0x801   : > { %5335 = vmatpush.bf16.msk.msra.mxu3 %vm5333_vm8, %v9849_v34  ;;  %vm9861_vm8 = vcmask 31744  }
 0x802   : > { %v8172_v20 = vpop.f32.mrf.mxu2  ;;  %vm9866_vm13 = vmmov %vm9861_vm8 }
 0x803   : > { %v3157_v55 = vsel %vm9854_vm3, %v8172_v20, 0.0  ;;  %vm5363_vm3 = vmpackc.low %vm3055_vm5, %vm3054_vm9 }
 0x804   : > { %v3335_v59 = vsel %vm9855_vm7, %v3157_v55, 0.0  ;;  %3797 = vmatmul.bf16.vlgmr.msra.gmra.mxu3 %v5839_v40  ;;  %vm9863_vm7 = vcmp.gt.f32.partialorder %v9862_v56, 0.0 }
 0x805   : > { %v3336_v6 = vadd.f32 %v3335_v59, %v3334_v5  ;;  %5362 = vmatpush.bf16.msk.msra.mxu3 %vm5360_vm11, %v5361_v44  ;;  %vm9864_vm11 = vcmask 261120   ;;  %v8225_v44 = vpop.f32.mrf.mxu3  ;;  %v9877_v59 = vld [vmem:[#allocation83_spill] sm:$0xff] }
 0x807   : > { %5204 = vmatmul.msk.f32.gmra.mxu2 %vm9861_vm8, %v9860_v58  ;;  %vm9868_vm8 = vcmp.gt.f32.partialorder %v9867_v46, 0.0 }
 0x809   : > { %5365 = vmatpush.bf16.msk.msra.mxu3 %vm5363_vm3, %v5364_v37  ;;  %vm9869_vm3 = vmmov %vm9864_vm11 }
 0x80a   : > { %v8199_v30 = vpop.f32.mrf.mxu2 }
 0x80b   : > { %v3158_v52 = vsel %vm9863_vm7, %v8199_v30, 0.0  ;;  %vm9871_vm7 = vmmov %vm9866_vm13 }
 0x80c   : > { %v3337_v33 = vsel %vm9864_vm11, %v3158_v52, 0.0  ;;  %vm9874_vm11 = vmmov %vm9869_vm3  ;;  %v9880_v52 = vld [vmem:[#allocation155_spill] sm:$0xff] }
 0x80d   : > { %v3338_v50 = vadd.f32 %v3337_v33, %v3336_v6  ;;  %v8239_v33 = vpop.f32.mrf.mxu3 }
 0x80f   : > { %5205 = vmatmul.msk.f32.gmra.mxu2 %vm9866_vm13, %v9865_v8  ;;  %vm9873_vm13 = vcmp.gt.f32.partialorder %v9872_v12, 0.0  ;;  %v9882_v8 = vld [vmem:[#allocation88_spill] sm:$0xff] }
 0x812   : > { %v8207_v54 = vpop.f32.mrf.mxu2 }
 0x813   : > { %v3159_v27 = vsel %vm9868_vm8, %v8207_v54, 0.0  ;;  %vm9876_vm8 = vmmov %vm9871_vm7 }
 0x814   : > { %v3339_v49 = vsel %vm9869_vm3, %v3159_v27, 0.0  ;;  %vm9878_vm3 = vcmp.gt.f32.partialorder %v9877_v59, 0.0  ;;  %v9890_v59 = vld [vmem:[#allocation157_spill] sm:$0xff] }
 0x815   : > { %v3340_v13 = vadd.f32 %v3339_v49, %v3338_v50 }
 0x817   : > { %5206 = vmatmul.msk.f32.gmra.mxu2 %vm9871_vm7, %v9870_v61  ;;  %vm9879_vm7 = vmmov %vm9874_vm11  ;;  %v8246_v61 = vpop.f32.mrf.mxu3 }
 0x81a   : > { %v8219_v5 = vpop.f32.mrf.mxu2 }
 0x81b   : > { %v3160_v21 = vsel %vm9873_vm13, %v8219_v5, 0.0  ;;  %vm9881_vm13 = vmmov %vm9876_vm8 }
 0x81c   : > { %v3341_v34 = vsel %vm9874_vm11, %v3160_v21, 0.0  ;;  %vm9883_vm11 = vcmp.gt.f32.partialorder %v9882_v8, 0.0  ;;  %v9887_v21 = vld [vmem:[#allocation89_spill] sm:$0xff] }
 0x81d   : > { %v3342_v40 = vadd.f32 %v3341_v34, %v3340_v13  ;;  %v9885_v13 = vld [vmem:[#allocation156_spill] sm:$0xff] }
 0x81f   : > { %5207 = vmatmul.msk.f32.gmra.mxu2 %vm9876_vm8, %v9875_v39  ;;  %vm9884_vm8 = vmmov %vm9879_vm7 }
 0x820   : > { %vm9889_vm1 = vmmov %vm9884_vm8 }
 0x822   : > { %v8229_v55 = vpop.f32.mrf.mxu2 }
 0x823   : > { %v3161_v6 = vsel %vm9878_vm3, %v8229_v55, 0.0  ;;  %vm9886_vm3 = vmmov %vm9881_vm13 }
 0x824   : > { %v3343_v58 = vsel %vm9879_vm7, %v3161_v6, 0.0  ;;  %vm9888_vm7 = vcmp.gt.f32.partialorder %v9887_v21, 0.0  ;;  %v9896_v21 = vld [vmem:[#allocation95_spill] sm:$0xff] }
 0x825   : > { %v3344_v56 = vadd.f32 %v3343_v58, %v3342_v40  ;;  %v9892_v58 = vld [vmem:[#allocation94_spill] sm:$0xff] }
 0x827   : > { %5208 = vmatmul.msk.f32.gmra.mxu2 %vm9881_vm13, %v9880_v52  ;;  %vm9891_vm13 = vmmov %vm9886_vm3 }
 0x82a   : > { %v2762_v50 = vpop.f32.mrf.mxu2 }
 0x82b   : > { %v3162_v46 = vsel %vm9883_vm11, %v2762_v50, 0.0  ;;  %vm9893_vm11 = vcmp.gt.f32.partialorder %v9892_v58, 0.0  ;;  %v9898_v58 = vld [vmem:[#allocation100_spill] sm:$0xff] }
 0x82c   : > { %v3345_v27 = vsel %vm9884_vm8, %v3162_v46, 0.0  ;;  %vm9894_vm8 = vmmov %vm9889_vm1 }
 0x82d   : > { %v3346_v49 = vadd.f32 %v3345_v27, %v3344_v56  ;;  %v8255_v56 = vpop.f32.mrf.mxu3  ;;  %v9895_v27 = vld [vmem:[#allocation158_spill] sm:$0xff] }
 0x82f   : > { %5209 = vmatmul.msk.f32.gmra.mxu2 %vm9886_vm3, %v9885_v13 }
 0x832   : > { %v2765_v12 = vpop.f32.mrf.mxu2 }
 0x833   : > { %v3163_v34 = vsel %vm9888_vm7, %v2765_v12, 0.0  ;;  %vm9897_vm7 = vcmp.gt.f32.partialorder %v9896_v21, 0.0 }
 0x834   : > { %v3347_v40 = vsel %vm9889_vm1, %v3163_v34, 0.0 }
 0x835   : > { %v3348_v39 = vadd.f32 %v3347_v40, %v3346_v49 }
 0x837   : > { %5210 = vmatmul.msk.f32.gmra.mxu2 %vm9891_vm13, %v9890_v59  ;;  %v8263_v59 = vpop.f32.mrf.mxu3  ;;  %vm9899_vm13 = vcmp.gt.f32.partialorder %v9898_v58, 0.0 }
 0x83a   : > { %v2768_v6 = vpop.f32.mrf.mxu2 }
 0x83b   : > { %v3164_v52 = vsel %vm9893_vm11, %v2768_v6, 0.0  ;;  %vm9900_vm11 = vmmov %vm9889_vm1 }
 0x83c   : > { %v3349_v8 = vsel %vm9894_vm8, %v3164_v52, 0.0 }
 0x83d   : > { %v3350_v46 = vadd.f32 %v3349_v8, %v3348_v39 }
 0x83f   : > { %5211 = vmatmul.msk.f32.gmra.mxu2 %vm9886_vm3, %v9895_v27  ;;  %v8268_v39 = vpop.f32.mrf.mxu3  ;;  %v9901_v27 = vld [vmem:[#allocation101_spill] sm:$0xff]  ;;  %vm9903_vm3 = vmmov %vm9889_vm1 }
 0x840   : > { %vm9902_vm8 = vcmp.gt.f32.partialorder %v9901_v27, 0.0 }
 0x842   : > { %v2771_v13 = vpop.f32.mrf.mxu2 }
 0x843   : > { %v3165_v34 = vsel %vm9897_vm7, %v2771_v13, 0.0 }
 0x844   : > { %v3351_v49 = vsel %vm9889_vm1, %v3165_v34, 0.0  ;;  %v9904_v34 = vld [vmem:[#allocation106_spill] sm:$0xff] }
 0x845   : > { %v3352_v40 = vadd.f32 %v3351_v49, %v3350_v46  ;;  %vm3040_vm7 = vcmp.gt.f32.partialorder %v9904_v34, 0.0  ;;  %v9918_v34 = vpack.c.bf16 %v8229_v55, %v8219_v5  ;;  %v9926_v55 = vpack.c.bf16 %v8172_v20, %v8147_v63 }
 0x846   : > { %v9957_v20 = vpack.c.bf16 %v7625_v25, %v7595_v4  ;;  %v9966_v4 = vld [vmem:[#allocation132_spill] sm:$0xff]  ;;  %v9967_v25 = vld [vmem:[#allocation131_spill] sm:$0xff] }
 0x847   : > { %v8274_v46 = vpop.f32.mrf.mxu3 }
 0x848   : > { %9905 = vst [vmem:[#allocation50_spill] sm:$0xff] %v8274_v46 }
 0x84a   : > { %v2774_v26 = vpop.f32.mrf.mxu2 }
 0x84b   : > { %v3166_v31 = vsel %vm9899_vm13, %v2774_v26, 0.0 }
 0x84c   : > { %v3353_v53 = vsel %vm9900_vm11, %v3166_v31, 0.0  ;;  %v9906_v31 = vld [vmem:[#allocation107_spill] sm:$0xff]  ;;  %vm9908_vm11 = vmmov %vm9889_vm1 }
 0x84d   : > { %v3354_v52 = vadd.f32 %v3353_v53, %v3352_v40  ;;  %vm3041_vm13 = vcmp.gt.f32.partialorder %v9906_v31, 0.0 }
 0x84f   : > { %v8278_v57 = vpop.f32.mrf.mxu3 }
 0x850   : > { %9907 = vst [vmem:[#allocation85_spill] sm:$0xff] %v8278_v57 }
 0x852   : > { %v2777_v8 = vpop.f32.mrf.mxu2 }
 0x853   : > { %v3167_v37 = vsel %vm9902_vm8, %v2777_v8, 0.0  ;;  %vm5336_vm8 = vmpackc.low %vm3041_vm13, %vm3040_vm7 }
 0x854   : > { %v3355_v21 = vsel %vm9903_vm3, %v3167_v37, 0.0  ;;  %v5840_v37 = vpop.trf.xlu0 }
 0x855   : > { %v3356_v51 = vadd.f32 %v3355_v21, %v3354_v52  ;;  %v5340_v21 = vpack.c.bf16 %v2777_v8, %v2774_v26 }
 0x85a   : > { %v2780_v49 = vpop.f32.mrf.mxu2 }
 0x85b   : > { %v3168_v43 = vsel %vm3040_vm7, %v2780_v49, 0.0  ;;  %vm9917_vm7 = vmmov %vm9889_vm1 }
 0x85c   : > { %v3357_v58 = vsel %vm9889_vm1, %v3168_v43, 0.0  ;;  %v9910_v43 = vld [vmem:[#allocation108_spill] sm:$0xff]  ;;  %v5841_v31 = vpop.trf.xlu0 }
 0x85d   : > { %v3358_v0 = vadd.f32 %v3357_v58, %v3356_v51  ;;  %v5343_v51 = vpack.c.bf16 %v2771_v13, %v2768_v6  ;;  %vm9911_vm3 = vcmp.gt.f32.partialorder %v9910_v43, 0.0  ;;  %3802 = vmatmul.bf16.gmra.mxu3 %v5841_v31  ;;  %v9915_v6 = vld [vmem:[#allocation109_spill] sm:$0xff]  ;;  %v9941_v43 = vpack.c.bf16 %v7752_v17, %v7740_v10 }
 0x862   : > { %v2783_v53 = vpop.f32.mrf.mxu2 }
 0x863   : > { %v3169_v40 = vsel %vm3041_vm13, %v2783_v53, 0.0  ;;  %v5337_v11 = vpack.c.bf16 %v2783_v53, %v2780_v49 }
 0x864   : > { %v3359_v27 = vsel %vm9908_vm11, %v3169_v40, 0.0  ;;  %v9946_v40 = vld [vmem:[#allocation72_spill] sm:$0xff] }
 0x865   : > { %v3360_v52 = vadd.f32 %v3359_v27, %v3358_v0  ;;  %5338 = vmatpush.bf16.msk.msra.mxu1 %vm5336_vm8, %v5337_v11  ;;  %v8291_v0 = vpop.f32.mrf.mxu3  ;;  %v5346_v11 = vpack.c.bf16 %v2765_v12, %v2762_v50  ;;  %v9921_v12 = vpack.c.bf16 %v8207_v54, %v8199_v30  ;;  %v9929_v30 = vld [vmem:[#allocation60_spill] sm:$0xff]  ;;  %v9930_v54 = vpack.c.bf16 %v8123_v45, %v8104_v28  ;;  %v9936_v28 = vld [vmem:[#allocation66_spill] sm:$0xff] }
 0x866   : > { %9913 = vst [vmem:[#allocation48_spill] sm:$0xff] %v8291_v0  ;;  %vm9401_vm13 = vcmp.gt.f32.partialorder %v9929_v30, 0.0  ;;  %v9937_v45 = vld [vmem:[#allocation64_spill] sm:$0xff]  ;;  %v9955_v27 = vpack.c.bf16 %v7666_v60, %v7653_v16 }
 0x867   : > { %vm9407_vm8 = vcmp.gt.f32.partialorder %v9937_v45, 0.0 }
 0x869   : > { %5341 = vmatpush.bf16.msk.msra.mxu1 %vm6909_vm14, %v5340_v21  ;;  %vm9916_vm14 = vcmp.gt.f32.partialorder %v9915_v6, 0.0 }
 0x86a   : > { %v8283_v23 = vpop.f32.mrf.mxu2 }
 0x86b   : > { %v3170_v58 = vsel %vm9911_vm3, %v8283_v23, 0.0 }
 0x86c   : > { %v3361_v49 = vsel %vm9889_vm1, %v3170_v58, 0.0 }
 0x86d   : > { %v3362_v53 = vadd.f32 %v3361_v49, %v3360_v52  ;;  %5344 = vmatpush.bf16.msk.msra.mxu1 %vm6873_vm4, %v5343_v51  ;;  %v8308_v50 = vpop.f32.mrf.mxu3  ;;  %v9923_v49 = vld [vmem:[#allocation111_spill] sm:$0xff]  ;;  %v9938_v51 = vpack.c.bf16 %v7777_v24, %v7768_v38  ;;  %v9963_v24 = vld [vmem:[#allocation33_spill] sm:$0xff] }
 0x86e   : > { %9920 = vst [vmem:[#allocation86_spill] sm:$0xff] %v8308_v50  ;;  %vm9924_vm4 = vcmp.gt.f32.partialorder %v9923_v49, 0.0 }
 0x871   : > { %5347 = vmatpush.bf16.msk.msra.mxu1 %vm6836_vm6, %v5346_v11  ;;  %vm9925_vm6 = vmmov %vm9889_vm1  ;;  %v9928_v11 = vld [vmem:[#allocation62_spill] sm:$0xff] }
 0x872   : > { %v8295_v8 = vpop.f32.mrf.mxu2 }
 0x873   : > { %v3171_v13 = vsel %vm9916_vm14, %v8295_v8, 0.0 }
 0x874   : > { %v3363_v52 = vsel %vm9917_vm7, %v3171_v13, 0.0 }
 0x875   : > { %v3364_v21 = vadd.f32 %v3363_v52, %v3362_v53  ;;  %5350 = vmatpush.bf16.msk.msra.mxu1 %vm6801_vm15, %v9918_v34  ;;  %vm9406_vm15 = vcmp.gt.f32.partialorder %v9928_v11, 0.0  ;;  %v8333_v6 = vpop.f32.mrf.mxu3  ;;  %v9933_v52 = vld [vmem:[#allocation112_spill] sm:$0xff] }
 0x876   : > { %9932 = vst [vmem:[#allocation46_spill] sm:$0xff] %v8333_v6  ;;  %vm5384_vm11 = vmpackc.low %vm9401_vm13, %vm9406_vm15 }
 0x879   : > { %5353 = vmatpush.bf16.msk.msra.mxu1 %vm6757_vm12, %v9921_v12  ;;  %vm9934_vm12 = vcmp.gt.f32.partialorder %v9933_v52, 0.0  ;;  %v9940_v12 = vld [vmem:[#allocation69_spill] sm:$0xff]  ;;  %v9948_v52 = vpack.c.bf16 %v7724_v15, %v7712_v18 }
 0x87a   : > { %v8315_v58 = vpop.f32.mrf.mxu2  ;;  %vm3069_vm14 = vcmp.gt.f32.partialorder %v9940_v12, 0.0 }
 0x87b   : > { %v3172_v31 = vsel %vm9924_vm4, %v8315_v58, 0.0 }
 0x87c   : > { %v3365_v53 = vsel %vm9925_vm6, %v3172_v31, 0.0  ;;  %v9942_v31 = vld [vmem:[#allocation114_spill] sm:$0xff] }
 0x87d   : > { %v3366_v5 = vadd.f32 %v3365_v53, %v3364_v21  ;;  %5356 = vmatpush.bf16.msk.msra.mxu1 %vm6682_vm2, %v9926_v55  ;;  %vm9935_vm2 = vmmov %vm9889_vm1  ;;  %vm9943_vm7 = vcmp.gt.f32.partialorder %v9942_v31, 0.0 }
 0x87e   : > { %vm9945_vm4 = vmmov %vm9935_vm2 }
 0x881   : > { %5359 = vmatpush.bf16.msk.msra.mxu1 %vm6603_vm0, %v9930_v54  ;;  %vm9408_vm0 = vcmp.gt.f32.partialorder %v9936_v28, 0.0  ;;  %v9947_v54 = vld [vmem:[#allocation71_spill] sm:$0xff] }
 0x882   : > { %v8335_v13 = vpop.f32.mrf.mxu2  ;;  %vm5387_vm3 = vmpackc.low %vm9407_vm8, %vm9408_vm0 }
 0x883   : > { %v3173_v63 = vsel %vm9934_vm12, %v8335_v13, 0.0  ;;  %vm3066_vm12 = vcmp.gt.f32.partialorder %v9946_v40, 0.0 }
 0x884   : > { %v3367_v21 = vsel %vm9935_vm2, %v3173_v63, 0.0  ;;  %3816 = vmatmul.bf16.vlgmr.msra.gmra.mxu1 %v5840_v37  ;;  %v9939_v37 = vld [vmem:[#allocation70_spill] sm:$0xff]  ;;  %vm3067_vm2 = vcmp.gt.f32.partialorder %v9947_v54, 0.0  ;;  %v9949_v63 = vld [vmem:[#allocation76_spill] sm:$0xff] }
 0x885   : > { %v3368_v34 = vadd.f32 %v3367_v21, %v3366_v5  ;;  %5386 = vmatpush.bf16.msk.msra.mxu1 %vm5384_vm11, %v9938_v51  ;;  %vm3068_vm1 = vcmp.gt.f32.partialorder %v9939_v37, 0.0  ;;  %v8366_v5 = vpop.f32.mrf.mxu3  ;;  %vm5393_vm11 = vmpackc.low %vm3067_vm2, %vm3066_vm12  ;;  %v9950_v21 = vld [vmem:[#allocation74_spill] sm:$0xff]  ;;  %v9951_v51 = vpack.c.bf16 %v7694_v32, %v7682_v62 }
 0x886   : > { %9944 = vst [vmem:[#allocation91_spill] sm:$0xff] %v8366_v5  ;;  %vm5390_vm6 = vmpackc.low %vm3069_vm14, %vm3068_vm1 }
 0x889   : > { %5389 = vmatpush.bf16.msk.msra.mxu1 %vm5387_vm3, %v9941_v43  ;;  %vm3064_vm3 = vcmp.gt.f32.partialorder %v9949_v63, 0.0  ;;  %v5842_v43 = vpop.trf.xlu0  ;;  %v5409_v63 = vpack.c.bf16 %v8162_v9, %v8074_v29  ;;  %v10036_v29 = vld [vmem:[#allocation52_spill] sm:$0xff] }
 0x88a   : > { %v8361_v49 = vpop.f32.mrf.mxu2 }
 0x88b   : > { %v3174_v53 = vsel %vm9943_vm7, %v8361_v49, 0.0  ;;  %vm3065_vm7 = vcmp.gt.f32.partialorder %v9950_v21, 0.0  ;;  %v10033_v21 = vld [vmem:[#allocation105_spill] sm:$0xff] }
 0x88c   : > { %v3369_v55 = vsel %vm9945_vm4, %v3174_v53, 0.0  ;;  %vm5396_vm13 = vmpackc.low %vm3065_vm7, %vm3064_vm3 }
 0x88d   : > { %v3370_v26 = vadd.f32 %v3369_v55, %v3368_v34  ;;  %5392 = vmatpush.bf16.msk.msra.mxu1 %vm5390_vm6, %v9948_v52  ;;  %v9952_v34 = vld [vmem:[#allocation115_spill] sm:$0xff]  ;;  %vm9954_vm6 = vcmask 261120  }
 0x88e   : > { %vm9953_vm4 = vcmp.gt.f32.partialorder %v9952_v34, 0.0  ;;  %v9968_v34 = vld [vmem:[#allocation168_spill] sm:$0xff] }
 0x891   : > { %5395 = vmatpush.bf16.msk.msra.mxu1 %vm5393_vm11, %v9951_v51  ;;  %v8400_v51 = vpop.f32.mrf.mxu3 }
 0x892   : > { %v8387_v31 = vpop.f32.mrf.mxu2  ;;  %9956 = vst [vmem:[#allocation44_spill] sm:$0xff] %v8400_v51 }
 0x893   : > { %v3175_v53 = vsel %vm9953_vm4, %v8387_v31, 0.0  ;;  %vm9961_vm4 = vmmov %vm9954_vm6 }
 0x894   : > { %v3371_v55 = vsel %vm9954_vm6, %v3175_v53, 0.0  ;;  %3821 = vmatmul.bf16.gmra.mxu1 %v5842_v43  ;;  %v9959_v43 = vld [vmem:[#allocation117_spill] sm:$0xff]  ;;  %vm9412_vm6 = vcmp.gt.f32.partialorder %v9966_v4, 0.0 }
 0x895   : > { %v3372_v52 = vadd.f32 %v3371_v55, %v3370_v26  ;;  %5398 = vmatpush.bf16.msk.msra.mxu1 %vm5396_vm13, %v9955_v27  ;;  %vm9960_vm11 = vcmp.gt.f32.partialorder %v9959_v43, 0.0  ;;  %v9962_v27 = vpack.c.bf16 %v7561_v35, %v7532_v3  ;;  %vm9964_vm13 = vnez %v9963_v24  ;;  %v9969_v43 = vld [vmem:[#allocation166_spill] sm:$0xff] }
 0x896   : > { %v9970_v38 = vpack.c.bf16 %v9968_v34, %v9969_v43  ;;  %v9973_v3 = vld [vmem:[#allocation118_spill] sm:$0xff]  ;;  %v9978_v43 = vld [vmem:[#allocation136_spill] sm:$0xff] }
 0x899   : > { %5401 = vmatpush.bf16.msk.msra.mxu1 %vm6506_vm10, %v9957_v20  ;;  %v8418_v11 = vpop.f32.mrf.mxu3  ;;  %vm9410_vm10 = vcmp.gt.f32.partialorder %v9967_v25, 0.0  ;;  %v9980_v25 = vld [vmem:[#allocation120_spill] sm:$0xff] }
 0x89a   : > { %v8407_v53 = vpop.f32.mrf.mxu2  ;;  %9965 = vst [vmem:[#allocation92_spill] sm:$0xff] %v8418_v11  ;;  %v5433_v20 = vpack.c.bf16 %v8418_v11, %v8400_v51  ;;  %vm5432_vm15 = vmpackc.low %vm9410_vm10, %vm9412_vm6  ;;  %vm9981_vm10 = vcmp.gt.f32.partialorder %v9980_v25, 0.0  ;;  %vm9982_vm6 = vcmask 261120   ;;  %v9986_v25 = vld [vmem:[#allocation139_spill] sm:$0xff] }
 0x89b   : > { %v3176_v30 = vsel %vm9960_vm11, %v8407_v53, 0.0 }
 0x89c   : > { %v3373_v26 = vsel %vm9961_vm4, %v3176_v30, 0.0  ;;  %v9971_v30 = vld [vmem:[#allocation130_spill] sm:$0xff]  ;;  %vm9974_vm4 = vcmp.gt.f32.partialorder %v9973_v3, 0.0  ;;  %v5439_v3 = vpack.c.bf16 %v8308_v50, %v8291_v0  ;;  %v5451_v50 = vpack.c.bf16 %v8239_v33, %v8225_v44  ;;  %v9998_v0 = vld [vmem:[#allocation145_spill] sm:$0xff] }
 0x89d   : > { %v3374_v55 = vadd.f32 %v3373_v26, %v3372_v52  ;;  %5404 = vmatpush.bf16.msk.msra.mxu1 %vm9964_vm13, %v9962_v27  ;;  %vm9972_vm11 = vnez %v9971_v30  ;;  %vm9975_vm13 = vcmask 261120   ;;  %v9976_v26 = vld [vmem:[#allocation134_spill] sm:$0xff]  ;;  %v9977_v27 = vld [vmem:[#allocation133_spill] sm:$0xff]  ;;  %v9979_v30 = vld [vmem:[#allocation135_spill] sm:$0xff] }
 0x89e   : > { %vm9414_vm8 = vcmp.gt.f32.partialorder %v9976_v26, 0.0  ;;  %vm9413_vm0 = vcmp.gt.f32.partialorder %v9977_v27, 0.0  ;;  %v5445_v27 = vpack.c.bf16 %v8268_v39, %v8263_v59  ;;  %v9991_v26 = vld [vmem:[#allocation142_spill] sm:$0xff] }
 0x8a1   : > { %5407 = vmatpush.bf16.msk.msra.mxu1 %vm9972_vm11, %v9970_v38  ;;  %v5436_v38 = vpack.c.bf16 %v8366_v5, %v8333_v6  ;;  %vm5435_vm11 = vmpackc.low %vm9413_vm0, %vm9414_vm8  ;;  %v9987_v5 = vld [vmem:[#allocation121_spill] sm:$0xff]  ;;  %v5448_v6 = vpack.c.bf16 %v8255_v56, %v8246_v61 }
 0x8a2   : > { %v8429_v52 = vpop.f32.mrf.mxu2 }
 0x8a3   : > { %v3177_v35 = vsel %vm9974_vm4, %v8429_v52, 0.0  ;;  %vm9420_vm4 = vcmp.gt.f32.partialorder %v9978_v43, 0.0  ;;  %v9994_v43 = vld [vmem:[#allocation123_spill] sm:$0xff] }
 0x8a4   : > { %v3375_v24 = vsel %vm9975_vm13, %v3177_v35, 0.0  ;;  %5765 = vmatmul.lmr.bf16.vlgmr.msra.gmra.4.mxu1  ;;  %vm9419_vm13 = vcmp.gt.f32.partialorder %v9979_v30, 0.0 }
 0x8a5   : > { %v3376_v34 = vadd.f32 %v3375_v24, %v3374_v55  ;;  %5434 = vmatpush.bf16.msk.msra.mxu1 %vm5432_vm15, %v5433_v20  ;;  %vm5438_vm15 = vmpackc.low %vm9419_vm13, %vm9420_vm4  ;;  %v9983_v20 = vld [vmem:[#allocation138_spill] sm:$0xff]  ;;  %v9984_v24 = vld [vmem:[#allocation137_spill] sm:$0xff]  ;;  %vm9988_vm13 = vcmp.gt.f32.partialorder %v9987_v5, 0.0 }
 0x8a6   : > { %vm9423_vm0 = vcmp.gt.f32.partialorder %v9983_v20, 0.0  ;;  %vm9421_vm8 = vcmp.gt.f32.partialorder %v9984_v24, 0.0  ;;  %v9992_v5 = vld [vmem:[#allocation144_spill] sm:$0xff]  ;;  %v5454_v24 = vpack.c.bf16 %v8214_v36, %v8197_v7 }
 0x8a9   : > { %5437 = vmatpush.bf16.msk.msra.mxu1 %vm5435_vm11, %v5436_v38  ;;  %v5442_v38 = vpack.c.bf16 %v8278_v57, %v8274_v46  ;;  %vm9428_vm11 = vcmp.gt.f32.partialorder %v9986_v25, 0.0  ;;  %v9999_v57 = vld [vmem:[#allocation124_spill] sm:$0xff]  ;;  %v10001_v25 = vld [vmem:[#allocation125_spill] sm:$0xff] }
 0x8aa   : > { %v2810_v35 = vpop.f32.mrf.mxu2 }
 0x8ab   : > { %v3178_v11 = vsel %vm9981_vm10, %v2810_v35, 0.0 }
 0x8ac   : > { %v3377_v55 = vsel %vm9982_vm6, %v3178_v11, 0.0  ;;  %5766 = vmatmul.lmr.bf16.gmra.4.mxu1  ;;  %vm5441_vm6 = vmpackc.low %vm9421_vm8, %vm9423_vm0  ;;  %v9985_v11 = vld [vmem:[#allocation140_spill] sm:$0xff]  ;;  %vm9432_vm0 = vcmp.gt.f32.partialorder %v9991_v26, 0.0 }
 0x8ad   : > { %v3378_v4 = vadd.f32 %v3377_v55, %v3376_v34  ;;  %5440 = vmatpush.bf16.msk.msra.mxu1 %vm5438_vm15, %v5439_v3  ;;  %vm9429_vm10 = vcmp.gt.f32.partialorder %v9985_v11, 0.0  ;;  %vm9989_vm15 = vcmask 261120   ;;  %v9990_v55 = vld [vmem:[#allocation141_spill] sm:$0xff] }
 0x8ae   : > { %vm5444_vm4 = vmpackc.low %vm9428_vm11, %vm9429_vm10  ;;  %vm9430_vm8 = vcmp.gt.f32.partialorder %v9990_v55, 0.0  ;;  %vm9995_vm11 = vcmp.gt.f32.partialorder %v9994_v43, 0.0 }
 0x8b1   : > { %5443 = vmatpush.bf16.msk.msra.mxu1 %vm5441_vm6, %v5442_v38  ;;  %vm3092_vm6 = vcmp.gt.f32.partialorder %v9992_v5, 0.0 }
 0x8b2   : > { %v2813_v51 = vpop.f32.mrf.mxu2 }
 0x8b3   : > { %v3179_v34 = vsel %vm9988_vm13, %v2813_v51, 0.0  ;;  %vm5447_vm13 = vmpackc.low %vm9430_vm8, %vm9432_vm0  ;;  %vm3091_vm0 = vcmp.gt.f32.partialorder %v9998_v0, 0.0 }
 0x8b4   : > { %v3379_v3 = vsel %vm9989_vm15, %v3179_v34, 0.0  ;;  %5767 = vmatmul.lmr.bf16.gmra.4.mxu1  ;;  %v9993_v34 = vld [vmem:[#allocation143_spill] sm:$0xff] }
 0x8b5   : > { %v3380_v38 = vadd.f32 %v3379_v3, %v3378_v4  ;;  %5446 = vmatpush.bf16.msk.msra.mxu1 %vm5444_vm4, %v5445_v27  ;;  %vm9438_vm15 = vcmp.gt.f32.partialorder %v9993_v34, 0.0  ;;  %vm9996_vm4 = vcmask 261120   ;;  %v9997_v3 = vld [vmem:[#allocation146_spill] sm:$0xff] }
 0x8b6   : > { %vm5450_vm10 = vmpackc.low %vm9438_vm15, %vm3092_vm6  ;;  %vm3090_vm8 = vcmp.gt.f32.partialorder %v9997_v3, 0.0  ;;  %vm10004_vm15 = vcmp.gt.f32.partialorder %v9850_v22, 0.0 }
 0x8b7   : > { %v3184_v48 = vsel %vm10004_vm15, %v9851_v41, 0.0 }
 0x8b9   : > { %5449 = vmatpush.bf16.msk.msra.mxu1 %vm5447_vm13, %v5448_v6  ;;  %vm10000_vm13 = vcmp.gt.f32.partialorder %v9999_v57, 0.0 }
 0x8ba   : > { %v2816_v30 = vpop.f32.mrf.mxu2 }
 0x8bb   : > { %v3180_v4 = vsel %vm9995_vm11, %v2816_v30, 0.0  ;;  %vm5453_vm11 = vmpackc.low %vm3091_vm0, %vm3090_vm8 }
 0x8bc   : > { %v3381_v27 = vsel %vm9996_vm4, %v3180_v4, 0.0  ;;  %5768 = vmatmul.lmr.bf16.gmra.4.mxu1  ;;  %v3182_v4 = vsel %vm3054_vm9, %v9858_v42, 0.0  ;;  %v5370_v42 = vpack.c.bf16 %v2813_v51, %v2810_v35  ;;  %vm10005_vm9 = vmmov %vm9996_vm4  ;;  %v10010_v51 = vld [vmem:[#allocation119_spill] sm:$0xff] }
 0x8bd   : > { %v3382_v6 = vadd.f32 %v3381_v27, %v3380_v38  ;;  %5452 = vmatpush.bf16.msk.msra.mxu1 %vm5450_vm10, %v5451_v50  ;;  %v3183_v38 = vsel %vm3055_vm5, %v9859_v1, 0.0  ;;  %vm10002_vm10 = vnez %v10001_v25  ;;  %v10007_v1 = vld [vmem:[#allocation122_spill] sm:$0xff]  ;;  %v5373_v25 = vpack.c.bf16 %v8429_v52, %v8407_v53  ;;  %v10012_v35 = vld [vmem:[#allocation167_spill] sm:$0xff]  ;;  %v10018_v53 = vld [vmem:[#allocation16_spill] sm:$0xff] }
 0x8be   : > { %vm10008_vm5 = vnez %v10007_v1  ;;  %vm10011_vm15 = vnez %v10010_v51  ;;  %v3192_v1 = vsel %vm3064_vm3, %v7653_v16, 0.0  ;;  %v3194_v16 = vsel %vm3066_vm12, %v7682_v62, 0.0  ;;  %vm10032_vm3 = vmmov %vm9996_vm4 }
 0x8bf   : > { %v3196_v62 = vsel %vm3068_vm1, %v7712_v18, 0.0  ;;  %vm10037_vm12 = vmmov %vm10032_vm3 }
 0x8c0   : > { %vm10042_vm1 = vmmov %vm10032_vm3 }
 0x8c1   : > { %5455 = vmatpush.bf16.msk.msra.mxu1 %vm5453_vm11, %v5454_v24  ;;  %vm10003_vm11 = vmmov %vm9996_vm4 }
 0x8c2   : > { %v2819_v43 = vpop.f32.mrf.mxu2  ;;  %v3385_v24 = vsel %vm10003_vm11, %v3182_v4, 0.0  ;;  %vm10013_vm11 = vmmov %vm9996_vm4  ;;  %v10014_v4 = vld [vmem:[#allocation169_spill] sm:$0xff] }
 0x8c3   : > { %v3181_v20 = vsel %vm10000_vm13, %v2819_v43, 0.0  ;;  %v5367_v46 = vpack.c.bf16 %v2819_v43, %v2816_v30  ;;  %v3387_v30 = vsel %vm10005_vm9, %v3183_v38, 0.0  ;;  %vm10006_vm13 = vcmp.gt.f32.partialorder %v9848_v47, 0.0  ;;  %vm10015_vm9 = vmmov %vm9996_vm4 }
 0x8c4   : > { %v3383_v50 = vsel %vm9996_vm4, %v3181_v20, 0.0  ;;  %v3185_v20 = vsel %vm10006_vm13, %v9852_v19, 0.0  ;;  %v3393_v47 = vsel %vm10013_vm11, %v10012_v35, 0.0  ;;  %v5376_v19 = vpack.c.bf16 %v8387_v31, %v8361_v49  ;;  %v10022_v31 = vld [vmem:[#allocation113_spill] sm:$0xff]  ;;  %vm10027_vm11 = vmmov %vm9996_vm4 }
 0x8c5   : > { %v3384_v27 = vadd.f32 %v3383_v50, %v3382_v6  ;;  %5368 = vmatpush.bf16.msk.msra.mxu3 %vm10002_vm10, %v5367_v46  ;;  %v3389_v46 = vsel %vm9996_vm4, %v3184_v48, 0.0  ;;  %vm10009_vm10 = vmmov %vm9996_vm4  ;;  %v3395_v50 = vsel %vm10015_vm9, %v10014_v4, 0.0  ;;  %v8541_v48 = vpop.trf.xlu1  ;;  %v10021_v49 = vpack.c.bf16 %v8335_v13, %v8315_v58  ;;  %v10029_v13 = vld [vmem:[#allocation110_spill] sm:$0xff] }
 0x8c6   : > { %v3391_v22 = vsel %vm10009_vm10, %v3185_v20, 0.0  ;;  %vm10023_vm10 = vnez %v10022_v31  ;;  %v10024_v20 = vld [vmem:[#allocation31_spill] sm:$0xff]  ;;  %v10028_v58 = vpack.c.bf16 %v8295_v8, %v8283_v23  ;;  %vm10030_vm9 = vnez %v10029_v13 }
 0x8c7   : > { %v3386_v57 = vadd.f32 %v3385_v24, %v3384_v27  ;;  %v10016_v27 = vld [vmem:[#allocation116_spill] sm:$0xff]  ;;  %v3195_v23 = vsel %vm3067_vm2, %v7694_v32, 0.0  ;;  %v3197_v32 = vsel %vm3069_vm14, %v7724_v15, 0.0 }
 0x8c8   : > { %vm10017_vm13 = vnez %v10016_v27  ;;  %v3411_v4 = vsel %vm10037_vm12, %v3195_v23, 0.0  ;;  %vm10063_vm12 = vmmov %vm10042_vm1 }
 0x8c9   : > { %v3388_v14 = vadd.f32 %v3387_v30, %v3386_v57  ;;  %5371 = vmatpush.bf16.msk.msra.mxu3 %vm10008_vm5, %v5370_v42  ;;  %vm10019_vm5 = vmmov %vm9996_vm4  ;;  %v10020_v42 = vld [vmem:[#allocation32_spill] sm:$0xff] }
 0x8ca   : > { %v3397_v52 = vsel %vm10019_vm5, %v10018_v53, 0.0  ;;  %v3399_v57 = vsel %vm9996_vm4, %v10020_v42, 0.0  ;;  %vm10035_vm5 = vmmov %vm10032_vm3  ;;  %v10044_v53 = vld [vmem:[#allocation68_spill] sm:$0xff]  ;;  %v10047_v42 = vld [vmem:[#allocation93_spill] sm:$0xff] }
 0x8cb   : > { %v3390_v6 = vadd.f32 %v3389_v46, %v3388_v14  ;;  %v3409_v40 = vsel %vm10035_vm5, %v3194_v16, 0.0  ;;  %vm10048_vm14 = vnez %v10047_v42  ;;  %vm10062_vm5 = vmmov %vm10042_vm1  ;;  %v10064_v16 = vld [vmem:[#allocation161_spill] sm:$0xff] }
 0x8cd   : > { %v3392_v41 = vadd.f32 %v3391_v22, %v3390_v6  ;;  %5374 = vmatpush.bf16.msk.msra.mxu3 %vm10011_vm15, %v5373_v25  ;;  %vm10025_vm15 = vmmov %vm9996_vm4  ;;  %v10026_v25 = vld [vmem:[#allocation30_spill] sm:$0xff]  ;;  %v3193_v22 = vsel %vm3065_vm7, %v7666_v60, 0.0  ;;  %vm10034_vm7 = vnez %v10033_v21  ;;  %v10071_v21 = vld [vmem:[#allocation24_spill] sm:$0xff] }
 0x8ce   : > { %v3401_v14 = vsel %vm10025_vm15, %v10024_v20, 0.0  ;;  %v3403_v6 = vsel %vm10027_vm11, %v10026_v25, 0.0  ;;  %v3407_v60 = vsel %vm10032_vm3, %v3193_v22, 0.0  ;;  %vm10043_vm15 = vcmp.gt.f32.partialorder %v9937_v45, 0.0  ;;  %vm10049_vm11 = vmmov %vm10042_vm1  ;;  %v10054_v20 = vld [vmem:[#allocation28_spill] sm:$0xff] }
 0x8cf   : > { %v3394_v43 = vadd.f32 %v3393_v47, %v3392_v41  ;;  %v5852_v47 = vpop.trf.xlu1  ;;  %v3199_v15 = vsel %vm10043_vm15, %v7752_v17, 0.0 }
 0x8d0   : > { %3892 = vmatmul.bf16.vlgmr.msra.gmra.mxu1 %v5852_v47  ;;  %v10067_v47 = vld [vmem:[#allocation81_spill] sm:$0xff] }
 0x8d1   : > { %v3396_v38 = vadd.f32 %v3395_v50, %v3394_v43  ;;  %5377 = vmatpush.bf16.msk.msra.mxu3 %vm10017_vm13, %v5376_v19  ;;  %vm10031_vm13 = vmmov %vm9996_vm4  ;;  %v5412_v19 = vpack.c.bf16 %v10036_v29, %v8050_v2  ;;  %v10038_v50 = vld [vmem:[#allocation99_spill] sm:$0xff]  ;;  %v3415_v2 = vsel %vm10042_vm1, %v3197_v32, 0.0  ;;  %v10076_v32 = vld [vmem:[#allocation73_spill] sm:$0xff] }
 0x8d2   : > { %v3405_v51 = vsel %vm10031_vm13, %v3192_v1, 0.0  ;;  %vm10039_vm2 = vnez %v10038_v50  ;;  %vm10040_vm4 = vmmov %vm10032_vm3  ;;  %v10057_v1 = vld [vmem:[#allocation54_spill] sm:$0xff] }
 0x8d3   : > { %v3398_v24 = vadd.f32 %v3397_v52, %v3396_v38  ;;  %v3413_v38 = vsel %vm10040_vm4, %v3196_v62, 0.0  ;;  %v10045_v52 = vld [vmem:[#allocation67_spill] sm:$0xff]  ;;  %vm10053_vm13 = vmmov %vm10042_vm1 }
 0x8d4   : > { %v3419_v31 = vsel %vm10053_vm13, %v3199_v15, 0.0  ;;  %vm10070_vm4 = vmmov %vm10042_vm1  ;;  %v10082_v15 = vld [vmem:[#allocation21_spill] sm:$0xff] }
 0x8d5   : > { %v3400_v30 = vadd.f32 %v3399_v57, %v3398_v24  ;;  %5380 = vmatpush.bf16.msk.msra.mxu3 %vm10023_vm10, %v10021_v49  ;;  %vm10041_vm10 = vcmp.gt.f32.partialorder %v9936_v28, 0.0  ;;  %v10046_v24 = vpack.c.bf16 %v10044_v53, %v10045_v52  ;;  %v10051_v57 = vld [vmem:[#allocation62_spill] sm:$0xff]  ;;  %vm10079_vm15 = vmmov %vm10070_vm4  ;;  %v10085_v52 = vld [vmem:[#allocation59_spill] sm:$0xff] }
 0x8d6   : > { %v3198_v18 = vsel %vm10041_vm10, %v7740_v10, 0.0  ;;  %v10050_v10 = vld [vmem:[#allocation29_spill] sm:$0xff]  ;;  %vm10072_vm10 = vmmov %vm10042_vm1  ;;  %vm10077_vm1 = vnez %v10076_v32  ;;  %v10110_v32 = vld [vmem:[#allocation79_spill] sm:$0xff] }
 0x8d7   : > { %v3402_v46 = vadd.f32 %v3401_v14, %v3400_v30  ;;  %v8593_v27 = vpop.trf.xlu1  ;;  %v3417_v28 = vsel %vm10049_vm11, %v3198_v18, 0.0  ;;  %v10055_v14 = vld [vmem:[#allocation60_spill] sm:$0xff]  ;;  %vm10086_vm11 = vnez %v10085_v52  ;;  %vm10090_vm13 = vmmov %vm10070_vm4 }
 0x8d8   : > { %vm10056_vm3 = vcmp.gt.f32.partialorder %v10055_v14, 0.0  ;;  %v10080_v18 = vld [vmem:[#allocation20_spill] sm:$0xff]  ;;  %v10094_v14 = vld [vmem:[#allocation45_spill] sm:$0xff] }
 0x8d9   : > { %v3404_v41 = vadd.f32 %v3403_v6, %v3402_v46  ;;  %5383 = vmatpush.bf16.msk.msra.mxu3 %vm10030_vm9, %v10028_v58  ;;  %vm10052_vm9 = vcmp.gt.f32.partialorder %v10051_v57, 0.0  ;;  %v3201_v17 = vsel %vm10056_vm3, %v10054_v20, 0.0  ;;  %v10058_v46 = vld [vmem:[#allocation53_spill] sm:$0xff]  ;;  %v10060_v6 = vld [vmem:[#allocation87_spill] sm:$0xff]  ;;  %vm10095_vm3 = vnez %v10094_v14 }
 0x8da   : > { %v3200_v30 = vsel %vm10052_vm9, %v10050_v10, 0.0  ;;  %v10059_v25 = vpack.c.bf16 %v10057_v1, %v10058_v46  ;;  %v3423_v13 = vsel %vm10063_vm12, %v3201_v17, 0.0  ;;  %vm10088_vm9 = vmmov %vm10070_vm4  ;;  %v10089_v10 = vld [vmem:[#allocation160_spill] sm:$0xff]  ;;  %v3760_v17 = vpop.f32.mrf.mxu3 }
 0x8db   : > { %v3406_v35 = vadd.f32 %v3405_v51, %v3404_v41  ;;  %v3421_v22 = vsel %vm10062_vm5, %v3200_v30, 0.0  ;;  %v3435_v57 = vsel %vm10090_vm13, %v10089_v10, 0.0  ;;  %v10096_v1 = vld [vmem:[#allocation40_spill] sm:$0xff]  ;;  %vm10099_vm5 = vmmov %vm10070_vm4 }
 0x8dc   : > { %5803 = vmatmul.lmr.bf16.vlgmr.msra.gmra.4.mxu3  ;;  %vm10101_vm12 = vmmov %vm10070_vm4 }
 0x8dd   : > { %v3408_v8 = vadd.f32 %v3407_v60, %v3406_v35  ;;  %5410 = vmatpush.bf16.msk.msra.mxu3 %vm10034_vm7, %v5409_v63  ;;  %vm10061_vm7 = vnez %v10060_v6  ;;  %v10065_v63 = vld [vmem:[#allocation17_spill] sm:$0xff]  ;;  %v10069_v60 = vld [vmem:[#allocation26_spill] sm:$0xff] }
 0x8de   : > { %v10066_v35 = vpack.c.bf16 %v10064_v16, %v10065_v63  ;;  %v3425_v23 = vsel %vm10070_vm4, %v10069_v60, 0.0  ;;  %v10098_v6 = vld [vmem:[#allocation18_spill] sm:$0xff]  ;;  %v10102_v16 = vld [vmem:[#allocation57_spill] sm:$0xff]  ;;  %v10104_v60 = vld [vmem:[#allocation56_spill] sm:$0xff] }
 0x8df   : > { %v3410_v43 = vadd.f32 %v3409_v40, %v3408_v8  ;;  %v5854_v58 = vpop.trf.xlu1  ;;  %v3427_v40 = vsel %vm10072_vm10, %v10071_v21, 0.0 }
 0x8e0   : > { %3897 = vmatmul.bf16.gmra.mxu1 %v5854_v58  ;;  %v10100_v58 = vld [vmem:[#allocation58_spill] sm:$0xff] }
 0x8e1   : > { %v3412_v54 = vadd.f32 %v3411_v4, %v3410_v43  ;;  %5413 = vmatpush.bf16.msk.msra.mxu3 %vm10039_vm2, %v5412_v19  ;;  %vm10068_vm2 = vnez %v10067_v47  ;;  %v10073_v19 = vld [vmem:[#allocation39_spill] sm:$0xff] }
 0x8e2   : > { %v10074_v43 = vld [vmem:[#allocation159_spill] sm:$0xff]  ;;  %v3762_v21 = vpop.f32.mrf.mxu3 }
 0x8e3   : > { %v3414_v37 = vadd.f32 %v3413_v38, %v3412_v54  ;;  %v10075_v4 = vpack.c.bf16 %v10073_v19, %v10074_v43  ;;  %v10078_v54 = vld [vmem:[#allocation22_spill] sm:$0xff]  ;;  %v10108_v19 = vld [vmem:[#allocation97_spill] sm:$0xff] }
 0x8e4   : > { %5804 = vmatmul.lmr.bf16.gmra.4.mxu3  ;;  %v3429_v50 = vsel %vm10079_vm15, %v10078_v54, 0.0 }
 0x8e5   : > { %v3416_v12 = vadd.f32 %v3415_v2, %v3414_v37  ;;  %5416 = vmatpush.bf16.msk.msra.mxu3 %vm10048_vm14, %v10046_v24  ;;  %vm10081_vm14 = vmmov %vm10070_vm4  ;;  %v10087_v24 = vld [vmem:[#allocation19_spill] sm:$0xff] }
 0x8e6   : > { %v3431_v37 = vsel %vm10081_vm14, %v10080_v18, 0.0  ;;  %v3433_v42 = vsel %vm10088_vm9, %v10087_v24, 0.0 }
 0x8e7   : > { %v3418_v49 = vadd.f32 %v3417_v28, %v3416_v12  ;;  %v10083_v12 = vld [vmem:[#allocation23_spill] sm:$0xff] }
 0x8e8   : > { %v10084_v53 = vpack.c.bf16 %v10082_v15, %v10083_v12  ;;  %v10115_v12 = vld [vmem:[#allocation80_spill] sm:$0xff] }
 0x8e9   : > { %v3420_v45 = vadd.f32 %v3419_v31, %v3418_v49  ;;  %5419 = vmatpush.bf16.msk.msra.mxu3 %vm10061_vm7, %v10059_v25  ;;  %v10091_v49 = vld [vmem:[#allocation25_spill] sm:$0xff]  ;;  %v10092_v31 = vld [vmem:[#allocation27_spill] sm:$0xff]  ;;  %vm10097_vm7 = vmmov %vm10070_vm4 }
 0x8ea   : > { %v10093_v20 = vpack.c.bf16 %v10091_v49, %v10092_v31  ;;  %v3437_v46 = vsel %vm10097_vm7, %v10096_v1, 0.0  ;;  %v3765_v10 = vpop.f32.mrf.mxu3  ;;  %vm10120_vm7 = vcmp.gt.f32.partialorder %v9993_v34, 0.0 }
 0x8eb   : > { %v3422_v41 = vadd.f32 %v3421_v22, %v3420_v45  ;;  %v3779_v45 = vpop.f32.mrf.mxu1  ;;  %v3439_v22 = vsel %vm10099_vm5, %v10098_v6, 0.0  ;;  %vm10122_vm5 = vcmp.gt.f32.partialorder %v9991_v26, 0.0  ;;  %v10131_v6 = vld [vmem:[#allocation50_spill] sm:$0xff] }
 0x8ec   : > { %5805 = vmatmul.lmr.bf16.gmra.4.mxu3  ;;  %v3222_v31 = vsel %vm10122_vm5, %v8246_v61, 0.0 }
 0x8ed   : > { %v3424_v51 = vadd.f32 %v3423_v13, %v3422_v41  ;;  %5422 = vmatpush.bf16.msk.msra.mxu3 %vm10068_vm2, %v10066_v35  ;;  %v3441_v13 = vsel %vm10101_vm12, %v10100_v58, 0.0  ;;  %vm10103_vm2 = vmmov %vm10070_vm4  ;;  %v8660_v35 = vadd.f32 %v3779_v45, %v3760_v17  ;;  %v10135_v58 = vld [vmem:[#allocation85_spill] sm:$0xff] }
 0x8ee   : > { %v3443_v63 = vsel %vm10103_vm2, %v10102_v16, 0.0  ;;  %vm10105_vm4 = vmmov %vm10103_vm2 }
 0x8ef   : > { %v3426_v8 = vadd.f32 %v3425_v23, %v3424_v51  ;;  %v3445_v23 = vsel %vm10105_vm4, %v10104_v60, 0.0  ;;  %vm10107_vm10 = vmmov %vm10103_vm2  ;;  %vm10126_vm4 = vcmp.gt.f32.partialorder %v9985_v11, 0.0  ;;  %v10140_v60 = vld [vmem:[#allocation136_spill] sm:$0xff] }
 0x8f0   : > { %vm10111_vm15 = vmmov %vm10103_vm2 }
 0x8f1   : > { %v3428_v62 = vadd.f32 %v3427_v40, %v3426_v8  ;;  %5425 = vmatpush.bf16.msk.msra.mxu3 %vm10077_vm1, %v10075_v4  ;;  %vm10109_vm1 = vcmp.gt.f32.partialorder %v10108_v19, 0.0  ;;  %v3449_v54 = vsel %vm10111_vm15, %v10110_v32, 0.0  ;;  %vm10112_vm14 = vmmov %vm10103_vm2 }
 0x8f2   : > { %v3215_v43 = vsel %vm10109_vm1, %v10036_v29, 0.0  ;;  %vm10116_vm9 = vmmov %vm10103_vm2  ;;  %v3218_v29 = vsel %vm3090_vm8, %v8197_v7, 0.0  ;;  %v3767_v45 = vpop.f32.mrf.mxu3 }
 0x8f3   : > { %v3430_v38 = vadd.f32 %v3429_v50, %v3428_v62  ;;  %v3781_v40 = vpop.f32.mrf.mxu1  ;;  %v10106_v62 = vld [vmem:[#allocation55_spill] sm:$0xff]  ;;  %vm10117_vm13 = vmmov %vm10103_vm2 }
 0x8f4   : > { %5806 = vmatmul.lmr.bf16.gmra.4.mxu3  ;;  %v8672_v18 = vadd.f32 %v3781_v40, %v3762_v21  ;;  %vm10119_vm8 = vmmov %vm10103_vm2  ;;  %v10143_v21 = vld [vmem:[#allocation86_spill] sm:$0xff]  ;;  %v10144_v40 = vld [vmem:[#allocation135_spill] sm:$0xff] }
 0x8f5   : > { %v3432_v2 = vadd.f32 %v3431_v37, %v3430_v38  ;;  %5428 = vmatpush.bf16.msk.msra.mxu3 %vm10086_vm11, %v10084_v53  ;;  %v3451_v38 = vsel %vm10112_vm14, %v3215_v43, 0.0  ;;  %v10113_v37 = vld [vmem:[#allocation103_spill] sm:$0xff]  ;;  %v3453_v53 = vsel %vm10116_vm9, %v10115_v12, 0.0  ;;  %v10146_v43 = vld [vmem:[#allocation46_spill] sm:$0xff] }
 0x8f6   : > { %vm10114_vm11 = vcmp.gt.f32.partialorder %v10113_v37, 0.0  ;;  %v10151_v37 = vld [vmem:[#allocation133_spill] sm:$0xff] }
 0x8f7   : > { %v3434_v28 = vadd.f32 %v3433_v42, %v3432_v2  ;;  %v3217_v2 = vsel %vm10114_vm11, %v8162_v9, 0.0  ;;  %v3219_v42 = vsel %vm3091_vm0, %v8214_v36, 0.0  ;;  %vm10121_vm0 = vmmov %vm10103_vm2 }
 0x8f8   : > { %v3455_v24 = vsel %vm10117_vm13, %v3217_v2, 0.0  ;;  %v3459_v7 = vsel %vm10119_vm8, %v3219_v42, 0.0  ;;  %vm10123_vm12 = vmmov %vm10121_vm0 }
 0x8f9   : > { %v3436_v30 = vadd.f32 %v3435_v57, %v3434_v28  ;;  %5431 = vmatpush.bf16.msk.msra.mxu3 %vm10095_vm3, %v10093_v20  ;;  %vm10118_vm3 = vmmov %vm10103_vm2 }
 0x8fa   : > { %v3457_v57 = vsel %vm10118_vm3, %v3218_v29, 0.0  ;;  %vm10125_vm2 = vmmov %vm10121_vm0  ;;  %vm10141_vm3 = vcmp.gt.f32.partialorder %v10140_v60, 0.0  ;;  %v10155_v29 = vld [vmem:[#allocation132_spill] sm:$0xff] }
 0x8fb   : > { %v3438_v25 = vadd.f32 %v3437_v46, %v3436_v30  ;;  %v3784_v9 = vpop.f32.mrf.mxu1  ;;  %v3220_v30 = vsel %vm3092_vm6, %v8225_v44, 0.0  ;;  %vm10124_vm6 = vcmp.gt.f32.partialorder %v9990_v55, 0.0  ;;  %v3465_v17 = vsel %vm10125_vm2, %v3222_v31, 0.0  ;;  %v10128_v46 = vld [vmem:[#allocation139_spill] sm:$0xff]  ;;  %vm10130_vm15 = vmmov %vm10121_vm0 }
 0x8fc   : > { %3873 = vmatmul.bf16.vlgmr.msra.gmra.mxu3 %v8541_v48  ;;  %v3447_v48 = vsel %vm10107_vm10, %v10106_v62, 0.0  ;;  %v8692_v49 = vadd.f32 %v3784_v9, %v3765_v10  ;;  %v3461_v36 = vsel %vm10121_vm0, %v3220_v30, 0.0  ;;  %v3223_v44 = vsel %vm10124_vm6, %v8255_v56, 0.0  ;;  %vm10127_vm10 = vmmov %vm10121_vm0  ;;  %v10159_v10 = vld [vmem:[#allocation131_spill] sm:$0xff] }
 0x8fd   : > { %v3440_v41 = vadd.f32 %v3439_v22, %v3438_v25  ;;  %v3467_v26 = vsel %vm10127_vm10, %v3223_v44, 0.0  ;;  %vm10129_vm1 = vcmp.gt.f32.partialorder %v10128_v46, 0.0  ;;  %v10132_v22 = vld [vmem:[#allocation138_spill] sm:$0xff]  ;;  %vm10134_vm11 = vmmov %vm10121_vm0  ;;  %vm10152_vm6 = vcmp.gt.f32.partialorder %v10151_v37, 0.0 }
 0x8fe   : > { %v3225_v25 = vsel %vm10129_vm1, %v8268_v39, 0.0  ;;  %vm10133_vm14 = vcmp.gt.f32.partialorder %v10132_v22, 0.0  ;;  %vm10138_vm13 = vmmov %vm10121_vm0  ;;  %vm10160_vm1 = vcmp.gt.f32.partialorder %v10159_v10, 0.0 }
 0x8ff   : > { %v3442_v51 = vadd.f32 %v3441_v13, %v3440_v41  ;;  %v3226_v41 = vsel %vm10133_vm14, %v10131_v6, 0.0  ;;  %v10136_v13 = vld [vmem:[#allocation137_spill] sm:$0xff]  ;;  %vm10142_vm8 = vmmov %vm10121_vm0 }
 0x900   : > { %vm10137_vm9 = vcmp.gt.f32.partialorder %v10136_v13, 0.0  ;;  %vm10153_vm2 = vmmov %vm10121_vm0 }
 0x901   : > { %v3444_v47 = vadd.f32 %v3443_v63, %v3442_v51  ;;  %v3227_v51 = vsel %vm10137_vm9, %v10135_v58, 0.0  ;;  %v3473_v63 = vsel %vm10138_vm13, %v3226_v41, 0.0  ;;  %vm10157_vm10 = vmmov %vm10121_vm0 }
 0x902   : > { %vm10162_vm14 = vmmov %vm10121_vm0 }
 0x903   : > { %v3446_v8 = vadd.f32 %v3445_v23, %v3444_v47  ;;  %v3786_v1 = vpop.f32.mrf.mxu1  ;;  %v10139_v47 = vld [vmem:[#allocation48_spill] sm:$0xff]  ;;  %vm10163_vm9 = vmmov %vm10121_vm0 }
 0x904   : > { %v8710_v61 = vadd.f32 %v3786_v1, %v3767_v45  ;;  %v3228_v39 = vsel %vm10141_vm3, %v10139_v47, 0.0  ;;  %vm10164_vm13 = vmmov %vm10121_vm0 }
 0x905   : > { %v3448_v4 = vadd.f32 %v3447_v48, %v3446_v8  ;;  %v3475_v8 = vsel %vm10142_vm8, %v3227_v51, 0.0  ;;  %v3477_v19 = vsel %vm10121_vm0, %v3228_v39, 0.0  ;;  %vm10165_vm3 = vmmov %vm10121_vm0 }
 0x906   : > { %vm10166_vm8 = vmmov %vm10121_vm0 }
 0x907   : > { %v3450_v50 = vadd.f32 %v3449_v54, %v3448_v4  ;;  %v10147_v4 = vld [vmem:[#allocation134_spill] sm:$0xff] }
 0x908   : > { %vm10148_vm5 = vcmp.gt.f32.partialorder %v10147_v4, 0.0 }
 0x909   : > { %v3452_v15 = vadd.f32 %v3451_v38, %v3450_v50  ;;  %v3230_v32 = vsel %vm10148_vm5, %v10146_v43, 0.0  ;;  %v10150_v38 = vld [vmem:[#allocation91_spill] sm:$0xff]  ;;  %vm10168_vm5 = vmmov %vm10121_vm0 }
 0x90a   : > { %v3231_v2 = vsel %vm10152_vm6, %v10150_v38, 0.0  ;;  %v3481_v12 = vsel %vm10153_vm2, %v3230_v32, 0.0  ;;  %v5894_v38 = vld [vmem:[#allocation2] sm:$0xff] }
 0x90b   : > { %v3454_v52 = vadd.f32 %v3453_v53, %v3452_v15  ;;  %v10154_v53 = vld [vmem:[#allocation44_spill] sm:$0xff]  ;;  %v3483_v42 = vsel %vm10157_vm10, %v3231_v2, 0.0  ;;  %v3915_v37 = vmul.f32 0.0005, %v5894_v38 }
 0x90c   : > { %3878 = vmatmul.bf16.gmra.mxu3 %v8593_v27  ;;  %v3221_v27 = vsel %vm10120_vm7, %v8239_v33, 0.0  ;;  %v3224_v33 = vsel %vm10126_vm4, %v8263_v59, 0.0  ;;  %v3471_v59 = vsel %vm10134_vm11, %v3225_v25, 0.0  ;;  %vm10145_vm7 = vcmp.gt.f32.partialorder %v10144_v40, 0.0 }
 0x90d   : > { %v3456_v28 = vadd.f32 %v3455_v24, %v3454_v52  ;;  %v3463_v5 = vsel %vm10123_vm12, %v3221_v27, 0.0  ;;  %v3469_v56 = vsel %vm10130_vm15, %v3224_v33, 0.0  ;;  %v3229_v62 = vsel %vm10145_vm7, %v10143_v21, 0.0  ;;  %vm10149_vm12 = vmmov %vm10121_vm0 }
 0x90e   : > { %v3479_v50 = vsel %vm10149_vm12, %v3229_v62, 0.0  ;;  %vm10156_vm4 = vcmp.gt.f32.partialorder %v10155_v29, 0.0  ;;  %vm10161_vm15 = vmmov %vm10121_vm0  ;;  %vm3949_vm11 = vcmask 253952   ;;  %v3904_v29 = vld [vmem:[#allocation6 + $0x8] sm:$0xff] }
 0x90f   : > { %v3458_v3 = vadd.f32 %v3457_v57, %v3456_v28  ;;  %v3232_v52 = vsel %vm10156_vm4, %v10154_v53, 0.0  ;;  %v10158_v28 = vld [vmem:[#allocation92_spill] sm:$0xff]  ;;  %vm10167_vm7 = vmmov %vm10121_vm0 }
 0x910   : > { %v3233_v9 = vsel %vm10160_vm1, %v10158_v28, 0.0  ;;  %v3485_v30 = vsel %vm10161_vm15, %v3232_v52, 0.0  ;;  %vm10169_vm12 = vmmov %vm10121_vm0 }
 0x911   : > { %v3460_v0 = vadd.f32 %v3459_v7, %v3458_v3  ;;  %v3487_v7 = vsel %vm10162_vm14, %v3233_v9, 0.0 }
 0x913   : > { %v3462_v20 = vadd.f32 %v3461_v36, %v3460_v0  ;;  %v3817_v0 = vpop.f32.mrf.mxu1 }
 0x915   : > { %v3464_v14 = vadd.f32 %v3463_v5, %v3462_v20  ;;  %v3943_v5 = vld [vmem:[#allocation7] sm:$0x1] }
 0x916   : > { %v3944_v33 = vmul.f32 0.9, %v3943_v5 }
 0x917   : > { %v3466_v34 = vadd.f32 %v3465_v17, %v3464_v14  ;;  %v3946_v14 = vld [vmem:[#allocation3] sm:$0x1] }
 0x918   : > { %v3947_v1 = vmul.f32 0.0005, %v3946_v14 }
 0x919   : > { %v3468_v55 = vadd.f32 %v3467_v26, %v3466_v34  ;;  %v3798_v26 = vpop.f32.mrf.mxu3 }
 0x91b   : > { %v3470_v11 = vadd.f32 %v3469_v56, %v3468_v55  ;;  %v3819_v34 = vpop.f32.mrf.mxu1  ;;  %v3951_v55 = vld [vmem:[#allocation3] sm:$0x1] }
 0x91d   : > { %v3472_v16 = vadd.f32 %v3471_v59, %v3470_v11 }
 0x91f   : > { %v3474_v23 = vadd.f32 %v3473_v63, %v3472_v16 }
 0x921   : > { %v3476_v48 = vadd.f32 %v3475_v8, %v3474_v23  ;;  %v3800_v41 = vpop.f32.mrf.mxu3  ;;  %v3799_v23 = vadd.f32 %v3798_v26, %v8660_v35  ;;  %v5896_v26 = vld [vmem:[#allocation2 + $0x10] sm:$0xff] }
 0x923   : > { %v3478_v54 = vadd.f32 %v3477_v19, %v3476_v48  ;;  %v3822_v22 = vpop.f32.mrf.mxu1  ;;  %v3818_v21 = vadd.f32 %v3817_v0, %v3799_v23  ;;  %v3801_v48 = vadd.f32 %v3800_v41, %v8672_v18  ;;  %v3903_v19 = vld [vmem:[#allocation6] sm:$0xff] }
 0x925   : > { %v3480_v15 = vadd.f32 %v3479_v50, %v3478_v54  ;;  %v3820_v32 = vadd.f32 %v3819_v34, %v3801_v48  ;;  %v3907_v50 = vmul.f32 0.9, %v3903_v19 }
 0x927   : > { %v3482_v24 = vadd.f32 %v3481_v12, %v3480_v15 }
 0x929   : > { %v3484_v57 = vadd.f32 %v3483_v42, %v3482_v24  ;;  %v3803_v59 = vpop.f32.mrf.mxu3  ;;  %v3927_v42 = vld [vmem:[#allocation2] sm:$0xff] }
 0x92a   : > { %v3804_v12 = vadd.f32 %v3803_v59, %v8692_v49  ;;  %v3929_v59 = vld [vmem:[#allocation2 + $0x10] sm:$0xff] }
 0x92b   : > { %v3486_v3 = vadd.f32 %v3485_v30, %v3484_v57  ;;  %v3824_v11 = vpop.f32.mrf.mxu1  ;;  %v3908_v57 = vmul.f32 0.9, %v3904_v29  ;;  %v5895_v30 = vld [vmem:[#allocation2 + $0x8] sm:$0xff] }
 0x92c   : > { %v3823_v18 = vadd.f32 %v3822_v22, %v3804_v12 }
 0x92d   : > { %v3488_v27 = vadd.f32 %v3487_v7, %v3486_v3  ;;  %v3916_v3 = vmul.f32 0.0005, %v5895_v30 }
 0x92f   : > { %v3489_v36 = vrot.slane %v3488_v27, 4 }
 0x931   : > { %v3490_v31 = vadd.f32 %v3489_v36, %v3488_v27  ;;  %v3805_v13 = vpop.f32.mrf.mxu3 }
 0x932   : > { %v3806_v49 = vadd.f32 %v3805_v13, %v8710_v61 }
 0x933   : > { %v3491_v20 = vrot.slane %v3490_v31, 2  ;;  %v3855_v58 = vpop.f32.mrf.mxu1 }
 0x935   : > { %v3492_v44 = vadd.f32 %v3491_v20, %v3490_v31  ;;  %v3905_v31 = vld [vmem:[#allocation6 + $0x10] sm:$0xff] }
 0x937   : > { %v3493_v17 = vrot.slane %v3492_v44, 1 }
 0x939   : > { %v3494_v45 = vadd.f32 %v3493_v17, %v3492_v44  ;;  %v3928_v44 = vld [vmem:[#allocation2 + $0x8] sm:$0xff] }
 0x93b   : > { %v3945_v46 = vadd.f32 %v3944_v33, %v3494_v45  ;;  %v3857_v51 = vpop.f32.mrf.mxu1  ;;  %v3825_v33 = vadd.f32 %v3824_v11, %v3806_v49 }
 0x93d   : > { %v3948_v25 = vadd.f32 %v3947_v1, %v3945_v46  ;;  %v3909_v1 = vmul.f32 0.9, %v3905_v31  ;;  %v3917_v46 = vmul.f32 0.0005, %v5896_v26 }
 0x93f   : > { %3950 = vst.msk [vmem:[#allocation7] sm:$0x1] %vm3949_vm11, %v3948_v25  ;;  %v3952_v56 = vmul.f32 0.01, %v3948_v25 }
 0x941   : > { %v3953_v6 = vsub.f32 %v3951_v55, %v3952_v56 }
 0x943   : > { %3954 = vst.msk [vmem:[#allocation3] sm:$0x1] %vm3949_vm11, %v3953_v6  ;;  %v3860_v47 = vpop.f32.mrf.mxu1  ;;  %v3906_v6 = vld [vmem:[#allocation6 + $0x18] sm:$0xff] }
 0x94b   : > { %v3862_v39 = vpop.f32.mrf.mxu1 }
 0x953   : > { %v3893_v62 = vpop.f32.mrf.mxu1 }
 0x95b   : > { %v3895_v35 = vpop.f32.mrf.mxu1 }
 0x95f   : > { %v3836_v16 = vpop.f32.mrf.mxu3 }
 0x960   : > { %v3837_v40 = vadd.f32 %v3836_v16, %v3818_v21 }
 0x962   : > { %v3856_v43 = vadd.f32 %v3855_v58, %v3837_v40  ;;  %v3930_v40 = vld [vmem:[#allocation2 + $0x18] sm:$0xff] }
 0x963   : > { %v3898_v17 = vpop.f32.mrf.mxu1 }
 0x967   : > { %v3838_v63 = vpop.f32.mrf.mxu3 }
 0x968   : > { %v3839_v2 = vadd.f32 %v3838_v63, %v3820_v32  ;;  %v5897_v63 = vld [vmem:[#allocation2 + $0x18] sm:$0xff] }
 0x96a   : > { %v3858_v52 = vadd.f32 %v3857_v51, %v3839_v2  ;;  %v3910_v51 = vmul.f32 0.9, %v3906_v6 }
 0x96b   : > { %v3900_v16 = vpop.f32.mrf.mxu1 }
 0x96f   : > { %v3841_v60 = vpop.f32.mrf.mxu3 }
 0x970   : > { %v3842_v7 = vadd.f32 %v3841_v60, %v3823_v18 }
 0x972   : > { %v3861_v20 = vadd.f32 %v3860_v47, %v3842_v7  ;;  %v3918_v47 = vmul.f32 0.0005, %v5897_v63 }
 0x977   : > { %v3843_v8 = vpop.f32.mrf.mxu3 }
 0x978   : > { %v3844_v25 = vadd.f32 %v3843_v8, %v3825_v33 }
 0x97a   : > { %v3863_v22 = vadd.f32 %v3862_v39, %v3844_v25 }
 0x97f   : > { %v3874_v4 = vpop.f32.mrf.mxu3 }
 0x980   : > { %v3875_v54 = vadd.f32 %v3874_v4, %v3856_v43 }
 0x982   : > { %v3894_v15 = vadd.f32 %v3893_v62, %v3875_v54 }
 0x984   : > { %v3911_v53 = vadd.f32 %v3907_v50, %v3894_v15 }
 0x986   : > { %v3919_v24 = vadd.f32 %v3915_v37, %v3911_v53 }
 0x987   : > { %v3876_v28 = vpop.f32.mrf.mxu3 }
 0x988   : > { %3923 = vst.msk [vmem:[#allocation6] sm:$0xff] %vm10163_vm9, %v3919_v24  ;;  %v3931_v10 = vmul.f32 0.01, %v3919_v24  ;;  %v3877_v9 = vadd.f32 %v3876_v28, %v3858_v52 }
 0x98a   : > { %v3935_v27 = vsub.f32 %v3927_v42, %v3931_v10  ;;  %v3896_v0 = vadd.f32 %v3895_v35, %v3877_v9 }
 0x98c   : > { %3939 = vst.msk [vmem:[#allocation2] sm:$0xff] %vm10164_vm13, %v3935_v27  ;;  %v3912_v36 = vadd.f32 %v3908_v57, %v3896_v0 }
 0x98e   : > { %v3920_v5 = vadd.f32 %v3916_v3, %v3912_v36 }
 0x98f   : > { %v3879_v14 = vpop.f32.mrf.mxu3 }
 0x990   : > { %3924 = vst.msk [vmem:[#allocation6 + $0x8] sm:$0xff] %vm10165_vm3, %v3920_v5  ;;  %v3932_v34 = vmul.f32 0.01, %v3920_v5  ;;  %v3880_v45 = vadd.f32 %v3879_v14, %v3861_v20 }
 0x992   : > { %v3936_v55 = vsub.f32 %v3928_v44, %v3932_v34  ;;  %v3899_v61 = vadd.f32 %v3898_v17, %v3880_v45 }
 0x994   : > { %3940 = vst.msk [vmem:[#allocation2 + $0x8] sm:$0xff] %vm10166_vm8, %v3936_v55  ;;  %v3913_v56 = vadd.f32 %v3909_v1, %v3899_v61 }
 0x996   : > { %v3921_v41 = vadd.f32 %v3917_v46, %v3913_v56 }
 0x997   : > { %v3881_v58 = vpop.f32.mrf.mxu3 }
 0x998   : > { %3925 = vst.msk [vmem:[#allocation6 + $0x10] sm:$0xff] %vm10167_vm7, %v3921_v41  ;;  %v3933_v11 = vmul.f32 0.01, %v3921_v41  ;;  %v3882_v13 = vadd.f32 %v3881_v58, %v3863_v22 }
 0x99a   : > { %v3937_v60 = vsub.f32 %v3929_v59, %v3933_v11  ;;  %v3901_v23 = vadd.f32 %v3900_v16, %v3882_v13 }
 0x99c   : > { %3941 = vst.msk [vmem:[#allocation2 + $0x10] sm:$0xff] %vm10121_vm0, %v3937_v60  ;;  %v3914_v8 = vadd.f32 %v3910_v51, %v3901_v23 }
 0x99e   : > { %v3922_v21 = vadd.f32 %v3918_v47, %v3914_v8 }
 0x9a0   : > { %3926 = vst.msk [vmem:[#allocation6 + $0x18] sm:$0xff] %vm10168_vm5, %v3922_v21  ;;  %v3934_v39 = vmul.f32 0.01, %v3922_v21 }
 0x9a2   : > { %v3938_v62 = vsub.f32 %v3930_v40, %v3934_v39 }
 0x9a4   : > { %3942 = vst.msk [vmem:[#allocation2 + $0x18] sm:$0xff] %vm10169_vm12, %v3938_v62 }
 0x9a5 PF: > { %p5456_p6 = scmp.ne.s32.totalorder %s6040_s14, 3 }
 0x9a7   : > { %4014 = sbr.rel (%p5456_p6) target bundleno = 3062 (0xbf6), region = 68 }
 0x9ac   : > { %v4082_v48 = vld [vmem:[#allocation2 + $0x10] sm:$0xff]  ;;  %v4083_v19 = vld [vmem:[#allocation2 + $0x18] sm:$0xff]  ;;  %v4080_v43 = vld [vmem:[#allocation2] sm:$0xff]  ;;  %vm4250_vm6 = vcmask 261120   ;;  %vm4703_vm2 = vcmask 254976   ;;  %vm4701_vm4 = vcmask 9216  }
 0x9ad   : > { %v4085_v4 = vpack.c.bf16 %v4083_v19, %v4082_v48  ;;  %v4081_v32 = vld [vmem:[#allocation2 + $0x8] sm:$0xff]  ;;  %v5689_v50 = vld [vmem:[%s9093_s3] sm:$0xff]  ;;  %v5704_v37 = vld [vmem:[%s9093_s3 + $0x78] sm:$0xff] }
 0x9ae   : > { %v4084_v54 = vpack.c.bf16 %v4081_v32, %v4080_v43  ;;  %v5699_v38 = vld [vmem:[%s9093_s3 + $0x50] sm:$0xff]  ;;  %v5712_v2 = vld [vmem:[%s9093_s3 + $0xb8] sm:$0xff]  ;;  %v5690_v15 = vld [vmem:[%s9093_s3 + $0x8] sm:$0xff] }
 0x9af   : > { %4353 = vmatpush.bf16.msra.mxu0 %v4085_v4  ;;  %5725 = vmatpush.bf16.msra.mxu1 %v4085_v4  ;;  %v5700_v12 = vld [vmem:[%s9093_s3 + $0x58] sm:$0xff]  ;;  %v5705_v53 = vld [vmem:[%s9093_s3 + $0x80] sm:$0xff]  ;;  %v5691_v29 = vld [vmem:[%s9093_s3 + $0x10] sm:$0xff] }
 0x9b0   : > { %5726 = vmatpush.bf16.msra.mxu2 %v4085_v4  ;;  %5727 = vmatpush.bf16.msra.mxu3 %v4085_v4  ;;  %v5713_v35 = vld [vmem:[%s9093_s3 + $0xc0] sm:$0xff]  ;;  %v5706_v24 = vld [vmem:[%s9093_s3 + $0x88] sm:$0xff]  ;;  %v5692_v28 = vld [vmem:[%s9093_s3 + $0x18] sm:$0xff] }
 0x9b1   : > { %v5701_v52 = vld [vmem:[%s9093_s3 + $0x60] sm:$0xff]  ;;  %v5714_v42 = vld [vmem:[%s9093_s3 + $0xc8] sm:$0xff]  ;;  %v5707_v10 = vld [vmem:[%s9093_s3 + $0x90] sm:$0xff] }
 0x9b2   : > { %v5702_v18 = vld [vmem:[%s9093_s3 + $0x68] sm:$0xff]  ;;  %v5715_v9 = vld [vmem:[%s9093_s3 + $0xd0] sm:$0xff]  ;;  %v5693_v57 = vld [vmem:[%s9093_s3 + $0x20] sm:$0xff] }
 0x9b3   : > { %4354 = vmatpush.bf16.msra.mxu0 %v4084_v54  ;;  %5728 = vmatpush.bf16.msra.mxu1 %v4084_v54  ;;  %v5703_v30 = vld [vmem:[%s9093_s3 + $0x70] sm:$0xff]  ;;  %v5708_v3 = vld [vmem:[%s9093_s3 + $0x98] sm:$0xff]  ;;  %v5694_v27 = vld [vmem:[%s9093_s3 + $0x28] sm:$0xff] }
 0x9b4   : > { %5729 = vmatpush.bf16.msra.mxu2 %v4084_v54  ;;  %5730 = vmatpush.bf16.msra.mxu3 %v4084_v54  ;;  %v5716_v7 = vld [vmem:[%s9093_s3 + $0xd8] sm:$0xff]  ;;  %v5709_v0 = vld [vmem:[%s9093_s3 + $0xa0] sm:$0xff]  ;;  %v5695_v36 = vld [vmem:[%s9093_s3 + $0x30] sm:$0xff] }
 0x9b5   : > { %v5717_v49 = vld [vmem:[%s9093_s3 + $0xe0] sm:$0xff]  ;;  %v5710_v31 = vld [vmem:[%s9093_s3 + $0xa8] sm:$0xff]  ;;  %v5696_v5 = vld [vmem:[%s9093_s3 + $0x38] sm:$0xff] }
 0x9b6   : > { %5585 = vmatmul.msk.bf16.vlgmr.msra.gmra.mxu0 %vm4250_vm6, %v5689_v50  ;;  %5595 = vmatmul.msk.bf16.vlgmr.msra.gmra.mxu1 %vm4250_vm6, %v5699_v38  ;;  %v5718_v20 = vld [vmem:[%s9093_s3 + $0xe8] sm:$0xff]  ;;  %v5711_v44 = vld [vmem:[%s9093_s3 + $0xb0] sm:$0xff]  ;;  %v5697_v17 = vld [vmem:[%s9093_s3 + $0x40] sm:$0xff] }
 0x9b7   : > { %5600 = vmatmul.msk.bf16.vlgmr.msra.gmra.mxu2 %vm4250_vm6, %v5704_v37  ;;  %5608 = vmatmul.msk.bf16.vlgmr.msra.gmra.mxu3 %vm4250_vm6, %v5712_v2  ;;  %v5719_v14 = vld [vmem:[%s9093_s3 + $0xf0] sm:$0xff]  ;;  %v5720_v45 = vld [vmem:[%s9093_s3 + $0xf8] sm:$0xff]  ;;  %v8894_v55 = vld [vmem:[#allocation3] ss:$0 sm:$0xff] }
 0x9b8   : > { %v5698_v41 = vld [vmem:[%s9093_s3 + $0x48] sm:$0xff] }
 0x9c6   : > { %5586 = vmatmul.msk.bf16.gmra.mxu0 %vm4250_vm6, %v5690_v15  ;;  %5596 = vmatmul.msk.bf16.gmra.mxu1 %vm4250_vm6, %v5700_v12 }
 0x9c7   : > { %5601 = vmatmul.msk.bf16.gmra.mxu2 %vm4250_vm6, %v5705_v53  ;;  %5609 = vmatmul.msk.bf16.gmra.mxu3 %vm4250_vm6, %v5713_v35 }
 0x9d6   : > { %5587 = vmatmul.msk.bf16.gmra.mxu0 %vm4250_vm6, %v5691_v29  ;;  %5597 = vmatmul.msk.bf16.gmra.mxu1 %vm4250_vm6, %v5701_v52 }
 0x9d7   : > { %5602 = vmatmul.msk.bf16.gmra.mxu2 %vm4250_vm6, %v5706_v24  ;;  %5610 = vmatmul.msk.bf16.gmra.mxu3 %vm4250_vm6, %v5714_v42 }
 0x9e6   : > { %5588 = vmatmul.msk.bf16.gmra.mxu0 %vm4250_vm6, %v5692_v28  ;;  %5598 = vmatmul.msk.bf16.gmra.mxu1 %vm4250_vm6, %v5702_v18 }
 0x9e7   : > { %5603 = vmatmul.msk.bf16.gmra.mxu2 %vm4250_vm6, %v5707_v10  ;;  %5611 = vmatmul.msk.bf16.gmra.mxu3 %vm4250_vm6, %v5715_v9 }
 0x9f6   : > { %5589 = vmatmul.msk.bf16.gmra.mxu0 %vm4250_vm6, %v5693_v57  ;;  %5599 = vmatmul.msk.bf16.gmra.mxu1 %vm4250_vm6, %v5703_v30 }
 0x9f7   : > { %5604 = vmatmul.msk.bf16.gmra.mxu2 %vm4250_vm6, %v5708_v3  ;;  %5612 = vmatmul.msk.bf16.gmra.mxu3 %vm4250_vm6, %v5716_v7 }
 0xa06   : > { %5590 = vmatmul.msk.bf16.gmra.mxu0 %vm4250_vm6, %v5694_v27 }
 0xa07   : > { %5605 = vmatmul.msk.bf16.gmra.mxu2 %vm4250_vm6, %v5709_v0  ;;  %5613 = vmatmul.msk.bf16.gmra.mxu3 %vm4250_vm6, %v5717_v49 }
 0xa16   : > { %5591 = vmatmul.msk.bf16.gmra.mxu0 %vm4250_vm6, %v5695_v36 }
 0xa17   : > { %5606 = vmatmul.msk.bf16.gmra.mxu2 %vm4250_vm6, %v5710_v31  ;;  %5614 = vmatmul.msk.bf16.gmra.mxu3 %vm4250_vm6, %v5718_v20 }
 0xa26   : > { %5592 = vmatmul.msk.bf16.gmra.mxu0 %vm4250_vm6, %v5696_v5 }
 0xa27   : > { %5607 = vmatmul.msk.bf16.gmra.mxu2 %vm4250_vm6, %v5711_v44  ;;  %5615 = vmatmul.msk.bf16.gmra.mxu3 %vm4250_vm6, %v5719_v14 }
 0xa33   : > { %v8881_v33 = vpop.f32.mrf.mxu0  ;;  %v8883_v34 = vpop.f32.mrf.mxu1 }
 0xa36   : > { %5593 = vmatmul.msk.bf16.gmra.mxu0 %vm4250_vm6, %v5697_v17 }
 0xa37   : > { %5616 = vmatmul.msk.bf16.gmra.mxu3 %vm4250_vm6, %v5720_v45 }
 0xa3a   : > { %v4431_v1 = vpop.f32.mrf.mxu2  ;;  %v4471_v26 = vpop.f32.mrf.mxu3 }
 0xa3b   : > { %v8890_v46 = vpop.f32.mrf.mxu0  ;;  %v8892_v25 = vpop.f32.mrf.mxu1  ;;  %v4432_v61 = vadd.f32 %v8894_v55, %v4431_v1  ;;  %v4472_v56 = vadd.f32 %v8894_v55, %v4471_v26 }
 0xa3d   : > { %v4546_v51 = vmax.f32 %v4432_v61, 0.0  ;;  %v4562_v63 = vmax.f32 %v4472_v56, 0.0  ;;  %v4409_v61 = vadd.f32 %v8894_v55, %v8892_v25 }
 0xa42   : > { %v4433_v6 = vpop.f32.mrf.mxu2  ;;  %v4473_v22 = vpop.f32.mrf.mxu3 }
 0xa43   : > { %v4434_v59 = vadd.f32 %v8894_v55, %v4433_v6  ;;  %v8902_v58 = vpop.f32.mrf.mxu0  ;;  %v4411_v11 = vpop.f32.mrf.mxu1  ;;  %v4474_v13 = vadd.f32 %v8894_v55, %v4473_v22 }
 0xa44   : > { %v4412_v45 = vadd.f32 %v8894_v55, %v4411_v11 }
 0xa45   : > { %v4547_v16 = vmax.f32 %v4434_v59, 0.0  ;;  %v4563_v47 = vmax.f32 %v4474_v13, 0.0  ;;  %v4407_v59 = vadd.f32 %v8894_v55, %v8883_v34  ;;  %v4537_v13 = vmax.f32 %v4409_v61, 0.0 }
 0xa46   : > { %5594 = vmatmul.msk.bf16.gmra.mxu0 %vm4250_vm6, %v5698_v41  ;;  %v4538_v56 = vmax.f32 %v4412_v45, 0.0 }
 0xa47   : > { %4610 = vmatpush.msrb.mxu2 %v4547_v16  ;;  %4630 = vmatpush.msrb.mxu3 %v4563_v47  ;;  %v4536_v11 = vmax.f32 %v4407_v59, 0.0 }
 0xa49   : > { %4611 = vmatpush.msrb.mxu2 %v4546_v51  ;;  %4631 = vmatpush.msrb.mxu3 %v4562_v63 }
 0xa4a   : > { %v8906_v60 = vpop.f32.mrf.mxu2  ;;  %v8908_v23 = vpop.f32.mrf.mxu3 }
 0xa4b   : > { %v8910_v8 = vpop.f32.mrf.mxu0  ;;  %v4413_v21 = vpop.f32.mrf.mxu1 }
 0xa4c   : > { %v4414_v14 = vadd.f32 %v8894_v55, %v4413_v21 }
 0xa4e   : > { %v4539_v26 = vmax.f32 %v4414_v14, 0.0 }
 0xa52   : > { %v8912_v40 = vpop.f32.mrf.mxu2  ;;  %v8914_v39 = vpop.f32.mrf.mxu3 }
 0xa53   : > { %v8916_v62 = vpop.f32.mrf.mxu0  ;;  %v4416_v48 = vpop.f32.mrf.mxu1 }
 0xa54   : > { %v4417_v36 = vadd.f32 %v8894_v55, %v4416_v48 }
 0xa56   : > { %v4540_v1 = vmax.f32 %v4417_v36, 0.0 }
 0xa5a   : > { %v8918_v19 = vpop.f32.mrf.mxu2  ;;  %v8920_v43 = vpop.f32.mrf.mxu3 }
 0xa5b   : > { %v8922_v4 = vpop.f32.mrf.mxu0  ;;  %v4418_v32 = vpop.f32.mrf.mxu1 }
 0xa5c   : > { %v4419_v0 = vadd.f32 %v8894_v55, %v4418_v32 }
 0xa5e   : > { %v4541_v17 = vmax.f32 %v4419_v0, 0.0 }
 0xa62   : > { %v8924_v54 = vpop.f32.mrf.mxu2  ;;  %v8926_v50 = vpop.f32.mrf.mxu3 }
 0xa63   : > { %v8928_v38 = vpop.f32.mrf.mxu0  ;;  %v4421_v37 = vpop.f32.mrf.mxu1 }
 0xa64   : > { %v4422_v3 = vadd.f32 %v8894_v55, %v4421_v37 }
 0xa66   : > { %v4542_v31 = vmax.f32 %v4422_v3, 0.0 }
 0xa6a   : > { %v8930_v2 = vpop.f32.mrf.mxu2  ;;  %v8932_v15 = vpop.f32.mrf.mxu3 }
 0xa6b   : > { %v8934_v12 = vpop.f32.mrf.mxu0  ;;  %v4423_v53 = vpop.f32.mrf.mxu1 }
 0xa6c   : > { %v4424_v57 = vadd.f32 %v8894_v55, %v4423_v53 }
 0xa6e   : > { %v4543_v49 = vmax.f32 %v4424_v57, 0.0 }
 0xa72   : > { %v8936_v35 = vpop.f32.mrf.mxu2  ;;  %v8938_v29 = vpop.f32.mrf.mxu3 }
 0xa73   : > { %v8940_v52 = vpop.f32.mrf.mxu0  ;;  %v4426_v24 = vpop.f32.mrf.mxu1 }
 0xa74   : > { %v4427_v42 = vadd.f32 %v8894_v55, %v4426_v24 }
 0xa76   : > { %v4544_v7 = vmax.f32 %v4427_v42, 0.0 }
 0xa7a   : > { %v8943_v28 = vpop.f32.mrf.mxu2  ;;  %v8945_v18 = vpop.f32.mrf.mxu3 }
 0xa7b   : > { %v8947_v10 = vpop.f32.mrf.mxu0  ;;  %v4428_v9 = vpop.f32.mrf.mxu1 }
 0xa7c   : > { %v4429_v30 = vadd.f32 %v8894_v55, %v4428_v9 }
 0xa7e   : > { %v4545_v27 = vmax.f32 %v4429_v30, 0.0 }
 0xa80   : > { %4612 = vmatpush.msrb.mxu2 %v4545_v27 }
 0xa82   : > { %v8954_v20 = vpop.f32.mrf.mxu2  ;;  %4613 = vmatpush.msrb.mxu2 %v4544_v7  ;;  %v8956_v5 = vpop.f32.mrf.mxu3 }
 0xa83   : > { %v4381_v44 = vpop.f32.mrf.mxu0 }
 0xa84   : > { %4614 = vmatpush.msrb.mxu2 %v4543_v49  ;;  %v4382_v45 = vadd.f32 %v8894_v55, %v4381_v44  ;;  %v4079_v44 = vld [vmem:[%s9094_s4] sm:$0xff] }
 0xa85   : > { %4581 = vst [vmem:[#allocation1] ss:$4 sm:$0xff] %v4079_v44 }
 0xa86   : > { %4615 = vmatpush.msrb.mxu2 %v4542_v31 }
 0xa88   : > { %4616 = vmatpush.msrb.mxu2 %v4541_v17 }
 0xa8a   : > { %v4456_v6 = vpop.f32.mrf.mxu2  ;;  %4617 = vmatpush.msrb.mxu2 %v4540_v1  ;;  %v8962_v22 = vpop.f32.mrf.mxu3 }
 0xa8b   : > { %v4383_v41 = vpop.f32.mrf.mxu0 }
 0xa8c   : > { %4618 = vmatpush.msrb.mxu2 %v4539_v26  ;;  %v4384_v0 = vadd.f32 %v8894_v55, %v4383_v41  ;;  %v4379_v41 = vadd.f32 %v8894_v55, %v8947_v10  ;;  %v4374_v10 = vadd.f32 %v8894_v55, %v8934_v12  ;;  %v4369_v12 = vadd.f32 %v8894_v55, %v8922_v4 }
 0xa8d   : > { %v4364_v4 = vadd.f32 %v8894_v55, %v8910_v8  ;;  %v4359_v8 = vadd.f32 %v8894_v55, %v8890_v46 }
 0xa8e   : > { %4619 = vmatpush.msrb.mxu2 %v4538_v56  ;;  %v4527_v59 = vmax.f32 %v4384_v0, 0.0  ;;  %v4521_v0 = vmax.f32 %v4369_v12, 0.0 }
 0xa90   : > { %4620 = vmatpush.msrb.mxu2 %v4537_v13 }
 0xa92   : > { %v4458_v51 = vpop.f32.mrf.mxu2  ;;  %4621 = vmatpush.msrb.mxu2 %v4536_v11  ;;  %v8966_v16 = vpop.f32.mrf.mxu3  ;;  %v4377_v11 = vadd.f32 %v8894_v55, %v8940_v52 }
 0xa93   : > { %v4386_v63 = vpop.f32.mrf.mxu0 }
 0xa94   : > { %v4387_v3 = vadd.f32 %v8894_v55, %v4386_v63  ;;  %v4526_v63 = vmax.f32 %v4382_v45, 0.0 }
 0xa96   : > { %v4528_v1 = vmax.f32 %v4387_v3, 0.0 }
 0xa9a   : > { %v4461_v25 = vpop.f32.mrf.mxu2  ;;  %v8968_v47 = vpop.f32.mrf.mxu3 }
 0xa9b   : > { %v4388_v21 = vpop.f32.mrf.mxu0  ;;  %v4462_v13 = vadd.f32 %v8894_v55, %v4461_v25  ;;  %v4457_v25 = vadd.f32 %v8894_v55, %v4456_v6  ;;  %v4452_v6 = vadd.f32 %v8894_v55, %v8943_v28  ;;  %v4447_v28 = vadd.f32 %v8894_v55, %v8930_v2 }
 0xa9c   : > { %v4389_v57 = vadd.f32 %v8894_v55, %v4388_v21  ;;  %v4459_v21 = vadd.f32 %v8894_v55, %v4458_v51  ;;  %v4442_v2 = vadd.f32 %v8894_v55, %v8918_v19  ;;  %v4437_v19 = vadd.f32 %v8894_v55, %v8906_v60 }
 0xa9d   : > { %v4556_v3 = vmax.f32 %v4457_v25, 0.0 }
 0xa9e   : > { %v4529_v49 = vmax.f32 %v4389_v57, 0.0  ;;  %v4557_v57 = vmax.f32 %v4459_v21, 0.0 }
 0xaa2   : > { %v4463_v48 = vpop.f32.mrf.mxu2  ;;  %v8970_v32 = vpop.f32.mrf.mxu3 }
 0xaa3   : > { %v4391_v37 = vpop.f32.mrf.mxu0  ;;  %v4464_v26 = vadd.f32 %v8894_v55, %v4463_v48 }
 0xaa4   : > { %v4392_v42 = vadd.f32 %v8894_v55, %v4391_v37  ;;  %v4525_v37 = vmax.f32 %v4379_v41, 0.0 }
 0xaa5   : > { %v4559_v48 = vmax.f32 %v4464_v26, 0.0 }
 0xaa6   : > { %v4530_v7 = vmax.f32 %v4392_v42, 0.0  ;;  %v4524_v42 = vmax.f32 %v4377_v11, 0.0  ;;  %v4550_v11 = vmax.f32 %v4442_v2, 0.0 }
 0xaaa   : > { %v4466_v53 = vpop.f32.mrf.mxu2  ;;  %v8972_v34 = vpop.f32.mrf.mxu3 }
 0xaab   : > { %v4393_v24 = vpop.f32.mrf.mxu0  ;;  %v4467_v27 = vadd.f32 %v8894_v55, %v4466_v53  ;;  %v4558_v53 = vmax.f32 %v4462_v13, 0.0 }
 0xaac   : > { %v4394_v9 = vadd.f32 %v8894_v55, %v4393_v24  ;;  %v4372_v24 = vadd.f32 %v8894_v55, %v8928_v38  ;;  %v4367_v38 = vadd.f32 %v8894_v55, %v8916_v62  ;;  %v4362_v62 = vadd.f32 %v8894_v55, %v8902_v58 }
 0xaad   : > { %v4560_v61 = vmax.f32 %v4467_v27, 0.0  ;;  %v4357_v58 = vadd.f32 %v8894_v55, %v8881_v33 }
 0xaae   : > { %v4531_v30 = vmax.f32 %v4394_v9, 0.0  ;;  %v4454_v9 = vadd.f32 %v8894_v55, %v8954_v20  ;;  %v4449_v20 = vadd.f32 %v8894_v55, %v8936_v35  ;;  %v4444_v35 = vadd.f32 %v8894_v55, %v8924_v54 }
 0xaaf   : > { %v4439_v54 = vadd.f32 %v8894_v55, %v8912_v40  ;;  %v4516_v44 = vmax.f32 %v4357_v58, 0.0 }
 0xab0   : > { %4590 = vmatpush.msrb.mxu1 %v4531_v30  ;;  %v4523_v30 = vmax.f32 %v4374_v10, 0.0  ;;  %v4555_v27 = vmax.f32 %v4454_v9, 0.0  ;;  %v4553_v45 = vmax.f32 %v4449_v20, 0.0  ;;  %v4551_v41 = vmax.f32 %v4444_v35, 0.0 }
 0xab1   : > { %v4549_v21 = vmax.f32 %v4439_v54, 0.0  ;;  %v4584_v9 = vld.sshfl [vmem:[#allocation1 + $0x10] sm:$0xff pattern:$0x73625140]  ;;  %v5899_v54 = vld [vmem:[#allocation5] ss:$0 sm:$0xff] }
 0xab2   : > { %v4468_v36 = vpop.f32.mrf.mxu2  ;;  %4591 = vmatpush.msrb.mxu1 %v4530_v7  ;;  %v8980_v31 = vpop.f32.mrf.mxu3  ;;  %v4522_v7 = vmax.f32 %v4372_v24, 0.0  ;;  %v4548_v24 = vmax.f32 %v4437_v19, 0.0 }
 0xab3   : > { %v4469_v14 = vadd.f32 %v8894_v55, %v4468_v36  ;;  %v8983_v17 = vpop.f32.mrf.mxu0 }
 0xab4   : > { %4592 = vmatpush.msrb.mxu1 %v4529_v49  ;;  %v4554_v49 = vmax.f32 %v4452_v6, 0.0 }
 0xab5   : > { %v4561_v56 = vmax.f32 %v4469_v14, 0.0  ;;  %v4520_v14 = vmax.f32 %v4367_v38, 0.0 }
 0xab6   : > { %4593 = vmatpush.msrb.mxu1 %v4528_v1  ;;  %v4519_v1 = vmax.f32 %v4364_v4, 0.0 }
 0xab7   : > { %4632 = vmatpush.msrb.mxu3 %v4561_v56  ;;  %v4518_v56 = vmax.f32 %v4362_v62, 0.0 }
 0xab8   : > { %4594 = vmatpush.msrb.mxu1 %v4527_v59  ;;  %v4517_v59 = vmax.f32 %v4359_v8, 0.0  ;;  %v4672_v8 = vld [vmem:[#allocation4 + $0x10] sm:$0xff] }
 0xab9   : > { %4633 = vmatpush.msrb.mxu3 %v4560_v61  ;;  %v4552_v61 = vmax.f32 %v4447_v28, 0.0 }
 0xaba   : > { %4595 = vmatpush.msrb.mxu1 %v4526_v63  ;;  %v4511_v51 = vpop.f32.mrf.mxu3 }
 0xabb   : > { %4634 = vmatpush.msrb.mxu3 %v4559_v48  ;;  %v8999_v52 = vpop.f32.mrf.mxu0  ;;  %v4512_v63 = vadd.f32 %v8894_v55, %v4511_v51  ;;  %v4509_v48 = vadd.f32 %v8894_v55, %v8980_v31  ;;  %v4397_v31 = vadd.f32 %v8894_v55, %v8983_v17  ;;  %v4499_v17 = vadd.f32 %v8894_v55, %v8966_v16 }
 0xabc   : > { %4596 = vmatpush.msrb.mxu1 %v4525_v37  ;;  %v4582_v37 = vld.sshfl [vmem:[#allocation1] sm:$0xff pattern:$0x73625140]  ;;  %v4399_v60 = vadd.f32 %v8894_v55, %v8999_v52  ;;  %v4489_v16 = vadd.f32 %v8894_v55, %v8938_v29  ;;  %v4479_v29 = vadd.f32 %v8894_v55, %v8914_v39  ;;  %v4670_v39 = vld [vmem:[#allocation4] sm:$0xff] }
 0xabd   : > { %4635 = vmatpush.msrb.mxu3 %v4558_v53  ;;  %v4578_v51 = vmax.f32 %v4512_v63, 0.0  ;;  %v4577_v12 = vmax.f32 %v4509_v48, 0.0  ;;  %v4532_v6 = vmax.f32 %v4397_v31, 0.0  ;;  %v4573_v20 = vmax.f32 %v4499_v17, 0.0 }
 0xabe   : > { %4597 = vmatpush.msrb.mxu1 %v4524_v42  ;;  %v4507_v42 = vadd.f32 %v8894_v55, %v8972_v34  ;;  %v4533_v52 = vmax.f32 %v4399_v60, 0.0  ;;  %v4502_v34 = vadd.f32 %v8894_v55, %v8968_v47  ;;  %v4494_v47 = vadd.f32 %v8894_v55, %v8956_v5 }
 0xabf   : > { %4636 = vmatpush.msrb.mxu3 %v4557_v57  ;;  %v4504_v57 = vadd.f32 %v8894_v55, %v8970_v32  ;;  %v4497_v32 = vadd.f32 %v8894_v55, %v8962_v22  ;;  %v4487_v22 = vadd.f32 %v8894_v55, %v8932_v15  ;;  %v4484_v5 = vadd.f32 %v8894_v55, %v8926_v50 }
 0xac0   : > { %4598 = vmatpush.msrb.mxu1 %v4523_v30  ;;  %v4576_v30 = vmax.f32 %v4507_v42, 0.0  ;;  %v4477_v15 = vadd.f32 %v8894_v55, %v8908_v23  ;;  %v4565_v35 = vmax.f32 %v4479_v29, 0.0 }
 0xac1   : > { %4637 = vmatpush.msrb.mxu3 %v4556_v3  ;;  %v4583_v3 = vld.sshfl [vmem:[#allocation1 + $0x8] sm:$0xff pattern:$0x73625140]  ;;  %v4575_v38 = vmax.f32 %v4504_v57, 0.0  ;;  %v4572_v4 = vmax.f32 %v4497_v32, 0.0  ;;  %v4567_v62 = vmax.f32 %v4484_v5, 0.0 }
 0xac2   : > { %4599 = vmatpush.msrb.mxu1 %v4522_v7  ;;  %v4513_v26 = vpop.f32.mrf.mxu3  ;;  %v4574_v7 = vmax.f32 %v4502_v34, 0.0  ;;  %v4564_v50 = vmax.f32 %v4477_v15, 0.0 }
 0xac3   : > { %4638 = vmatpush.msrb.mxu3 %v4555_v27  ;;  %v4401_v36 = vpop.f32.mrf.mxu0  ;;  %v4514_v46 = vadd.f32 %v8894_v55, %v4513_v26  ;;  %v4492_v27 = vadd.f32 %v8894_v55, %v8945_v18  ;;  %v4482_v18 = vadd.f32 %v8894_v55, %v8920_v43  ;;  %v4673_v43 = vld [vmem:[#allocation4 + $0x18] sm:$0xff] }
 0xac4   : > { %4600 = vmatpush.msrb.mxu1 %v4521_v0  ;;  %v4402_v13 = vadd.f32 %v8894_v55, %v4401_v36  ;;  %v4571_v0 = vmax.f32 %v4494_v47, 0.0  ;;  %v4568_v36 = vmax.f32 %v4487_v22, 0.0 }
 0xac5   : > { %4639 = vmatpush.msrb.mxu3 %v4554_v49  ;;  %v4579_v10 = vmax.f32 %v4514_v46, 0.0  ;;  %v4570_v28 = vmax.f32 %v4492_v27, 0.0  ;;  %v4569_v49 = vmax.f32 %v4489_v16, 0.0 }
 0xac6   : > { %4601 = vmatpush.msrb.mxu1 %v4520_v14  ;;  %v4534_v25 = vmax.f32 %v4402_v13, 0.0  ;;  %v4566_v14 = vmax.f32 %v4482_v18, 0.0 }
 0xac7   : > { %4640 = vmatpush.msrb.mxu3 %v4553_v45  ;;  %v4585_v45 = vld.sshfl [vmem:[#allocation1 + $0x18] sm:$0xff pattern:$0x73625140] }
 0xac8   : > { %4602 = vmatpush.msrb.mxu1 %v4519_v1  ;;  %v4671_v1 = vld [vmem:[#allocation4 + $0x8] sm:$0xff] }
 0xac9   : > { %4641 = vmatpush.msrb.mxu3 %v4552_v61 }
 0xaca   : > { %4603 = vmatpush.msrb.mxu1 %v4518_v56 }
 0xacb   : > { %4642 = vmatpush.msrb.mxu3 %v4551_v41  ;;  %v4403_v33 = vpop.f32.mrf.mxu0 }
 0xacc   : > { %4604 = vmatpush.msrb.mxu1 %v4517_v59  ;;  %v4404_v40 = vadd.f32 %v8894_v55, %v4403_v33 }
 0xacd   : > { %4643 = vmatpush.msrb.mxu3 %v4550_v11 }
 0xace   : > { %4605 = vmatpush.msrb.mxu1 %v4516_v44  ;;  %v4535_v53 = vmax.f32 %v4404_v40, 0.0 }
 0xacf   : > { %4644 = vmatpush.msrb.mxu3 %v4549_v21  ;;  %4606 = vmatmul.f32.vlgmr.msrb.gmra.mxu1 %v4582_v37 }
 0xad0   : > { %4650 = vmatpush.msra.mxu1 %v4579_v10  ;;  %4622 = vmatpush.msrb.mxu2 %v4535_v53 }
 0xad1   : > { %4645 = vmatpush.msrb.mxu3 %v4548_v24 }
 0xad2   : > { %4651 = vmatpush.msra.mxu1 %v4578_v51  ;;  %4623 = vmatpush.msrb.mxu2 %v4534_v25 }
 0xad3   : > { %4646 = vmatmul.f32.vlgmr.msrb.gmra.mxu3 %v4584_v9 }
 0xad4   : > { %4652 = vmatpush.msra.mxu1 %v4577_v12  ;;  %4624 = vmatpush.msrb.mxu2 %v4533_v52 }
 0xad6   : > { %4653 = vmatpush.msra.mxu1 %v4576_v30  ;;  %4625 = vmatpush.msrb.mxu2 %v4532_v6 }
 0xad7   : > { %4626 = vmatmul.f32.vlgmr.msrb.gmra.mxu2 %v4583_v3 }
 0xad8   : > { %4654 = vmatpush.msra.mxu1 %v4575_v38  ;;  %4693 = vmatpush.msra.mxu2 %v4673_v43 }
 0xada   : > { %4655 = vmatpush.msra.mxu1 %v4574_v7  ;;  %4694 = vmatpush.msra.mxu2 %v4672_v8 }
 0xadc   : > { %4656 = vmatpush.msra.mxu1 %v4573_v20  ;;  %4695 = vmatpush.msra.mxu2 %v4671_v1 }
 0xade   : > { %4657 = vmatpush.msra.mxu1 %v4572_v4  ;;  %4696 = vmatpush.msra.mxu2 %v4670_v39 }
 0xae0   : > { %4658 = vmatpush.msra.mxu1 %v4571_v0 }
 0xae2   : > { %4659 = vmatpush.msra.mxu1 %v4570_v28 }
 0xae4   : > { %4660 = vmatpush.msra.mxu1 %v4569_v49 }
 0xae6   : > { %4661 = vmatpush.msra.mxu1 %v4568_v36 }
 0xae8   : > { %4662 = vmatpush.msra.mxu1 %v4567_v62 }
 0xaea   : > { %4663 = vmatpush.msra.mxu1 %v4566_v14 }
 0xaec   : > { %4664 = vmatpush.msra.mxu1 %v4565_v35 }
 0xaee   : > { %4665 = vmatpush.msra.mxu1 %v4564_v50 }
 0xaef   : > { %4666 = vmatmul.f32.vlgmr.msra.gmra.mxu1 %v4585_v45 }
 0xb4c   : > { %v4607_v26 = vpop.f32.mrf.mxu1 }
 0xb56   : > { %v4647_v23 = vpop.f32.mrf.mxu3 }
 0xb5a   : > { %v4627_v2 = vpop.f32.mrf.mxu2 }
 0xb5b   : > { %v4628_v55 = vadd.f32 %v4627_v2, %v4607_v26 }
 0xb5d   : > { %v4648_v61 = vadd.f32 %v4647_v23, %v4628_v55 }
 0xb6c   : > { %v4667_v58 = vpop.f32.mrf.mxu1 }
 0xb6d   : > { %v4668_v56 = vadd.f32 %v4667_v58, %v4648_v61 }
 0xb6f   : > { %4704 = vst.msk [vmem:[#allocation12] sm:$0x3] %vm4703_vm2, %v4668_v56  ;;  %5617 = vmatmul.msk.f32.vlgmr.msra.gmra.mxu2 %vm4250_vm6, %v4668_v56 }
 0xbf2   : > { %v4698_v41 = vpop.f32.mrf.mxu2 }
 0xbf3   : > { %v4699_v46 = vadd.f32 %v5899_v54, %v4698_v41 }
 0xbf5   : > { %4702 = vst.msk [vmem:[#allocation10] sm:$0x3] %vm4701_vm4, %v4699_v46 }
 0xbf6 PF: > { %p5815_p7 = scmp.eq.s32.totalorder %s6040_s14, 3  ;;  %s5973_s30 = smov [#allocation10]  }
 0xbf7   : > { %s4711_s11 = sshll.u32 %s5973_s30, 4  ;;  %s4713_s16 = sshll.u32 %s9099_s9, 4  ;;  %s4712_s11 = int_to_ptr.vmem [resolvable:$true] %s4711_s11  ;;  %s4714_s16 = int_to_ptr.hbm [resolvable:$true] %s4713_s16 }
 0xbf8   : > { %5808 = dma.vmem_to_hbm [thread:$0]  (%p5815_p7), %s4712_s11, 32, %s4714_s16, [#allocation11]  }
 0xbf9   : > { %s4725_s23 = sshll.u32 %s9100_s10, 4  ;;  %s5974_s18 = smov [#allocation12]   ;;  %s4726_s23 = int_to_ptr.hbm [resolvable:$true] %s4725_s23 }
 0xbfa   : > { %s4723_s19 = sshll.u32 %s5974_s18, 4  ;;  %s4724_s19 = int_to_ptr.vmem [resolvable:$true] %s4723_s19 }
 0xbfb   : > { %5810 = dma.vmem_to_hbm [thread:$0]  (%p5815_p7), %s4724_s19, 32, %s4726_s23, [#allocation13]  }
 0xbfc   : > { %5961 = dma.done.wait (%p5815_p7), [#allocation11], 32  }
 0xbfd   : > { %5963 = vsyncadd (%p5815_p7), [#allocation11], 4294967264 }
 0xbfe   : > { %5965 = dma.done.wait (%p5815_p7), [#allocation13], 32  }
 0xbff   : > { %5967 = vsyncadd (%p5815_p7), [#allocation13], 4294967264 }
 0xc00 PF: > { %s23_s13 = sadd.s32 1, %s5970_s13  }
 0xc01   : > { %p20_p8 = scmp.ge.s32.totalorder %s23_s13, 6  }
 0xc03   :  { %22 = sbr.rel (!%p20_p8) target bundleno = 2 (0x2), region = 112 }
 0xc08   :  { %4744 = vsyncpa [#allocation11], 1 }
 0xc09   :  { %4746 = vsyncpa [#allocation11 + $0x1], 1 }
 0xc0a   :  { %4747 = vsyncpa [#allocation13], 1 }

</bundles_post_ra>
